<compile_context>
chip_gen: v7x
topology: tpu7x:2x2x1
jax: 0.10.0
libtpu: 0.0.40
codegen_flags: <defaults>
</compile_context>

<pallas_src>
import numpy as np
import jax
import jax.numpy as jnp
from jax import lax
from jax.experimental import pallas as pl
from jax.experimental.pallas import tpu as pltpu


LRELU_SLOPE = 0.2
BN_EPS = 1e-5


# ----------------------------------------------------------------------------
# Fused kernel helpers (run on values already resident in VMEM / vregs)
# ----------------------------------------------------------------------------
def _conv_block(x_bf16, s_ref, b_ref):
    """4x4 / stride-2 / pad-1 conv:  (N*H, W*Cin) bf16 -> (N*OH, OW*Cout) f32."""
    acc = None
    for kh in range(4):                     # static unrolled loop over row taps
        sel = jnp.dot(s_ref[kh], x_bf16,    # exact 0/1 row selection
                      preferred_element_type=jnp.float32)
        part = jnp.dot(sel.astype(jnp.bfloat16), b_ref[kh],
                       preferred_element_type=jnp.float32)
        acc = part if acc is None else acc + part
    return acc


def _bn_lrelu(y, p_ref, pt_ref, g_ref, be_ref):
    """BatchNorm2d (training-mode batch stats, biased var) + LeakyReLU(0.2).

    y is (N*OH, OW*C).  P sums the OW column groups per channel; PT broadcasts
    a per-channel row vector back to all OW groups.  Mean-first two-pass
    variance on the resident f32 accumulator (v5e-safe: all f32).
    """
    p = p_ref[...]                                   # (OW*C, C) f32
    pt = pt_ref[...]                                 # (C, OW*C) f32
    ow = p.shape[0] // p.shape[1]
    m = y.shape[0] * ow                              # N*OH*OW elems per channel
    colsum = jnp.sum(y, axis=0, keepdims=True)       # (1, OW*C)
    mean = jnp.dot(colsum, p, preferred_element_type=jnp.float32) * (1.0 / m)
    d = y - jnp.dot(mean, pt, preferred_element_type=jnp.float32)
    sscol = jnp.sum(d * d, axis=0, keepdims=True)
    var = jnp.dot(sscol, p, preferred_element_type=jnp.float32) * (1.0 / m)
    scale = g_ref[...] * lax.rsqrt(var + BN_EPS)     # (1, C)
    z = (d * jnp.dot(scale, pt, preferred_element_type=jnp.float32)
         + jnp.dot(be_ref[...], pt, preferred_element_type=jnp.float32))
    return jnp.where(z >= 0, z, LRELU_SLOPE * z)


def _discriminator_kernel(x_ref,
                          s1_ref, b1_ref,
                          s2_ref, b2_ref, p2_ref, pt2_ref, g2_ref, be2_ref,
                          s3_ref, b3_ref, p3_ref, pt3_ref, g3_ref, be3_ref,
                          s4_ref, b4_ref, p4_ref, pt4_ref, g4_ref, be4_ref,
                          w5_ref, s5_ref,
                          o_ref):
    # Layer 1: Conv(nc, ndf, 4, 2, 1) + LeakyReLU
    y = _conv_block(x_ref[...], s1_ref, b1_ref)
    y = jnp.where(y >= 0, y, LRELU_SLOPE * y)
    x = y.astype(jnp.bfloat16)

    # Layer 2: Conv(ndf, 2ndf) + BN + LeakyReLU
    y = _conv_block(x, s2_ref, b2_ref)
    x = _bn_lrelu(y, p2_ref, pt2_ref, g2_ref, be2_ref).astype(jnp.bfloat16)

    # Layer 3: Conv(2ndf, 4ndf) + BN + LeakyReLU
    y = _conv_block(x, s3_ref, b3_ref)
    x = _bn_lrelu(y, p3_ref, pt3_ref, g3_ref, be3_ref).astype(jnp.bfloat16)

    # Layer 4: Conv(4ndf, 8ndf) + BN + LeakyReLU
    y = _conv_block(x, s4_ref, b4_ref)
    x = _bn_lrelu(y, p4_ref, pt4_ref, g4_ref, be4_ref).astype(jnp.bfloat16)

    # Layer 5: Conv(8ndf, 1, 2, 2, 0) + Sigmoid  (VPU product + row grouping)
    t = x.astype(jnp.float32) * w5_ref[...]                  # (2N, 2*8ndf)
    grouped = jnp.dot(s5_ref[...], t,                        # (N, 2*8ndf)
                      preferred_element_type=jnp.float32)
    logits = jnp.sum(grouped, axis=1, keepdims=True)         # (N, 1)
    o_ref[...] = jax.nn.sigmoid(logits)


# ----------------------------------------------------------------------------
# pallas_call wrapper (single launch, full blocks)
# ----------------------------------------------------------------------------
_PARAM_ORDER = ("s1", "b1",
                "s2", "b2", "p2", "pt2", "g2", "be2",
                "s3", "b3", "p3", "pt3", "g3", "be3",
                "s4", "b4", "p4", "pt4", "g4", "be4",
                "w5t", "s5")


def _full_spec(arr):
    nd = arr.ndim
    return pl.BlockSpec(arr.shape, lambda i: (0,) * nd)


def discriminator_forward(x_nchw, params):
    n, c, h, w = x_nchw.shape
    # The only XLA glue: NCHW -> (N*H, W*C) bf16 matrix.
    x_mat = jnp.transpose(x_nchw, (0, 2, 3, 1)).reshape(n * h, w * c)
    x_mat = x_mat.astype(jnp.bfloat16)

    operands = (x_mat,) + tuple(params[k] for k in _PARAM_ORDER)
    out = pl.pallas_call(
        _discriminator_kernel,
        out_shape=jax.ShapeDtypeStruct((n, 1), jnp.float32),
        grid=(1,),
        in_specs=[_full_spec(a) for a in operands],
        out_specs=pl.BlockSpec((n, 1), lambda i: (0, 0)),
        compiler_params=pltpu.CompilerParams(
            dimension_semantics=("arbitrary",)),
    )(*operands)
    # output.view(-1, 1).squeeze(1)
    return out.reshape(-1)


# ----------------------------------------------------------------------------
# Parameter construction (deterministic; torch-layout conv weights are turned
# into the S/B structured-GEMM form once at init time, outside the forward).
# ----------------------------------------------------------------------------
def _conv_matrices(wt, n, h, w):
    """wt: (Cout, Cin, 4, 4) f32.  Returns (S, B) for a 4x4/stride-2/pad-1 conv.

    S[kh]  (n*OH, n*H):   0/1 row selection  h_in = 2*oh + kh - 1  (0 if padded)
    B[kh]  (W*Cin, OW*Cout):  scattered taps so that
        y[(n,oh), (ow,cout)] = sum_kh (S[kh] @ x @ B[kh])[(n,oh), (ow,cout)]
    """
    cout, cin, _, _ = wt.shape
    oh, ow = h // 2, w // 2
    s = np.zeros((4, n * oh, n * h), np.float32)
    b = np.zeros((4, w * cin, ow * cout), np.float32)
    for kh in range(4):
        for bi in range(n):
            for r in range(oh):
                hi = 2 * r + kh - 1
                if 0 <= hi < h:
                    s[kh, bi * oh + r, bi * h + hi] = 1.0
        for oc in range(ow):
            for kw in range(4):
                wi = 2 * oc + kw - 1
                if 0 <= wi < w:
                    b[kh, wi * cin:(wi + 1) * cin,
                      oc * cout:(oc + 1) * cout] = wt[:, :, kh, kw].T
    return s, b


def init_params(key, n, nc=3, ndf=16, hw=32):
    ks = jax.random.split(key, 5)
    chans = [nc, ndf, ndf * 2, ndf * 4, ndf * 8]
    wts = [np.asarray(jax.random.normal(ks[i], (chans[i + 1], chans[i], 4, 4),
                                        jnp.float32)) * 0.05
           for i in range(4)]
    wt5 = np.asarray(jax.random.normal(ks[4], (1, ndf * 8, 2, 2),
                                       jnp.float32)) * 0.05

    params = {}
    spatial = hw
    for i in range(4):
        s, b = _conv_matrices(wts[i], n, spatial, spatial)
        params[f"s{i + 1}"] = jnp.asarray(s, jnp.bfloat16)
        params[f"b{i + 1}"] = jnp.asarray(b, jnp.bfloat16)
        spatial //= 2                       # output spatial of this layer
        if i >= 1:                          # layers 2..4 have BatchNorm
            cout = chans[i + 1]
            p = np.tile(np.eye(cout, dtype=np.float32), (spatial, 1))
            params[f"p{i + 1}"] = jnp.asarray(p)
            params[f"pt{i + 1}"] = jnp.asarray(np.ascontiguousarray(p.T))
            params[f"g{i + 1}"] = jnp.ones((1, cout), jnp.float32)
            params[f"be{i + 1}"] = jnp.zeros((1, cout), jnp.float32)

    # Head constants: w5 tiled over samples (rows alternate h=0,1) and the
    # (N, 2N) 0/1 row-grouping selector.
    c4 = ndf * 8
    w5row = np.transpose(wt5[0], (1, 2, 0)).reshape(2, 2 * c4)   # [h, w*C + c]
    w5t = np.tile(w5row, (n, 1))                                  # (2N, 2*C4)
    params["w5t"] = jnp.asarray(w5t, jnp.bfloat16).astype(jnp.float32)
    params["s5"] = jnp.asarray(np.repeat(np.eye(n, dtype=np.float32), 2, axis=1))

    # Raw torch-layout weights kept only for the pure-JAX reference check.
    for i in range(4):
        params[f"wt{i + 1}"] = jnp.asarray(wts[i])
    params["wt5"] = jnp.asarray(wt5)
    return params


# ----------------------------------------------------------------------------
# Pure-JAX reference (same numerics: bf16 weights/activations, f32 epilogue)
# ----------------------------------------------------------------------------
def _reference_forward(x_nchw, params):
    def conv(x, wt, stride, pad):
        return lax.conv_general_dilated(
            x.astype(jnp.bfloat16), jnp.asarray(wt, jnp.bfloat16),
            window_strides=(stride, stride), padding=((pad, pad), (pad, pad)),
            dimension_numbers=("NCHW", "OIHW", "NCHW"),
            preferred_element_type=jnp.float32)

    def bn_lrelu(y):
        mean = jnp.mean(y, axis=(0, 2, 3), keepdims=True)
        var = jnp.mean((y - mean) ** 2, axis=(0, 2, 3), keepdims=True)
        z = (y - mean) * lax.rsqrt(var + BN_EPS)
        return jnp.where(z >= 0, z, LRELU_SLOPE * z)

    y = conv(x_nchw, params["wt1"], 2, 1)
    y = jnp.where(y >= 0, y, LRELU_SLOPE * y)
    y = bn_lrelu(conv(y, params["wt2"], 2, 1))
    y = bn_lrelu(conv(y, params["wt3"], 2, 1))
    y = bn_lrelu(conv(y, params["wt4"], 2, 1))
    y = conv(y, params["wt5"], 2, 0)
    return jax.nn.sigmoid(y).reshape(-1)


if __name__ == "__main__":
    key = jax.random.PRNGKey(0)
    k_x, k_p = jax.random.split(key)

    N, NC, NDF, HW = 2, 3, 16, 32          # 32x32 input -> one scalar per image
    x = jax.random.normal(k_x, (N, NC, HW, HW), jnp.float32)   # NCHW like torch
    params = init_params(k_p, N, nc=NC, ndf=NDF, hw=HW)

    fwd = jax.jit(discriminator_forward)
    out = jax.block_until_ready(fwd(x, params))

    assert out.shape == (N,), out.shape
    assert bool(jnp.all(jnp.isfinite(out)))
    assert bool(jnp.all((out >= 0.0) & (out <= 1.0)))

    ref = _reference_forward(x, params)
    assert bool(jnp.max(jnp.abs(out - ref)) < 2e-2), (out, ref)

    print("KERNEL_OK")
</pallas_src>

<mosaic_0001>
module attributes {stable_mosaic.version = 11 : i64} {
  func.func @_discriminator_kernel(%arg0: i32, %arg1: memref<64x96xbf16, #tpu.memory_space<vmem>>, %arg2: memref<4x32x64xbf16, #tpu.memory_space<vmem>>, %arg3: memref<4x96x256xbf16, #tpu.memory_space<vmem>>, %arg4: memref<4x16x32xbf16, #tpu.memory_space<vmem>>, %arg5: memref<4x256x256xbf16, #tpu.memory_space<vmem>>, %arg6: memref<256x32xf32, #tpu.memory_space<vmem>>, %arg7: memref<32x256xf32, #tpu.memory_space<vmem>>, %arg8: memref<1x32xf32, #tpu.memory_space<vmem>>, %arg9: memref<1x32xf32, #tpu.memory_space<vmem>>, %arg10: memref<4x8x16xbf16, #tpu.memory_space<vmem>>, %arg11: memref<4x256x256xbf16, #tpu.memory_space<vmem>>, %arg12: memref<256x64xf32, #tpu.memory_space<vmem>>, %arg13: memref<64x256xf32, #tpu.memory_space<vmem>>, %arg14: memref<1x64xf32, #tpu.memory_space<vmem>>, %arg15: memref<1x64xf32, #tpu.memory_space<vmem>>, %arg16: memref<4x4x8xbf16, #tpu.memory_space<vmem>>, %arg17: memref<4x256x256xbf16, #tpu.memory_space<vmem>>, %arg18: memref<256x128xf32, #tpu.memory_space<vmem>>, %arg19: memref<128x256xf32, #tpu.memory_space<vmem>>, %arg20: memref<1x128xf32, #tpu.memory_space<vmem>>, %arg21: memref<1x128xf32, #tpu.memory_space<vmem>>, %arg22: memref<4x256xf32, #tpu.memory_space<vmem>>, %arg23: memref<2x4xf32, #tpu.memory_space<vmem>>, %arg24: memref<2x1xf32, #tpu.memory_space<vmem>>) attributes {dimension_semantics = [#tpu.dimension_semantics<arbitrary>], iteration_bounds = array<i64: 1>, scalar_prefetch = 0 : i64, scratch_operands = 0 : i64, tpu.core_type = #tpu.core_type<tc>, window_params = [{pipeline_mode = #tpu.pipeline_mode<synchronous>, transform_indices = @transform_0, window_bounds = array<i64: 64, 96>}, {pipeline_mode = #tpu.pipeline_mode<synchronous>, transform_indices = @transform_1, window_bounds = array<i64: 4, 32, 64>}, {pipeline_mode = #tpu.pipeline_mode<synchronous>, transform_indices = @transform_2, window_bounds = array<i64: 4, 96, 256>}, {pipeline_mode = #tpu.pipeline_mode<synchronous>, transform_indices = @transform_3, window_bounds = array<i64: 4, 16, 32>}, {pipeline_mode = #tpu.pipeline_mode<synchronous>, transform_indices = @transform_4, window_bounds = array<i64: 4, 256, 256>}, {pipeline_mode = #tpu.pipeline_mode<synchronous>, transform_indices = @transform_5, window_bounds = array<i64: 256, 32>}, {pipeline_mode = #tpu.pipeline_mode<synchronous>, transform_indices = @transform_6, window_bounds = array<i64: 32, 256>}, {pipeline_mode = #tpu.pipeline_mode<synchronous>, transform_indices = @transform_7, window_bounds = array<i64: 1, 32>}, {pipeline_mode = #tpu.pipeline_mode<synchronous>, transform_indices = @transform_8, window_bounds = array<i64: 1, 32>}, {pipeline_mode = #tpu.pipeline_mode<synchronous>, transform_indices = @transform_9, window_bounds = array<i64: 4, 8, 16>}, {pipeline_mode = #tpu.pipeline_mode<synchronous>, transform_indices = @transform_10, window_bounds = array<i64: 4, 256, 256>}, {pipeline_mode = #tpu.pipeline_mode<synchronous>, transform_indices = @transform_11, window_bounds = array<i64: 256, 64>}, {pipeline_mode = #tpu.pipeline_mode<synchronous>, transform_indices = @transform_12, window_bounds = array<i64: 64, 256>}, {pipeline_mode = #tpu.pipeline_mode<synchronous>, transform_indices = @transform_13, window_bounds = array<i64: 1, 64>}, {pipeline_mode = #tpu.pipeline_mode<synchronous>, transform_indices = @transform_14, window_bounds = array<i64: 1, 64>}, {pipeline_mode = #tpu.pipeline_mode<synchronous>, transform_indices = @transform_15, window_bounds = array<i64: 4, 4, 8>}, {pipeline_mode = #tpu.pipeline_mode<synchronous>, transform_indices = @transform_16, window_bounds = array<i64: 4, 256, 256>}, {pipeline_mode = #tpu.pipeline_mode<synchronous>, transform_indices = @transform_17, window_bounds = array<i64: 256, 128>}, {pipeline_mode = #tpu.pipeline_mode<synchronous>, transform_indices = @transform_18, window_bounds = array<i64: 128, 256>}, {pipeline_mode = #tpu.pipeline_mode<synchronous>, transform_indices = @transform_19, window_bounds = array<i64: 1, 128>}, {pipeline_mode = #tpu.pipeline_mode<synchronous>, transform_indices = @transform_20, window_bounds = array<i64: 1, 128>}, {pipeline_mode = #tpu.pipeline_mode<synchronous>, transform_indices = @transform_21, window_bounds = array<i64: 4, 256>}, {pipeline_mode = #tpu.pipeline_mode<synchronous>, transform_indices = @transform_22, window_bounds = array<i64: 2, 4>}, {pipeline_mode = #tpu.pipeline_mode<synchronous>, transform_indices = @transform_23, window_bounds = array<i64: 2, 1>}]} {
    %c0 = arith.constant 0 : index
    %c0_0 = arith.constant 0 : index
    %0 = vector.load %arg1[%c0, %c0_0] : memref<64x96xbf16, #tpu.memory_space<vmem>>, vector<64x96xbf16>
    %c0_1 = arith.constant 0 : index
    %c0_2 = arith.constant 0 : index
    %c0_3 = arith.constant 0 : index
    %1 = vector.load %arg2[%c0_1, %c0_2, %c0_3] : memref<4x32x64xbf16, #tpu.memory_space<vmem>>, vector<1x32x64xbf16>
    %2 = vector.shape_cast %1 : vector<1x32x64xbf16> to vector<32x64xbf16>
    %cst = arith.constant dense<0.000000e+00> : vector<32x96xf32>
    %3 = tpu.matmul %2, %0, %cst {dimension_numbers = #tpu.dot_dimension_numbers<[1], [0], [0], [1], [0, 0, 1, 1], [], []>} : vector<32x64xbf16>, vector<64x96xbf16>, vector<32x96xf32> -> vector<32x96xf32>
    %4 = arith.truncf %3 : vector<32x96xf32> to vector<32x96xbf16>
    %c0_4 = arith.constant 0 : index
    %c0_5 = arith.constant 0 : index
    %c0_6 = arith.constant 0 : index
    %5 = vector.load %arg3[%c0_4, %c0_5, %c0_6] : memref<4x96x256xbf16, #tpu.memory_space<vmem>>, vector<1x96x256xbf16>
    %6 = vector.shape_cast %5 : vector<1x96x256xbf16> to vector<96x256xbf16>
    %cst_7 = arith.constant dense<0.000000e+00> : vector<32x256xf32>
    %7 = tpu.matmul %4, %6, %cst_7 {dimension_numbers = #tpu.dot_dimension_numbers<[1], [0], [0], [1], [0, 0, 1, 1], [], []>} : vector<32x96xbf16>, vector<96x256xbf16>, vector<32x256xf32> -> vector<32x256xf32>
    %c1 = arith.constant 1 : index
    %c0_8 = arith.constant 0 : index
    %c0_9 = arith.constant 0 : index
    %8 = vector.load %arg2[%c1, %c0_8, %c0_9] : memref<4x32x64xbf16, #tpu.memory_space<vmem>>, vector<1x32x64xbf16>
    %9 = vector.shape_cast %8 : vector<1x32x64xbf16> to vector<32x64xbf16>
    %cst_10 = arith.constant dense<0.000000e+00> : vector<32x96xf32>
    %10 = tpu.matmul %9, %0, %cst_10 {dimension_numbers = #tpu.dot_dimension_numbers<[1], [0], [0], [1], [0, 0, 1, 1], [], []>} : vector<32x64xbf16>, vector<64x96xbf16>, vector<32x96xf32> -> vector<32x96xf32>
    %11 = arith.truncf %10 : vector<32x96xf32> to vector<32x96xbf16>
    %c1_11 = arith.constant 1 : index
    %c0_12 = arith.constant 0 : index
    %c0_13 = arith.constant 0 : index
    %12 = vector.load %arg3[%c1_11, %c0_12, %c0_13] : memref<4x96x256xbf16, #tpu.memory_space<vmem>>, vector<1x96x256xbf16>
    %13 = vector.shape_cast %12 : vector<1x96x256xbf16> to vector<96x256xbf16>
    %cst_14 = arith.constant dense<0.000000e+00> : vector<32x256xf32>
    %14 = tpu.matmul %11, %13, %cst_14 {dimension_numbers = #tpu.dot_dimension_numbers<[1], [0], [0], [1], [0, 0, 1, 1], [], []>} : vector<32x96xbf16>, vector<96x256xbf16>, vector<32x256xf32> -> vector<32x256xf32>
    %15 = arith.addf %7, %14 : vector<32x256xf32>
    %c2 = arith.constant 2 : index
    %c0_15 = arith.constant 0 : index
    %c0_16 = arith.constant 0 : index
    %16 = vector.load %arg2[%c2, %c0_15, %c0_16] : memref<4x32x64xbf16, #tpu.memory_space<vmem>>, vector<1x32x64xbf16>
    %17 = vector.shape_cast %16 : vector<1x32x64xbf16> to vector<32x64xbf16>
    %cst_17 = arith.constant dense<0.000000e+00> : vector<32x96xf32>
    %18 = tpu.matmul %17, %0, %cst_17 {dimension_numbers = #tpu.dot_dimension_numbers<[1], [0], [0], [1], [0, 0, 1, 1], [], []>} : vector<32x64xbf16>, vector<64x96xbf16>, vector<32x96xf32> -> vector<32x96xf32>
    %19 = arith.truncf %18 : vector<32x96xf32> to vector<32x96xbf16>
    %c2_18 = arith.constant 2 : index
    %c0_19 = arith.constant 0 : index
    %c0_20 = arith.constant 0 : index
    %20 = vector.load %arg3[%c2_18, %c0_19, %c0_20] : memref<4x96x256xbf16, #tpu.memory_space<vmem>>, vector<1x96x256xbf16>
    %21 = vector.shape_cast %20 : vector<1x96x256xbf16> to vector<96x256xbf16>
    %cst_21 = arith.constant dense<0.000000e+00> : vector<32x256xf32>
    %22 = tpu.matmul %19, %21, %cst_21 {dimension_numbers = #tpu.dot_dimension_numbers<[1], [0], [0], [1], [0, 0, 1, 1], [], []>} : vector<32x96xbf16>, vector<96x256xbf16>, vector<32x256xf32> -> vector<32x256xf32>
    %23 = arith.addf %15, %22 : vector<32x256xf32>
    %c3 = arith.constant 3 : index
    %c0_22 = arith.constant 0 : index
    %c0_23 = arith.constant 0 : index
    %24 = vector.load %arg2[%c3, %c0_22, %c0_23] : memref<4x32x64xbf16, #tpu.memory_space<vmem>>, vector<1x32x64xbf16>
    %25 = vector.shape_cast %24 : vector<1x32x64xbf16> to vector<32x64xbf16>
    %cst_24 = arith.constant dense<0.000000e+00> : vector<32x96xf32>
    %26 = tpu.matmul %25, %0, %cst_24 {dimension_numbers = #tpu.dot_dimension_numbers<[1], [0], [0], [1], [0, 0, 1, 1], [], []>} : vector<32x64xbf16>, vector<64x96xbf16>, vector<32x96xf32> -> vector<32x96xf32>
    %27 = arith.truncf %26 : vector<32x96xf32> to vector<32x96xbf16>
    %c3_25 = arith.constant 3 : index
    %c0_26 = arith.constant 0 : index
    %c0_27 = arith.constant 0 : index
    %28 = vector.load %arg3[%c3_25, %c0_26, %c0_27] : memref<4x96x256xbf16, #tpu.memory_space<vmem>>, vector<1x96x256xbf16>
    %29 = vector.shape_cast %28 : vector<1x96x256xbf16> to vector<96x256xbf16>
    %cst_28 = arith.constant dense<0.000000e+00> : vector<32x256xf32>
    %30 = tpu.matmul %27, %29, %cst_28 {dimension_numbers = #tpu.dot_dimension_numbers<[1], [0], [0], [1], [0, 0, 1, 1], [], []>} : vector<32x96xbf16>, vector<96x256xbf16>, vector<32x256xf32> -> vector<32x256xf32>
    %31 = arith.addf %23, %30 : vector<32x256xf32>
    %cst_29 = arith.constant 0.000000e+00 : f32
    %32 = vector.broadcast %cst_29 : f32 to vector<32x256xf32>
    %33 = arith.cmpf oge, %31, %32 : vector<32x256xf32>
    %cst_30 = arith.constant 2.000000e-01 : f32
    %34 = vector.broadcast %cst_30 : f32 to vector<32x256xf32>
    %35 = arith.mulf %34, %31 : vector<32x256xf32>
    %36 = arith.select %33, %31, %35 : vector<32x256xi1>, vector<32x256xf32>
    %37 = arith.truncf %36 : vector<32x256xf32> to vector<32x256xbf16>
    %c0_31 = arith.constant 0 : index
    %c0_32 = arith.constant 0 : index
    %c0_33 = arith.constant 0 : index
    %38 = vector.load %arg4[%c0_31, %c0_32, %c0_33] : memref<4x16x32xbf16, #tpu.memory_space<vmem>>, vector<1x16x32xbf16>
    %39 = vector.shape_cast %38 : vector<1x16x32xbf16> to vector<16x32xbf16>
    %cst_34 = arith.constant dense<0.000000e+00> : vector<16x256xf32>
    %40 = tpu.matmul %39, %37, %cst_34 {dimension_numbers = #tpu.dot_dimension_numbers<[1], [0], [0], [1], [0, 0, 1, 1], [], []>} : vector<16x32xbf16>, vector<32x256xbf16>, vector<16x256xf32> -> vector<16x256xf32>
    %41 = arith.truncf %40 : vector<16x256xf32> to vector<16x256xbf16>
    %c0_35 = arith.constant 0 : index
    %c0_36 = arith.constant 0 : index
    %c0_37 = arith.constant 0 : index
    %42 = vector.load %arg5[%c0_35, %c0_36, %c0_37] : memref<4x256x256xbf16, #tpu.memory_space<vmem>>, vector<1x256x256xbf16>
    %43 = vector.shape_cast %42 : vector<1x256x256xbf16> to vector<256x256xbf16>
    %cst_38 = arith.constant dense<0.000000e+00> : vector<16x256xf32>
    %44 = tpu.matmul %41, %43, %cst_38 {dimension_numbers = #tpu.dot_dimension_numbers<[1], [0], [0], [1], [0, 0, 1, 1], [], []>} : vector<16x256xbf16>, vector<256x256xbf16>, vector<16x256xf32> -> vector<16x256xf32>
    %c1_39 = arith.constant 1 : index
    %c0_40 = arith.constant 0 : index
    %c0_41 = arith.constant 0 : index
    %45 = vector.load %arg4[%c1_39, %c0_40, %c0_41] : memref<4x16x32xbf16, #tpu.memory_space<vmem>>, vector<1x16x32xbf16>
    %46 = vector.shape_cast %45 : vector<1x16x32xbf16> to vector<16x32xbf16>
    %cst_42 = arith.constant dense<0.000000e+00> : vector<16x256xf32>
    %47 = tpu.matmul %46, %37, %cst_42 {dimension_numbers = #tpu.dot_dimension_numbers<[1], [0], [0], [1], [0, 0, 1, 1], [], []>} : vector<16x32xbf16>, vector<32x256xbf16>, vector<16x256xf32> -> vector<16x256xf32>
    %48 = arith.truncf %47 : vector<16x256xf32> to vector<16x256xbf16>
    %c1_43 = arith.constant 1 : index
    %c0_44 = arith.constant 0 : index
    %c0_45 = arith.constant 0 : index
    %49 = vector.load %arg5[%c1_43, %c0_44, %c0_45] : memref<4x256x256xbf16, #tpu.memory_space<vmem>>, vector<1x256x256xbf16>
    %50 = vector.shape_cast %49 : vector<1x256x256xbf16> to vector<256x256xbf16>
    %cst_46 = arith.constant dense<0.000000e+00> : vector<16x256xf32>
    %51 = tpu.matmul %48, %50, %cst_46 {dimension_numbers = #tpu.dot_dimension_numbers<[1], [0], [0], [1], [0, 0, 1, 1], [], []>} : vector<16x256xbf16>, vector<256x256xbf16>, vector<16x256xf32> -> vector<16x256xf32>
    %52 = arith.addf %44, %51 : vector<16x256xf32>
    %c2_47 = arith.constant 2 : index
    %c0_48 = arith.constant 0 : index
    %c0_49 = arith.constant 0 : index
    %53 = vector.load %arg4[%c2_47, %c0_48, %c0_49] : memref<4x16x32xbf16, #tpu.memory_space<vmem>>, vector<1x16x32xbf16>
    %54 = vector.shape_cast %53 : vector<1x16x32xbf16> to vector<16x32xbf16>
    %cst_50 = arith.constant dense<0.000000e+00> : vector<16x256xf32>
    %55 = tpu.matmul %54, %37, %cst_50 {dimension_numbers = #tpu.dot_dimension_numbers<[1], [0], [0], [1], [0, 0, 1, 1], [], []>} : vector<16x32xbf16>, vector<32x256xbf16>, vector<16x256xf32> -> vector<16x256xf32>
    %56 = arith.truncf %55 : vector<16x256xf32> to vector<16x256xbf16>
    %c2_51 = arith.constant 2 : index
    %c0_52 = arith.constant 0 : index
    %c0_53 = arith.constant 0 : index
    %57 = vector.load %arg5[%c2_51, %c0_52, %c0_53] : memref<4x256x256xbf16, #tpu.memory_space<vmem>>, vector<1x256x256xbf16>
    %58 = vector.shape_cast %57 : vector<1x256x256xbf16> to vector<256x256xbf16>
    %cst_54 = arith.constant dense<0.000000e+00> : vector<16x256xf32>
    %59 = tpu.matmul %56, %58, %cst_54 {dimension_numbers = #tpu.dot_dimension_numbers<[1], [0], [0], [1], [0, 0, 1, 1], [], []>} : vector<16x256xbf16>, vector<256x256xbf16>, vector<16x256xf32> -> vector<16x256xf32>
    %60 = arith.addf %52, %59 : vector<16x256xf32>
    %c3_55 = arith.constant 3 : index
    %c0_56 = arith.constant 0 : index
    %c0_57 = arith.constant 0 : index
    %61 = vector.load %arg4[%c3_55, %c0_56, %c0_57] : memref<4x16x32xbf16, #tpu.memory_space<vmem>>, vector<1x16x32xbf16>
    %62 = vector.shape_cast %61 : vector<1x16x32xbf16> to vector<16x32xbf16>
    %cst_58 = arith.constant dense<0.000000e+00> : vector<16x256xf32>
    %63 = tpu.matmul %62, %37, %cst_58 {dimension_numbers = #tpu.dot_dimension_numbers<[1], [0], [0], [1], [0, 0, 1, 1], [], []>} : vector<16x32xbf16>, vector<32x256xbf16>, vector<16x256xf32> -> vector<16x256xf32>
    %64 = arith.truncf %63 : vector<16x256xf32> to vector<16x256xbf16>
    %c3_59 = arith.constant 3 : index
    %c0_60 = arith.constant 0 : index
    %c0_61 = arith.constant 0 : index
    %65 = vector.load %arg5[%c3_59, %c0_60, %c0_61] : memref<4x256x256xbf16, #tpu.memory_space<vmem>>, vector<1x256x256xbf16>
    %66 = vector.shape_cast %65 : vector<1x256x256xbf16> to vector<256x256xbf16>
    %cst_62 = arith.constant dense<0.000000e+00> : vector<16x256xf32>
    %67 = tpu.matmul %64, %66, %cst_62 {dimension_numbers = #tpu.dot_dimension_numbers<[1], [0], [0], [1], [0, 0, 1, 1], [], []>} : vector<16x256xbf16>, vector<256x256xbf16>, vector<16x256xf32> -> vector<16x256xf32>
    %68 = arith.addf %60, %67 : vector<16x256xf32>
    %c0_63 = arith.constant 0 : index
    %c0_64 = arith.constant 0 : index
    %69 = vector.load %arg6[%c0_63, %c0_64] : memref<256x32xf32, #tpu.memory_space<vmem>>, vector<256x32xf32>
    %c0_65 = arith.constant 0 : index
    %c0_66 = arith.constant 0 : index
    %70 = vector.load %arg7[%c0_65, %c0_66] : memref<32x256xf32, #tpu.memory_space<vmem>>, vector<32x256xf32>
    %cst_67 = arith.constant dense<0.000000e+00> : vector<256xf32>
    %71 = vector.multi_reduction <add>, %68, %cst_67 [0] : vector<16x256xf32> to vector<256xf32>
    %72 = vector.shape_cast %71 : vector<256xf32> to vector<1x256xf32>
    %cst_68 = arith.constant dense<0.000000e+00> : vector<1x32xf32>
    %73 = tpu.matmul %72, %69, %cst_68 {dimension_numbers = #tpu.dot_dimension_numbers<[1], [0], [0], [1], [0, 0, 1, 1], [], []>} : vector<1x256xf32>, vector<256x32xf32>, vector<1x32xf32> -> vector<1x32xf32>
    %cst_69 = arith.constant 7.812500e-03 : f32
    %74 = vector.broadcast %cst_69 : f32 to vector<1x32xf32>
    %75 = arith.mulf %73, %74 : vector<1x32xf32>
    %cst_70 = arith.constant dense<0.000000e+00> : vector<1x256xf32>
    %76 = tpu.matmul %75, %70, %cst_70 {dimension_numbers = #tpu.dot_dimension_numbers<[1], [0], [0], [1], [0, 0, 1, 1], [], []>} : vector<1x32xf32>, vector<32x256xf32>, vector<1x256xf32> -> vector<1x256xf32>
    %77 = vector.broadcast %76 : vector<1x256xf32> to vector<16x256xf32>
    %78 = arith.subf %68, %77 : vector<16x256xf32>
    %79 = arith.mulf %78, %78 : vector<16x256xf32>
    %cst_71 = arith.constant dense<0.000000e+00> : vector<256xf32>
    %80 = vector.multi_reduction <add>, %79, %cst_71 [0] : vector<16x256xf32> to vector<256xf32>
    %81 = vector.shape_cast %80 : vector<256xf32> to vector<1x256xf32>
    %cst_72 = arith.constant dense<0.000000e+00> : vector<1x32xf32>
    %82 = tpu.matmul %81, %69, %cst_72 {dimension_numbers = #tpu.dot_dimension_numbers<[1], [0], [0], [1], [0, 0, 1, 1], [], []>} : vector<1x256xf32>, vector<256x32xf32>, vector<1x32xf32> -> vector<1x32xf32>
    %cst_73 = arith.constant 7.812500e-03 : f32
    %83 = vector.broadcast %cst_73 : f32 to vector<1x32xf32>
    %84 = arith.mulf %82, %83 : vector<1x32xf32>
    %c0_74 = arith.constant 0 : index
    %c0_75 = arith.constant 0 : index
    %85 = vector.load %arg8[%c0_74, %c0_75] : memref<1x32xf32, #tpu.memory_space<vmem>>, vector<1x32xf32>
    %cst_76 = arith.constant 9.99999974E-6 : f32
    %86 = vector.broadcast %cst_76 : f32 to vector<1x32xf32>
    %87 = arith.addf %84, %86 : vector<1x32xf32>
    %88 = math.rsqrt %87 : vector<1x32xf32>
    %89 = arith.mulf %85, %88 : vector<1x32xf32>
    %cst_77 = arith.constant dense<0.000000e+00> : vector<1x256xf32>
    %90 = tpu.matmul %89, %70, %cst_77 {dimension_numbers = #tpu.dot_dimension_numbers<[1], [0], [0], [1], [0, 0, 1, 1], [], []>} : vector<1x32xf32>, vector<32x256xf32>, vector<1x256xf32> -> vector<1x256xf32>
    %91 = vector.broadcast %90 : vector<1x256xf32> to vector<16x256xf32>
    %92 = arith.mulf %78, %91 : vector<16x256xf32>
    %c0_78 = arith.constant 0 : index
    %c0_79 = arith.constant 0 : index
    %93 = vector.load %arg9[%c0_78, %c0_79] : memref<1x32xf32, #tpu.memory_space<vmem>>, vector<1x32xf32>
    %cst_80 = arith.constant dense<0.000000e+00> : vector<1x256xf32>
    %94 = tpu.matmul %93, %70, %cst_80 {dimension_numbers = #tpu.dot_dimension_numbers<[1], [0], [0], [1], [0, 0, 1, 1], [], []>} : vector<1x32xf32>, vector<32x256xf32>, vector<1x256xf32> -> vector<1x256xf32>
    %95 = vector.broadcast %94 : vector<1x256xf32> to vector<16x256xf32>
    %96 = arith.addf %92, %95 : vector<16x256xf32>
    %cst_81 = arith.constant 0.000000e+00 : f32
    %97 = vector.broadcast %cst_81 : f32 to vector<16x256xf32>
    %98 = arith.cmpf oge, %96, %97 : vector<16x256xf32>
    %cst_82 = arith.constant 2.000000e-01 : f32
    %99 = vector.broadcast %cst_82 : f32 to vector<16x256xf32>
    %100 = arith.mulf %99, %96 : vector<16x256xf32>
    %101 = arith.select %98, %96, %100 : vector<16x256xi1>, vector<16x256xf32>
    %102 = arith.truncf %101 : vector<16x256xf32> to vector<16x256xbf16>
    %c0_83 = arith.constant 0 : index
    %c0_84 = arith.constant 0 : index
    %c0_85 = arith.constant 0 : index
    %103 = vector.load %arg10[%c0_83, %c0_84, %c0_85] : memref<4x8x16xbf16, #tpu.memory_space<vmem>>, vector<1x8x16xbf16>
    %104 = vector.shape_cast %103 : vector<1x8x16xbf16> to vector<8x16xbf16>
    %cst_86 = arith.constant dense<0.000000e+00> : vector<8x256xf32>
    %105 = tpu.matmul %104, %102, %cst_86 {dimension_numbers = #tpu.dot_dimension_numbers<[1], [0], [0], [1], [0, 0, 1, 1], [], []>} : vector<8x16xbf16>, vector<16x256xbf16>, vector<8x256xf32> -> vector<8x256xf32>
    %106 = arith.truncf %105 : vector<8x256xf32> to vector<8x256xbf16>
    %c0_87 = arith.constant 0 : index
    %c0_88 = arith.constant 0 : index
    %c0_89 = arith.constant 0 : index
    %107 = vector.load %arg11[%c0_87, %c0_88, %c0_89] : memref<4x256x256xbf16, #tpu.memory_space<vmem>>, vector<1x256x256xbf16>
    %108 = vector.shape_cast %107 : vector<1x256x256xbf16> to vector<256x256xbf16>
    %cst_90 = arith.constant dense<0.000000e+00> : vector<8x256xf32>
    %109 = tpu.matmul %106, %108, %cst_90 {dimension_numbers = #tpu.dot_dimension_numbers<[1], [0], [0], [1], [0, 0, 1, 1], [], []>} : vector<8x256xbf16>, vector<256x256xbf16>, vector<8x256xf32> -> vector<8x256xf32>
    %c1_91 = arith.constant 1 : index
    %c0_92 = arith.constant 0 : index
    %c0_93 = arith.constant 0 : index
    %110 = vector.load %arg10[%c1_91, %c0_92, %c0_93] : memref<4x8x16xbf16, #tpu.memory_space<vmem>>, vector<1x8x16xbf16>
    %111 = vector.shape_cast %110 : vector<1x8x16xbf16> to vector<8x16xbf16>
    %cst_94 = arith.constant dense<0.000000e+00> : vector<8x256xf32>
    %112 = tpu.matmul %111, %102, %cst_94 {dimension_numbers = #tpu.dot_dimension_numbers<[1], [0], [0], [1], [0, 0, 1, 1], [], []>} : vector<8x16xbf16>, vector<16x256xbf16>, vector<8x256xf32> -> vector<8x256xf32>
    %113 = arith.truncf %112 : vector<8x256xf32> to vector<8x256xbf16>
    %c1_95 = arith.constant 1 : index
    %c0_96 = arith.constant 0 : index
    %c0_97 = arith.constant 0 : index
    %114 = vector.load %arg11[%c1_95, %c0_96, %c0_97] : memref<4x256x256xbf16, #tpu.memory_space<vmem>>, vector<1x256x256xbf16>
    %115 = vector.shape_cast %114 : vector<1x256x256xbf16> to vector<256x256xbf16>
    %cst_98 = arith.constant dense<0.000000e+00> : vector<8x256xf32>
    %116 = tpu.matmul %113, %115, %cst_98 {dimension_numbers = #tpu.dot_dimension_numbers<[1], [0], [0], [1], [0, 0, 1, 1], [], []>} : vector<8x256xbf16>, vector<256x256xbf16>, vector<8x256xf32> -> vector<8x256xf32>
    %117 = arith.addf %109, %116 : vector<8x256xf32>
    %c2_99 = arith.constant 2 : index
    %c0_100 = arith.constant 0 : index
    %c0_101 = arith.constant 0 : index
    %118 = vector.load %arg10[%c2_99, %c0_100, %c0_101] : memref<4x8x16xbf16, #tpu.memory_space<vmem>>, vector<1x8x16xbf16>
    %119 = vector.shape_cast %118 : vector<1x8x16xbf16> to vector<8x16xbf16>
    %cst_102 = arith.constant dense<0.000000e+00> : vector<8x256xf32>
    %120 = tpu.matmul %119, %102, %cst_102 {dimension_numbers = #tpu.dot_dimension_numbers<[1], [0], [0], [1], [0, 0, 1, 1], [], []>} : vector<8x16xbf16>, vector<16x256xbf16>, vector<8x256xf32> -> vector<8x256xf32>
    %121 = arith.truncf %120 : vector<8x256xf32> to vector<8x256xbf16>
    %c2_103 = arith.constant 2 : index
    %c0_104 = arith.constant 0 : index
    %c0_105 = arith.constant 0 : index
    %122 = vector.load %arg11[%c2_103, %c0_104, %c0_105] : memref<4x256x256xbf16, #tpu.memory_space<vmem>>, vector<1x256x256xbf16>
    %123 = vector.shape_cast %122 : vector<1x256x256xbf16> to vector<256x256xbf16>
    %cst_106 = arith.constant dense<0.000000e+00> : vector<8x256xf32>
    %124 = tpu.matmul %121, %123, %cst_106 {dimension_numbers = #tpu.dot_dimension_numbers<[1], [0], [0], [1], [0, 0, 1, 1], [], []>} : vector<8x256xbf16>, vector<256x256xbf16>, vector<8x256xf32> -> vector<8x256xf32>
    %125 = arith.addf %117, %124 : vector<8x256xf32>
    %c3_107 = arith.constant 3 : index
    %c0_108 = arith.constant 0 : index
    %c0_109 = arith.constant 0 : index
    %126 = vector.load %arg10[%c3_107, %c0_108, %c0_109] : memref<4x8x16xbf16, #tpu.memory_space<vmem>>, vector<1x8x16xbf16>
    %127 = vector.shape_cast %126 : vector<1x8x16xbf16> to vector<8x16xbf16>
    %cst_110 = arith.constant dense<0.000000e+00> : vector<8x256xf32>
    %128 = tpu.matmul %127, %102, %cst_110 {dimension_numbers = #tpu.dot_dimension_numbers<[1], [0], [0], [1], [0, 0, 1, 1], [], []>} : vector<8x16xbf16>, vector<16x256xbf16>, vector<8x256xf32> -> vector<8x256xf32>
    %129 = arith.truncf %128 : vector<8x256xf32> to vector<8x256xbf16>
    %c3_111 = arith.constant 3 : index
    %c0_112 = arith.constant 0 : index
    %c0_113 = arith.constant 0 : index
    %130 = vector.load %arg11[%c3_111, %c0_112, %c0_113] : memref<4x256x256xbf16, #tpu.memory_space<vmem>>, vector<1x256x256xbf16>
    %131 = vector.shape_cast %130 : vector<1x256x256xbf16> to vector<256x256xbf16>
    %cst_114 = arith.constant dense<0.000000e+00> : vector<8x256xf32>
    %132 = tpu.matmul %129, %131, %cst_114 {dimension_numbers = #tpu.dot_dimension_numbers<[1], [0], [0], [1], [0, 0, 1, 1], [], []>} : vector<8x256xbf16>, vector<256x256xbf16>, vector<8x256xf32> -> vector<8x256xf32>
    %133 = arith.addf %125, %132 : vector<8x256xf32>
    %c0_115 = arith.constant 0 : index
    %c0_116 = arith.constant 0 : index
    %134 = vector.load %arg12[%c0_115, %c0_116] : memref<256x64xf32, #tpu.memory_space<vmem>>, vector<256x64xf32>
    %c0_117 = arith.constant 0 : index
    %c0_118 = arith.constant 0 : index
    %135 = vector.load %arg13[%c0_117, %c0_118] : memref<64x256xf32, #tpu.memory_space<vmem>>, vector<64x256xf32>
    %cst_119 = arith.constant dense<0.000000e+00> : vector<256xf32>
    %136 = vector.multi_reduction <add>, %133, %cst_119 [0] : vector<8x256xf32> to vector<256xf32>
    %137 = vector.shape_cast %136 : vector<256xf32> to vector<1x256xf32>
    %cst_120 = arith.constant dense<0.000000e+00> : vector<1x64xf32>
    %138 = tpu.matmul %137, %134, %cst_120 {dimension_numbers = #tpu.dot_dimension_numbers<[1], [0], [0], [1], [0, 0, 1, 1], [], []>} : vector<1x256xf32>, vector<256x64xf32>, vector<1x64xf32> -> vector<1x64xf32>
    %cst_121 = arith.constant 3.125000e-02 : f32
    %139 = vector.broadcast %cst_121 : f32 to vector<1x64xf32>
    %140 = arith.mulf %138, %139 : vector<1x64xf32>
    %cst_122 = arith.constant dense<0.000000e+00> : vector<1x256xf32>
    %141 = tpu.matmul %140, %135, %cst_122 {dimension_numbers = #tpu.dot_dimension_numbers<[1], [0], [0], [1], [0, 0, 1, 1], [], []>} : vector<1x64xf32>, vector<64x256xf32>, vector<1x256xf32> -> vector<1x256xf32>
    %142 = vector.broadcast %141 : vector<1x256xf32> to vector<8x256xf32>
    %143 = arith.subf %133, %142 : vector<8x256xf32>
    %144 = arith.mulf %143, %143 : vector<8x256xf32>
    %cst_123 = arith.constant dense<0.000000e+00> : vector<256xf32>
    %145 = vector.multi_reduction <add>, %144, %cst_123 [0] : vector<8x256xf32> to vector<256xf32>
    %146 = vector.shape_cast %145 : vector<256xf32> to vector<1x256xf32>
    %cst_124 = arith.constant dense<0.000000e+00> : vector<1x64xf32>
    %147 = tpu.matmul %146, %134, %cst_124 {dimension_numbers = #tpu.dot_dimension_numbers<[1], [0], [0], [1], [0, 0, 1, 1], [], []>} : vector<1x256xf32>, vector<256x64xf32>, vector<1x64xf32> -> vector<1x64xf32>
    %cst_125 = arith.constant 3.125000e-02 : f32
    %148 = vector.broadcast %cst_125 : f32 to vector<1x64xf32>
    %149 = arith.mulf %147, %148 : vector<1x64xf32>
    %c0_126 = arith.constant 0 : index
    %c0_127 = arith.constant 0 : index
    %150 = vector.load %arg14[%c0_126, %c0_127] : memref<1x64xf32, #tpu.memory_space<vmem>>, vector<1x64xf32>
    %cst_128 = arith.constant 9.99999974E-6 : f32
    %151 = vector.broadcast %cst_128 : f32 to vector<1x64xf32>
    %152 = arith.addf %149, %151 : vector<1x64xf32>
    %153 = math.rsqrt %152 : vector<1x64xf32>
    %154 = arith.mulf %150, %153 : vector<1x64xf32>
    %cst_129 = arith.constant dense<0.000000e+00> : vector<1x256xf32>
    %155 = tpu.matmul %154, %135, %cst_129 {dimension_numbers = #tpu.dot_dimension_numbers<[1], [0], [0], [1], [0, 0, 1, 1], [], []>} : vector<1x64xf32>, vector<64x256xf32>, vector<1x256xf32> -> vector<1x256xf32>
    %156 = vector.broadcast %155 : vector<1x256xf32> to vector<8x256xf32>
    %157 = arith.mulf %143, %156 : vector<8x256xf32>
    %c0_130 = arith.constant 0 : index
    %c0_131 = arith.constant 0 : index
    %158 = vector.load %arg15[%c0_130, %c0_131] : memref<1x64xf32, #tpu.memory_space<vmem>>, vector<1x64xf32>
    %cst_132 = arith.constant dense<0.000000e+00> : vector<1x256xf32>
    %159 = tpu.matmul %158, %135, %cst_132 {dimension_numbers = #tpu.dot_dimension_numbers<[1], [0], [0], [1], [0, 0, 1, 1], [], []>} : vector<1x64xf32>, vector<64x256xf32>, vector<1x256xf32> -> vector<1x256xf32>
    %160 = vector.broadcast %159 : vector<1x256xf32> to vector<8x256xf32>
    %161 = arith.addf %157, %160 : vector<8x256xf32>
    %cst_133 = arith.constant 0.000000e+00 : f32
    %162 = vector.broadcast %cst_133 : f32 to vector<8x256xf32>
    %163 = arith.cmpf oge, %161, %162 : vector<8x256xf32>
    %cst_134 = arith.constant 2.000000e-01 : f32
    %164 = vector.broadcast %cst_134 : f32 to vector<8x256xf32>
    %165 = arith.mulf %164, %161 : vector<8x256xf32>
    %166 = arith.select %163, %161, %165 : vector<8x256xi1>, vector<8x256xf32>
    %167 = arith.truncf %166 : vector<8x256xf32> to vector<8x256xbf16>
    %c0_135 = arith.constant 0 : index
    %c0_136 = arith.constant 0 : index
    %c0_137 = arith.constant 0 : index
    %168 = vector.load %arg16[%c0_135, %c0_136, %c0_137] : memref<4x4x8xbf16, #tpu.memory_space<vmem>>, vector<1x4x8xbf16>
    %169 = vector.shape_cast %168 : vector<1x4x8xbf16> to vector<4x8xbf16>
    %cst_138 = arith.constant dense<0.000000e+00> : vector<4x256xf32>
    %170 = tpu.matmul %169, %167, %cst_138 {dimension_numbers = #tpu.dot_dimension_numbers<[1], [0], [0], [1], [0, 0, 1, 1], [], []>} : vector<4x8xbf16>, vector<8x256xbf16>, vector<4x256xf32> -> vector<4x256xf32>
    %171 = arith.truncf %170 : vector<4x256xf32> to vector<4x256xbf16>
    %c0_139 = arith.constant 0 : index
    %c0_140 = arith.constant 0 : index
    %c0_141 = arith.constant 0 : index
    %172 = vector.load %arg17[%c0_139, %c0_140, %c0_141] : memref<4x256x256xbf16, #tpu.memory_space<vmem>>, vector<1x256x256xbf16>
    %173 = vector.shape_cast %172 : vector<1x256x256xbf16> to vector<256x256xbf16>
    %cst_142 = arith.constant dense<0.000000e+00> : vector<4x256xf32>
    %174 = tpu.matmul %171, %173, %cst_142 {dimension_numbers = #tpu.dot_dimension_numbers<[1], [0], [0], [1], [0, 0, 1, 1], [], []>} : vector<4x256xbf16>, vector<256x256xbf16>, vector<4x256xf32> -> vector<4x256xf32>
    %c1_143 = arith.constant 1 : index
    %c0_144 = arith.constant 0 : index
    %c0_145 = arith.constant 0 : index
    %175 = vector.load %arg16[%c1_143, %c0_144, %c0_145] : memref<4x4x8xbf16, #tpu.memory_space<vmem>>, vector<1x4x8xbf16>
    %176 = vector.shape_cast %175 : vector<1x4x8xbf16> to vector<4x8xbf16>
    %cst_146 = arith.constant dense<0.000000e+00> : vector<4x256xf32>
    %177 = tpu.matmul %176, %167, %cst_146 {dimension_numbers = #tpu.dot_dimension_numbers<[1], [0], [0], [1], [0, 0, 1, 1], [], []>} : vector<4x8xbf16>, vector<8x256xbf16>, vector<4x256xf32> -> vector<4x256xf32>
    %178 = arith.truncf %177 : vector<4x256xf32> to vector<4x256xbf16>
    %c1_147 = arith.constant 1 : index
    %c0_148 = arith.constant 0 : index
    %c0_149 = arith.constant 0 : index
    %179 = vector.load %arg17[%c1_147, %c0_148, %c0_149] : memref<4x256x256xbf16, #tpu.memory_space<vmem>>, vector<1x256x256xbf16>
    %180 = vector.shape_cast %179 : vector<1x256x256xbf16> to vector<256x256xbf16>
    %cst_150 = arith.constant dense<0.000000e+00> : vector<4x256xf32>
    %181 = tpu.matmul %178, %180, %cst_150 {dimension_numbers = #tpu.dot_dimension_numbers<[1], [0], [0], [1], [0, 0, 1, 1], [], []>} : vector<4x256xbf16>, vector<256x256xbf16>, vector<4x256xf32> -> vector<4x256xf32>
    %182 = arith.addf %174, %181 : vector<4x256xf32>
    %c2_151 = arith.constant 2 : index
    %c0_152 = arith.constant 0 : index
    %c0_153 = arith.constant 0 : index
    %183 = vector.load %arg16[%c2_151, %c0_152, %c0_153] : memref<4x4x8xbf16, #tpu.memory_space<vmem>>, vector<1x4x8xbf16>
    %184 = vector.shape_cast %183 : vector<1x4x8xbf16> to vector<4x8xbf16>
    %cst_154 = arith.constant dense<0.000000e+00> : vector<4x256xf32>
    %185 = tpu.matmul %184, %167, %cst_154 {dimension_numbers = #tpu.dot_dimension_numbers<[1], [0], [0], [1], [0, 0, 1, 1], [], []>} : vector<4x8xbf16>, vector<8x256xbf16>, vector<4x256xf32> -> vector<4x256xf32>
    %186 = arith.truncf %185 : vector<4x256xf32> to vector<4x256xbf16>
    %c2_155 = arith.constant 2 : index
    %c0_156 = arith.constant 0 : index
    %c0_157 = arith.constant 0 : index
    %187 = vector.load %arg17[%c2_155, %c0_156, %c0_157] : memref<4x256x256xbf16, #tpu.memory_space<vmem>>, vector<1x256x256xbf16>
    %188 = vector.shape_cast %187 : vector<1x256x256xbf16> to vector<256x256xbf16>
    %cst_158 = arith.constant dense<0.000000e+00> : vector<4x256xf32>
    %189 = tpu.matmul %186, %188, %cst_158 {dimension_numbers = #tpu.dot_dimension_numbers<[1], [0], [0], [1], [0, 0, 1, 1], [], []>} : vector<4x256xbf16>, vector<256x256xbf16>, vector<4x256xf32> -> vector<4x256xf32>
    %190 = arith.addf %182, %189 : vector<4x256xf32>
    %c3_159 = arith.constant 3 : index
    %c0_160 = arith.constant 0 : index
    %c0_161 = arith.constant 0 : index
    %191 = vector.load %arg16[%c3_159, %c0_160, %c0_161] : memref<4x4x8xbf16, #tpu.memory_space<vmem>>, vector<1x4x8xbf16>
    %192 = vector.shape_cast %191 : vector<1x4x8xbf16> to vector<4x8xbf16>
    %cst_162 = arith.constant dense<0.000000e+00> : vector<4x256xf32>
    %193 = tpu.matmul %192, %167, %cst_162 {dimension_numbers = #tpu.dot_dimension_numbers<[1], [0], [0], [1], [0, 0, 1, 1], [], []>} : vector<4x8xbf16>, vector<8x256xbf16>, vector<4x256xf32> -> vector<4x256xf32>
    %194 = arith.truncf %193 : vector<4x256xf32> to vector<4x256xbf16>
    %c3_163 = arith.constant 3 : index
    %c0_164 = arith.constant 0 : index
    %c0_165 = arith.constant 0 : index
    %195 = vector.load %arg17[%c3_163, %c0_164, %c0_165] : memref<4x256x256xbf16, #tpu.memory_space<vmem>>, vector<1x256x256xbf16>
    %196 = vector.shape_cast %195 : vector<1x256x256xbf16> to vector<256x256xbf16>
    %cst_166 = arith.constant dense<0.000000e+00> : vector<4x256xf32>
    %197 = tpu.matmul %194, %196, %cst_166 {dimension_numbers = #tpu.dot_dimension_numbers<[1], [0], [0], [1], [0, 0, 1, 1], [], []>} : vector<4x256xbf16>, vector<256x256xbf16>, vector<4x256xf32> -> vector<4x256xf32>
    %198 = arith.addf %190, %197 : vector<4x256xf32>
    %c0_167 = arith.constant 0 : index
    %c0_168 = arith.constant 0 : index
    %199 = vector.load %arg18[%c0_167, %c0_168] : memref<256x128xf32, #tpu.memory_space<vmem>>, vector<256x128xf32>
    %c0_169 = arith.constant 0 : index
    %c0_170 = arith.constant 0 : index
    %200 = vector.load %arg19[%c0_169, %c0_170] : memref<128x256xf32, #tpu.memory_space<vmem>>, vector<128x256xf32>
    %cst_171 = arith.constant dense<0.000000e+00> : vector<256xf32>
    %201 = vector.multi_reduction <add>, %198, %cst_171 [0] : vector<4x256xf32> to vector<256xf32>
    %202 = vector.shape_cast %201 : vector<256xf32> to vector<1x256xf32>
    %cst_172 = arith.constant dense<0.000000e+00> : vector<1x128xf32>
    %203 = tpu.matmul %202, %199, %cst_172 {dimension_numbers = #tpu.dot_dimension_numbers<[1], [0], [0], [1], [0, 0, 1, 1], [], []>} : vector<1x256xf32>, vector<256x128xf32>, vector<1x128xf32> -> vector<1x128xf32>
    %cst_173 = arith.constant 1.250000e-01 : f32
    %204 = vector.broadcast %cst_173 : f32 to vector<1x128xf32>
    %205 = arith.mulf %203, %204 : vector<1x128xf32>
    %cst_174 = arith.constant dense<0.000000e+00> : vector<1x256xf32>
    %206 = tpu.matmul %205, %200, %cst_174 {dimension_numbers = #tpu.dot_dimension_numbers<[1], [0], [0], [1], [0, 0, 1, 1], [], []>} : vector<1x128xf32>, vector<128x256xf32>, vector<1x256xf32> -> vector<1x256xf32>
    %207 = vector.broadcast %206 : vector<1x256xf32> to vector<4x256xf32>
    %208 = arith.subf %198, %207 : vector<4x256xf32>
    %209 = arith.mulf %208, %208 : vector<4x256xf32>
    %cst_175 = arith.constant dense<0.000000e+00> : vector<256xf32>
    %210 = vector.multi_reduction <add>, %209, %cst_175 [0] : vector<4x256xf32> to vector<256xf32>
    %211 = vector.shape_cast %210 : vector<256xf32> to vector<1x256xf32>
    %cst_176 = arith.constant dense<0.000000e+00> : vector<1x128xf32>
    %212 = tpu.matmul %211, %199, %cst_176 {dimension_numbers = #tpu.dot_dimension_numbers<[1], [0], [0], [1], [0, 0, 1, 1], [], []>} : vector<1x256xf32>, vector<256x128xf32>, vector<1x128xf32> -> vector<1x128xf32>
    %cst_177 = arith.constant 1.250000e-01 : f32
    %213 = vector.broadcast %cst_177 : f32 to vector<1x128xf32>
    %214 = arith.mulf %212, %213 : vector<1x128xf32>
    %c0_178 = arith.constant 0 : index
    %c0_179 = arith.constant 0 : index
    %215 = vector.load %arg20[%c0_178, %c0_179] : memref<1x128xf32, #tpu.memory_space<vmem>>, vector<1x128xf32>
    %cst_180 = arith.constant 9.99999974E-6 : f32
    %216 = vector.broadcast %cst_180 : f32 to vector<1x128xf32>
    %217 = arith.addf %214, %216 : vector<1x128xf32>
    %218 = math.rsqrt %217 : vector<1x128xf32>
    %219 = arith.mulf %215, %218 : vector<1x128xf32>
    %cst_181 = arith.constant dense<0.000000e+00> : vector<1x256xf32>
    %220 = tpu.matmul %219, %200, %cst_181 {dimension_numbers = #tpu.dot_dimension_numbers<[1], [0], [0], [1], [0, 0, 1, 1], [], []>} : vector<1x128xf32>, vector<128x256xf32>, vector<1x256xf32> -> vector<1x256xf32>
    %221 = vector.broadcast %220 : vector<1x256xf32> to vector<4x256xf32>
    %222 = arith.mulf %208, %221 : vector<4x256xf32>
    %c0_182 = arith.constant 0 : index
    %c0_183 = arith.constant 0 : index
    %223 = vector.load %arg21[%c0_182, %c0_183] : memref<1x128xf32, #tpu.memory_space<vmem>>, vector<1x128xf32>
    %cst_184 = arith.constant dense<0.000000e+00> : vector<1x256xf32>
    %224 = tpu.matmul %223, %200, %cst_184 {dimension_numbers = #tpu.dot_dimension_numbers<[1], [0], [0], [1], [0, 0, 1, 1], [], []>} : vector<1x128xf32>, vector<128x256xf32>, vector<1x256xf32> -> vector<1x256xf32>
    %225 = vector.broadcast %224 : vector<1x256xf32> to vector<4x256xf32>
    %226 = arith.addf %222, %225 : vector<4x256xf32>
    %cst_185 = arith.constant 0.000000e+00 : f32
    %227 = vector.broadcast %cst_185 : f32 to vector<4x256xf32>
    %228 = arith.cmpf oge, %226, %227 : vector<4x256xf32>
    %cst_186 = arith.constant 2.000000e-01 : f32
    %229 = vector.broadcast %cst_186 : f32 to vector<4x256xf32>
    %230 = arith.mulf %229, %226 : vector<4x256xf32>
    %231 = arith.select %228, %226, %230 : vector<4x256xi1>, vector<4x256xf32>
    %232 = arith.truncf %231 : vector<4x256xf32> to vector<4x256xbf16>
    %233 = arith.extf %232 : vector<4x256xbf16> to vector<4x256xf32>
    %c0_187 = arith.constant 0 : index
    %c0_188 = arith.constant 0 : index
    %234 = vector.load %arg22[%c0_187, %c0_188] : memref<4x256xf32, #tpu.memory_space<vmem>>, vector<4x256xf32>
    %235 = arith.mulf %233, %234 : vector<4x256xf32>
    %c0_189 = arith.constant 0 : index
    %c0_190 = arith.constant 0 : index
    %236 = vector.load %arg23[%c0_189, %c0_190] : memref<2x4xf32, #tpu.memory_space<vmem>>, vector<2x4xf32>
    %cst_191 = arith.constant dense<0.000000e+00> : vector<2x256xf32>
    %237 = tpu.matmul %236, %235, %cst_191 {dimension_numbers = #tpu.dot_dimension_numbers<[1], [0], [0], [1], [0, 0, 1, 1], [], []>} : vector<2x4xf32>, vector<4x256xf32>, vector<2x256xf32> -> vector<2x256xf32>
    %cst_192 = arith.constant dense<0.000000e+00> : vector<2xf32>
    %238 = vector.multi_reduction <add>, %237, %cst_192 [1] : vector<2x256xf32> to vector<2xf32>
    %239 = vector.shape_cast %238 : vector<2xf32> to vector<2x1xf32>
    %240 = arith.negf %239 : vector<2x1xf32>
    %241 = math.exp %240 : vector<2x1xf32>
    %cst_193 = arith.constant 1.000000e+00 : f32
    %242 = vector.broadcast %cst_193 : f32 to vector<2x1xf32>
    %243 = arith.addf %242, %241 : vector<2x1xf32>
    %244 = arith.divf %242, %243 : vector<2x1xf32>
    %c0_194 = arith.constant 0 : index
    %c0_195 = arith.constant 0 : index
    %245 = vector.load %arg24[%c0_194, %c0_195] : memref<2x1xf32, #tpu.memory_space<vmem>>, vector<2x1xf32>
    tpu.vector_store %arg24[%c0_194, %c0_195], %244 {strides = array<i32>} : memref<2x1xf32, #tpu.memory_space<vmem>>, vector<2x1xf32>,
    return
  }
  func.func @transform_0(%arg0: i32) -> (i32, i32) {
    %c0_i32 = arith.constant 0 : i32
    %c0_i32_0 = arith.constant 0 : i32
    %c0_i32_1 = arith.constant 0 : i32
    return %c0_i32, %c0_i32_0 : i32, i32
  }
  func.func @transform_1(%arg0: i32) -> (i32, i32, i32) {
    %c0_i32 = arith.constant 0 : i32
    %c0_i32_0 = arith.constant 0 : i32
    %c0_i32_1 = arith.constant 0 : i32
    %c0_i32_2 = arith.constant 0 : i32
    return %c0_i32, %c0_i32_0, %c0_i32_1 : i32, i32, i32
  }
  func.func @transform_2(%arg0: i32) -> (i32, i32, i32) {
    %c0_i32 = arith.constant 0 : i32
    %c0_i32_0 = arith.constant 0 : i32
    %c0_i32_1 = arith.constant 0 : i32
    %c0_i32_2 = arith.constant 0 : i32
    return %c0_i32, %c0_i32_0, %c0_i32_1 : i32, i32, i32
  }
  func.func @transform_3(%arg0: i32) -> (i32, i32, i32) {
    %c0_i32 = arith.constant 0 : i32
    %c0_i32_0 = arith.constant 0 : i32
    %c0_i32_1 = arith.constant 0 : i32
    %c0_i32_2 = arith.constant 0 : i32
    return %c0_i32, %c0_i32_0, %c0_i32_1 : i32, i32, i32
  }
  func.func @transform_4(%arg0: i32) -> (i32, i32, i32) {
    %c0_i32 = arith.constant 0 : i32
    %c0_i32_0 = arith.constant 0 : i32
    %c0_i32_1 = arith.constant 0 : i32
    %c0_i32_2 = arith.constant 0 : i32
    return %c0_i32, %c0_i32_0, %c0_i32_1 : i32, i32, i32
  }
  func.func @transform_5(%arg0: i32) -> (i32, i32) {
    %c0_i32 = arith.constant 0 : i32
    %c0_i32_0 = arith.constant 0 : i32
    %c0_i32_1 = arith.constant 0 : i32
    return %c0_i32, %c0_i32_0 : i32, i32
  }
  func.func @transform_6(%arg0: i32) -> (i32, i32) {
    %c0_i32 = arith.constant 0 : i32
    %c0_i32_0 = arith.constant 0 : i32
    %c0_i32_1 = arith.constant 0 : i32
    return %c0_i32, %c0_i32_0 : i32, i32
  }
  func.func @transform_7(%arg0: i32) -> (i32, i32) {
    %c0_i32 = arith.constant 0 : i32
    %c0_i32_0 = arith.constant 0 : i32
    %c0_i32_1 = arith.constant 0 : i32
    return %c0_i32, %c0_i32_0 : i32, i32
  }
  func.func @transform_8(%arg0: i32) -> (i32, i32) {
    %c0_i32 = arith.constant 0 : i32
    %c0_i32_0 = arith.constant 0 : i32
    %c0_i32_1 = arith.constant 0 : i32
    return %c0_i32, %c0_i32_0 : i32, i32
  }
  func.func @transform_9(%arg0: i32) -> (i32, i32, i32) {
    %c0_i32 = arith.constant 0 : i32
    %c0_i32_0 = arith.constant 0 : i32
    %c0_i32_1 = arith.constant 0 : i32
    %c0_i32_2 = arith.constant 0 : i32
    return %c0_i32, %c0_i32_0, %c0_i32_1 : i32, i32, i32
  }
  func.func @transform_10(%arg0: i32) -> (i32, i32, i32) {
    %c0_i32 = arith.constant 0 : i32
    %c0_i32_0 = arith.constant 0 : i32
    %c0_i32_1 = arith.constant 0 : i32
    %c0_i32_2 = arith.constant 0 : i32
    return %c0_i32, %c0_i32_0, %c0_i32_1 : i32, i32, i32
  }
  func.func @transform_11(%arg0: i32) -> (i32, i32) {
    %c0_i32 = arith.constant 0 : i32
    %c0_i32_0 = arith.constant 0 : i32
    %c0_i32_1 = arith.constant 0 : i32
    return %c0_i32, %c0_i32_0 : i32, i32
  }
  func.func @transform_12(%arg0: i32) -> (i32, i32) {
    %c0_i32 = arith.constant 0 : i32
    %c0_i32_0 = arith.constant 0 : i32
    %c0_i32_1 = arith.constant 0 : i32
    return %c0_i32, %c0_i32_0 : i32, i32
  }
  func.func @transform_13(%arg0: i32) -> (i32, i32) {
    %c0_i32 = arith.constant 0 : i32
    %c0_i32_0 = arith.constant 0 : i32
    %c0_i32_1 = arith.constant 0 : i32
    return %c0_i32, %c0_i32_0 : i32, i32
  }
  func.func @transform_14(%arg0: i32) -> (i32, i32) {
    %c0_i32 = arith.constant 0 : i32
    %c0_i32_0 = arith.constant 0 : i32
    %c0_i32_1 = arith.constant 0 : i32
    return %c0_i32, %c0_i32_0 : i32, i32
  }
  func.func @transform_15(%arg0: i32) -> (i32, i32, i32) {
    %c0_i32 = arith.constant 0 : i32
    %c0_i32_0 = arith.constant 0 : i32
    %c0_i32_1 = arith.constant 0 : i32
    %c0_i32_2 = arith.constant 0 : i32
    return %c0_i32, %c0_i32_0, %c0_i32_1 : i32, i32, i32
  }
  func.func @transform_16(%arg0: i32) -> (i32, i32, i32) {
    %c0_i32 = arith.constant 0 : i32
    %c0_i32_0 = arith.constant 0 : i32
    %c0_i32_1 = arith.constant 0 : i32
    %c0_i32_2 = arith.constant 0 : i32
    return %c0_i32, %c0_i32_0, %c0_i32_1 : i32, i32, i32
  }
  func.func @transform_17(%arg0: i32) -> (i32, i32) {
    %c0_i32 = arith.constant 0 : i32
    %c0_i32_0 = arith.constant 0 : i32
    %c0_i32_1 = arith.constant 0 : i32
    return %c0_i32, %c0_i32_0 : i32, i32
  }
  func.func @transform_18(%arg0: i32) -> (i32, i32) {
    %c0_i32 = arith.constant 0 : i32
    %c0_i32_0 = arith.constant 0 : i32
    %c0_i32_1 = arith.constant 0 : i32
    return %c0_i32, %c0_i32_0 : i32, i32
  }
  func.func @transform_19(%arg0: i32) -> (i32, i32) {
    %c0_i32 = arith.constant 0 : i32
    %c0_i32_0 = arith.constant 0 : i32
    %c0_i32_1 = arith.constant 0 : i32
    return %c0_i32, %c0_i32_0 : i32, i32
  }
  func.func @transform_20(%arg0: i32) -> (i32, i32) {
    %c0_i32 = arith.constant 0 : i32
    %c0_i32_0 = arith.constant 0 : i32
    %c0_i32_1 = arith.constant 0 : i32
    return %c0_i32, %c0_i32_0 : i32, i32
  }
  func.func @transform_21(%arg0: i32) -> (i32, i32) {
    %c0_i32 = arith.constant 0 : i32
    %c0_i32_0 = arith.constant 0 : i32
    %c0_i32_1 = arith.constant 0 : i32
    return %c0_i32, %c0_i32_0 : i32, i32
  }
  func.func @transform_22(%arg0: i32) -> (i32, i32) {
    %c0_i32 = arith.constant 0 : i32
    %c0_i32_0 = arith.constant 0 : i32
    %c0_i32_1 = arith.constant 0 : i32
    return %c0_i32, %c0_i32_0 : i32, i32
  }
  func.func @transform_23(%arg0: i32) -> (i32, i32) {
    %c0_i32 = arith.constant 0 : i32
    %c0_i32_0 = arith.constant 0 : i32
    %c0_i32_1 = arith.constant 0 : i32
    return %c0_i32, %c0_i32_0 : i32, i32
  }
}

</mosaic_0001>

<bundles_post_ra>
// kernel: discriminator_forward.1
= control target key start
LH: loop header
LB: loop body
LE: loop exit
PB: predicated region body
PF: predicated region fallthrough
CT: control target
= control target key end

     0   :  { %s10005_s0 = inlined_call_operand.vmem [shape: bf16[64,96], index: 0, kind: input, shape index: {}]   ;;  %s10006_s1 = inlined_call_operand.hbm [shape: bf16[4,32,64], index: 1, kind: input, shape index: {}]   ;;  %s10007_s2 = inlined_call_operand.vmem [shape: bf16[4,96,256], index: 2, kind: input, shape index: {}]   ;;  %s10008_s3 = inlined_call_operand.vmem [shape: bf16[4,16,32], index: 3, kind: input, shape index: {}]   ;;  %s10009_s4 = inlined_call_operand.vmem [shape: bf16[4,256,256], index: 4, kind: input, shape index: {}]   ;;  %s10010_s5 = inlined_call_operand.vmem [shape: f32[256,32], index: 5, kind: input, shape index: {}]   ;;  %s10011_s6 = inlined_call_operand.hbm [shape: f32[32,256], index: 6, kind: input, shape index: {}]   ;;  %s10012_s7 = inlined_call_operand.vmem [shape: f32[1,32], index: 7, kind: input, shape index: {}]   ;;  %s10013_s8 = inlined_call_operand.vmem [shape: f32[1,32], index: 8, kind: input, shape index: {}]   ;;  %s10014_s9 = inlined_call_operand.vmem [shape: bf16[4,8,16], index: 9, kind: input, shape index: {}]   ;;  %s10015_s10 = inlined_call_operand.hbm [shape: bf16[4,256,256], index: 10, kind: input, shape index: {}]   ;;  %s10016_s11 = inlined_call_operand.vmem [shape: f32[256,64], index: 11, kind: input, shape index: {}]   ;;  %s10017_s12 = inlined_call_operand.hbm [shape: f32[64,256], index: 12, kind: input, shape index: {}]   ;;  %s10018_s13 = inlined_call_operand.hbm [shape: f32[1,64], index: 13, kind: input, shape index: {}]   ;;  %s10019_s14 = inlined_call_operand.hbm [shape: f32[1,64], index: 14, kind: input, shape index: {}]   ;;  %s10020_s15 = inlined_call_operand.vmem [shape: bf16[4,4,8], index: 15, kind: input, shape index: {}]   ;;  %s10021_s16 = inlined_call_operand.hbm [shape: bf16[4,256,256], index: 16, kind: input, shape index: {}]   ;;  %s10022_s17 = inlined_call_operand.hbm [shape: f32[256,128], index: 17, kind: input, shape index: {}]   ;;  %s10023_s18 = inlined_call_operand.hbm [shape: f32[128,256], index: 18, kind: input, shape index: {}]   ;;  %s10024_s19 = inlined_call_operand.hbm [shape: f32[1,128], index: 19, kind: input, shape index: {}]   ;;  %s10025_s20 = inlined_call_operand.hbm [shape: f32[1,128], index: 20, kind: input, shape index: {}]   ;;  %s10026_s21 = inlined_call_operand.vmem [shape: f32[4,256], index: 21, kind: input, shape index: {}]   ;;  %s10027_s22 = inlined_call_operand.vmem [shape: f32[2,4], index: 22, kind: input, shape index: {}]   ;;  %s10028_s23 = inlined_call_operand.vmem [shape: f32[2,1], index: 23, kind: output, shape index: {}]  }
   0x1   :  { %10036 = sst [smem:[#allocation25_spill]] %s10005_s0 }
   0x2   :  { %10037 = sst [smem:[#allocation26_spill]] %s10006_s1 }
   0x3   :  { %10038 = sst [smem:[#allocation27_spill]] %s10007_s2 }
   0x4   :  { %10039 = sst [smem:[#allocation28_spill]] %s10008_s3 }
   0x5   :  { %10040 = sst [smem:[#allocation29_spill]] %s10009_s4 }
   0x6   :  { %10041 = sst [smem:[#allocation30_spill]] %s10010_s5 }
   0x7   :  { %10042 = sst [smem:[#allocation31_spill]] %s10011_s6 }
   0x8   :  { %10043 = sst [smem:[#allocation32_spill]] %s10012_s7 }
   0x9   :  { %10044 = sst [smem:[#allocation33_spill]] %s10027_s22 }
   0xa   :  { %10045 = sst [smem:[#allocation34_spill]] %s10028_s23 }
   0xb   :  { %28 = vsyncpa [#allocation3], 0 }
   0xc   :  { %29 = vsyncpa [#allocation5], 0 }
   0xd   :  { %30 = vsyncpa [#allocation8], 0 }
   0xe   :  { %31 = vsyncpa [#allocation11], 0 }
   0xf   :  { %32 = vsyncpa [#allocation14], 0 }
  0x10   :  { %33 = vsyncpa [#allocation17], 0  ;;  %s8414_s4 = smov [#allocation4]   ;;  %s10046_s5 = sld [smem:[#allocation31_spill]] }
  0x11   :  { %s61_s30 = sshll.u32 %s8414_s4, 4  ;;  %s62_s30 = int_to_ptr.vmem [resolvable:$true] %s61_s30 }
  0x16   :  { %s8160_s1 = scalar_lea.hbm %s10046_s5, 1024 }
  0x17   :  { %p8161_p0 = scmp.ne.s32.totalorder %s10046_s5, %s8160_s1  ;;  %p8164_p1 = scmp.lt.u32.totalorder %s8160_s1, %s10046_s5 }
  0x19   :  { %p8166_p2 = pnand %p8164_p1, %p8161_p0 }
  0x1b   :  { %8169 = shalt.err (!%p8166_p2)
}
  0x1c   :  { %s8170_s7 = scalar_lea.vmem %s62_s30, 1024  ;;  %p8175_p4 = scmp.lt.s32.totalorder %s62_s30, %s62_s30 }
  0x1d   :  { %p8171_p3 = scmp.ne.s32.totalorder %s62_s30, %s8170_s7  ;;  %p8176_p5 = scmp.lt.s32.totalorder %s8170_s7, %s8170_s7 }
  0x1f   :  { %p8177_p6 = por %p8176_p5, %p8175_p4 }
  0x21   :  { %p8178_p7 = pnand %p8177_p6, %p8171_p3 }
  0x23   :  { %8181 = shalt.err (!%p8178_p7)
}
  0x24   :  { %s8415_s28 = smov 256   ;;  %s8416_s29 = smov 16  }
  0x25   :  { %67 = dma.hbm_to_vmem [thread:$0]  %s10046_s5, 1024, %s62_s30, [#allocation5], %s8415_s28, %s8415_s28, %s8416_s29  }
  0x26   :  { %s8417_s4 = smov [#allocation7]   ;;  %s8418_s25 = smov [#allocation10]  }
  0x27   :  { %s93_s24 = sshll.u32 %s8417_s4, 4  ;;  %s116_s1 = sshll.u32 %s8418_s25, 4  ;;  %s94_s24 = int_to_ptr.vmem [resolvable:$true] %s93_s24  ;;  %s117_s1 = int_to_ptr.vmem [resolvable:$true] %s116_s1 }
  0x28   :  { %s8182_s6 = scalar_lea.hbm %s10017_s12, 2048 }
  0x29   :  { %p8183_p8 = scmp.ne.s32.totalorder %s10017_s12, %s8182_s6  ;;  %p8186_p9 = scmp.lt.u32.totalorder %s8182_s6, %s10017_s12 }
  0x2b   :  { %p8188_p10 = pnand %p8186_p9, %p8183_p8 }
  0x2d   :  { %8191 = shalt.err (!%p8188_p10)
}
  0x2e   :  { %s8192_s30 = scalar_lea.vmem %s94_s24, 2048  ;;  %p8197_p12 = scmp.lt.s32.totalorder %s94_s24, %s94_s24 }
  0x2f   :  { %p8193_p11 = scmp.ne.s32.totalorder %s94_s24, %s8192_s30  ;;  %p8198_p13 = scmp.lt.s32.totalorder %s8192_s30, %s8192_s30 }
  0x31   :  { %p8199_p0 = por %p8198_p13, %p8197_p12 }
  0x33   :  { %p8200_p1 = pnand %p8199_p0, %p8193_p11 }
  0x35   :  { %8203 = shalt.err (!%p8200_p1)
}
  0x36   :  { %99 = dma.hbm_to_vmem [thread:$0]  %s10017_s12, 2048, %s94_s24, [#allocation8], %s8415_s28, %s8415_s28, %s8416_s29  }
  0x37   :  { %s8204_s23 = scalar_lea.hbm %s10019_s14, 16 }
  0x38   :  { %p8205_p2 = scmp.ne.s32.totalorder %s10019_s14, %s8204_s23  ;;  %p8208_p3 = scmp.lt.u32.totalorder %s8204_s23, %s10019_s14 }
  0x3a   :  { %p8210_p4 = pnand %p8208_p3, %p8205_p2 }
  0x3c   :  { %8213 = shalt.err (!%p8210_p4)
}
  0x3d   :  { %s8214_s6 = scalar_lea.vmem %s117_s1, 16  ;;  %s8218_s27 = scalar_lea.vmem %s117_s1, 32 }
  0x3e   :  { %p8215_p5 = scmp.ne.s32.totalorder %s117_s1, %s8214_s6  ;;  %p8219_p6 = scmp.lt.s32.totalorder %s117_s1, %s117_s1 }
  0x3f   :  { %p8220_p7 = scmp.lt.s32.totalorder %s8218_s27, %s8214_s6 }
  0x41   :  { %p8221_p8 = por %p8220_p7, %p8219_p6 }
  0x43   :  { %p8222_p9 = pnand %p8221_p8, %p8215_p5 }
  0x45   :  { %8225 = shalt.err (!%p8222_p9)
}
  0x46   :  { %119 = dma.hbm_to_vmem [thread:$0]  %s10019_s14, 16, %s117_s1, [#allocation11]  }
  0x47   :  { %s8419_s7 = smov [#allocation13]   ;;  %s8420_s5 = smov [#allocation16]  }
  0x48   :  { %s139_s30 = sshll.u32 %s8419_s7, 4  ;;  %s164_s3 = sshll.u32 %s8420_s5, 4  ;;  %s140_s30 = int_to_ptr.vmem [resolvable:$true] %s139_s30  ;;  %s165_s3 = int_to_ptr.vmem [resolvable:$true] %s164_s3 }
  0x49   :  { %s8226_s23 = scalar_lea.hbm %s10022_s17, 4096 }
  0x4a   :  { %p8227_p10 = scmp.ne.s32.totalorder %s10022_s17, %s8226_s23  ;;  %p8230_p11 = scmp.lt.u32.totalorder %s8226_s23, %s10022_s17 }
  0x4c   :  { %p8232_p12 = pnand %p8230_p11, %p8227_p10 }
  0x4e   :  { %8235 = shalt.err (!%p8232_p12)
}
  0x4f   :  { %s8236_s14 = scalar_lea.vmem %s140_s30, 4096  ;;  %p8241_p0 = scmp.lt.s32.totalorder %s140_s30, %s140_s30 }
  0x50   :  { %p8237_p13 = scmp.ne.s32.totalorder %s140_s30, %s8236_s14  ;;  %p8242_p1 = scmp.lt.s32.totalorder %s8236_s14, %s8236_s14 }
  0x52   :  { %p8243_p2 = por %p8242_p1, %p8241_p0 }
  0x54   :  { %p8244_p3 = pnand %p8243_p2, %p8237_p13 }
  0x56   :  { %8247 = shalt.err (!%p8244_p3)
}
  0x57   :  { %s8421_s1 = smov 128   ;;  %s8422_s6 = smov 8  }
  0x58   :  { %145 = dma.hbm_to_vmem [thread:$0]  %s10022_s17, 4096, %s140_s30, [#allocation14], %s8421_s1, %s8421_s1, %s8422_s6  }
  0x59   :  { %s8248_s5 = scalar_lea.hbm %s10024_s19, 16 }
  0x5a   :  { %p8249_p4 = scmp.ne.s32.totalorder %s10024_s19, %s8248_s5  ;;  %p8252_p5 = scmp.lt.u32.totalorder %s8248_s5, %s10024_s19 }
  0x5c   :  { %p8254_p6 = pnand %p8252_p5, %p8249_p4 }
  0x5e   :  { %8257 = shalt.err (!%p8254_p6)
}
  0x5f   :  { %s8258_s25 = scalar_lea.vmem %s165_s3, 16  ;;  %s8262_s26 = scalar_lea.vmem %s165_s3, 32 }
  0x60   :  { %p8259_p7 = scmp.ne.s32.totalorder %s165_s3, %s8258_s25  ;;  %p8263_p8 = scmp.lt.s32.totalorder %s165_s3, %s165_s3 }
  0x61   :  { %p8264_p9 = scmp.lt.s32.totalorder %s8262_s26, %s8258_s25 }
  0x63   :  { %p8265_p10 = por %p8264_p9, %p8263_p8 }
  0x65   :  { %p8266_p11 = pnand %p8265_p10, %p8259_p7 }
  0x67   :  { %8269 = shalt.err (!%p8266_p11)
}
  0x68   :  { %167 = dma.hbm_to_vmem [thread:$0]  %s10024_s19, 16, %s165_s3, [#allocation17]  }
  0x69   :  { %s8423_s2 = smov [#allocation2]   ;;  %s10047_s24 = sld [smem:[#allocation26_spill]] }
  0x6a   :  { %s41_s14 = sshll.u32 %s8423_s2, 4  ;;  %s42_s14 = int_to_ptr.vmem [resolvable:$true] %s41_s14 }
  0x6f   :  { %s8270_s7 = scalar_lea.hbm %s10047_s24, 1024 }
  0x70   :  { %p8271_p12 = scmp.ne.s32.totalorder %s10047_s24, %s8270_s7  ;;  %p8274_p13 = scmp.lt.u32.totalorder %s8270_s7, %s10047_s24 }
  0x72   :  { %p8276_p0 = pnand %p8274_p13, %p8271_p12 }
  0x74   :  { %8279 = shalt.err (!%p8276_p0)
}
  0x75   :  { %s8280_s4 = scalar_lea.vmem %s42_s14, 1024  ;;  %p8285_p2 = scmp.lt.s32.totalorder %s42_s14, %s42_s14 }
  0x76   :  { %p8281_p1 = scmp.ne.s32.totalorder %s42_s14, %s8280_s4  ;;  %p8286_p3 = scmp.lt.s32.totalorder %s8280_s4, %s8280_s4 }
  0x78   :  { %p8287_p4 = por %p8286_p3, %p8285_p2 }
  0x7a   :  { %p8288_p5 = pnand %p8287_p4, %p8281_p1 }
  0x7c   :  { %8291 = shalt.err (!%p8288_p5)
}
  0x7d   :  { %s8424_s19 = smov 64   ;;  %s8425_s3 = smov 4  }
  0x7e   :  { %47 = dma.hbm_to_vmem [thread:$0]  %s10047_s24, 1024, %s42_s14, [#allocation3], %s8424_s19, %s8424_s19, %s8425_s3  }
  0x7f   :  { %s8426_s17 = smov [#allocation6]   ;;  %s8427_s2 = smov [#allocation9]  }
  0x80   :  { %s79_s30 = sshll.u32 %s8426_s17, 4  ;;  %s106_s27 = sshll.u32 %s8427_s2, 4  ;;  %s80_s30 = int_to_ptr.vmem [resolvable:$true] %s79_s30  ;;  %s107_s27 = int_to_ptr.vmem [resolvable:$true] %s106_s27 }
  0x81   :  { %s8292_s5 = scalar_lea.hbm %s10015_s10, 16384 }
  0x82   :  { %p8293_p6 = scmp.ne.s32.totalorder %s10015_s10, %s8292_s5  ;;  %p8296_p7 = scmp.lt.u32.totalorder %s8292_s5, %s10015_s10 }
  0x84   :  { %p8298_p8 = pnand %p8296_p7, %p8293_p6 }
  0x86   :  { %8301 = shalt.err (!%p8298_p8)
}
  0x87   :  { %s8302_s14 = scalar_lea.vmem %s80_s30, 16384  ;;  %p8307_p10 = scmp.lt.s32.totalorder %s80_s30, %s80_s30 }
  0x88   :  { %p8303_p9 = scmp.ne.s32.totalorder %s80_s30, %s8302_s14  ;;  %p8308_p11 = scmp.lt.s32.totalorder %s8302_s14, %s8302_s14 }
  0x8a   :  { %p8309_p12 = por %p8308_p11, %p8307_p10 }
  0x8c   :  { %p8310_p13 = pnand %p8309_p12, %p8303_p9 }
  0x8e   :  { %8313 = shalt.err (!%p8310_p13)
}
  0x8f   :  { %85 = dma.hbm_to_vmem [thread:$0]  %s10015_s10, 16384, %s80_s30, [#allocation5], %s8421_s1, %s8421_s1, %s8422_s6  }
  0x90   :  { %s8314_s26 = scalar_lea.hbm %s10018_s13, 16 }
  0x91   :  { %p8315_p0 = scmp.ne.s32.totalorder %s10018_s13, %s8314_s26  ;;  %p8318_p1 = scmp.lt.u32.totalorder %s8314_s26, %s10018_s13 }
  0x93   :  { %p8320_p2 = pnand %p8318_p1, %p8315_p0 }
  0x95   :  { %8323 = shalt.err (!%p8320_p2)
}
  0x96   :  { %s8324_s5 = scalar_lea.vmem %s107_s27, 16  ;;  %s8328_s0 = scalar_lea.vmem %s107_s27, 32 }
  0x97   :  { %p8325_p3 = scmp.ne.s32.totalorder %s107_s27, %s8324_s5  ;;  %p8329_p4 = scmp.lt.s32.totalorder %s107_s27, %s107_s27 }
  0x98   :  { %p8330_p5 = scmp.lt.s32.totalorder %s8328_s0, %s8324_s5 }
  0x9a   :  { %p8331_p6 = por %p8330_p5, %p8329_p4 }
  0x9c   :  { %p8332_p7 = pnand %p8331_p6, %p8325_p3 }
  0x9e   :  { %8335 = shalt.err (!%p8332_p7)
}
  0x9f   :  { %109 = dma.hbm_to_vmem [thread:$0]  %s10018_s13, 16, %s107_s27, [#allocation8]  }
  0xa0   :  { %s8428_s22 = smov [#allocation12]   ;;  %s8429_s4 = smov [#allocation15]  }
  0xa1   :  { %s127_s23 = sshll.u32 %s8428_s22, 4  ;;  %s151_s14 = sshll.u32 %s8429_s4, 4  ;;  %s128_s23 = int_to_ptr.vmem [resolvable:$true] %s127_s23  ;;  %s8661_s14 = int_to_ptr.vmem [resolvable:$true] %s151_s14 }
  0xa2   :  { %s8336_s3 = scalar_lea.hbm %s10021_s16, 16384 }
  0xa3   :  { %p8337_p8 = scmp.ne.s32.totalorder %s10021_s16, %s8336_s3  ;;  %p8340_p9 = scmp.lt.u32.totalorder %s8336_s3, %s10021_s16 }
  0xa5   :  { %p8342_p10 = pnand %p8340_p9, %p8337_p8 }
  0xa7   :  { %8345 = shalt.err (!%p8342_p10)
}
  0xa8   :  { %s8346_s13 = scalar_lea.vmem %s128_s23, 16384  ;;  %p8351_p12 = scmp.lt.s32.totalorder %s128_s23, %s128_s23 }
  0xa9   :  { %p8347_p11 = scmp.ne.s32.totalorder %s128_s23, %s8346_s13  ;;  %p8352_p13 = scmp.lt.s32.totalorder %s8346_s13, %s8346_s13 }
  0xab   :  { %p8353_p0 = por %p8352_p13, %p8351_p12 }
  0xad   :  { %p8354_p1 = pnand %p8353_p0, %p8347_p11 }
  0xaf   :  { %8357 = shalt.err (!%p8354_p1)
}
  0xb0   :  { %133 = dma.hbm_to_vmem [thread:$0]  %s10021_s16, 16384, %s128_s23, [#allocation11], %s8421_s1, %s8421_s1, %s8422_s6  }
  0xb1   :  { %s8358_s0 = scalar_lea.hbm %s10023_s18, 4096 }
  0xb2   :  { %p8359_p2 = scmp.ne.s32.totalorder %s10023_s18, %s8358_s0  ;;  %p8362_p3 = scmp.lt.u32.totalorder %s8358_s0, %s10023_s18 }
  0xb4   :  { %p8364_p4 = pnand %p8362_p3, %p8359_p2 }
  0xb6   :  { %8367 = shalt.err (!%p8364_p4)
}
  0xb7   :  { %s8368_s24 = scalar_lea.vmem %s8661_s14, 4096  ;;  %p8373_p6 = scmp.lt.s32.totalorder %s8661_s14, %s8661_s14 }
  0xb8   :  { %p8369_p5 = scmp.ne.s32.totalorder %s8661_s14, %s8368_s24  ;;  %p8374_p7 = scmp.lt.s32.totalorder %s8368_s24, %s8368_s24 }
  0xba   :  { %p8375_p8 = por %p8374_p7, %p8373_p6 }
  0xbc   :  { %p8376_p9 = pnand %p8375_p8, %p8369_p5 }
  0xbe   :  { %8379 = shalt.err (!%p8376_p9)
}
  0xbf   :  { %157 = dma.hbm_to_vmem [thread:$0]  %s10023_s18, 4096, %s8661_s14, [#allocation14], %s8415_s28, %s8415_s28, %s8416_s29  }
  0xc0   :  { %s8430_s6 = smov [#allocation18]   ;;  %s8380_s25 = scalar_lea.hbm %s10025_s20, 16 }
  0xc1   :  { %s174_s23 = sshll.u32 %s8430_s6, 4  ;;  %p8381_p10 = scmp.ne.s32.totalorder %s10025_s20, %s8380_s25  ;;  %s175_s23 = int_to_ptr.vmem [resolvable:$true] %s174_s23 }
  0xc2   :  { %p8384_p11 = scmp.lt.u32.totalorder %s8380_s25, %s10025_s20 }
  0xc4   :  { %p8386_p12 = pnand %p8384_p11, %p8381_p10 }
  0xc6   :  { %8389 = shalt.err (!%p8386_p12)
}
  0xc7   :  { %s8390_s27 = scalar_lea.vmem %s175_s23, 16  ;;  %s8394_s18 = scalar_lea.vmem %s175_s23, 32 }
  0xc8   :  { %p8391_p13 = scmp.ne.s32.totalorder %s175_s23, %s8390_s27  ;;  %p8395_p0 = scmp.lt.s32.totalorder %s175_s23, %s175_s23 }
  0xc9   :  { %p8396_p1 = scmp.lt.s32.totalorder %s8394_s18, %s8390_s27 }
  0xcb   :  { %p8397_p2 = por %p8396_p1, %p8395_p0 }
  0xcd   :  { %p8398_p3 = pnand %p8397_p2, %p8391_p13 }
  0xcf   :  { %8401 = shalt.err (!%p8398_p3)
}
  0xd0   :  { %177 = dma.hbm_to_vmem [thread:$0]  %s10025_s20, 16, %s175_s23, [#allocation17]  }
  0xd1   :  { %8402 = dma.done.wait [#allocation3], 1024  }
  0xd2   :  { %8403 = vsyncadd [#allocation3], 4294966272 }
  0xd3   :  { %8404 = dma.done.wait [#allocation5], 17408  }
  0xd4   :  { %8405 = vsyncadd [#allocation5], 4294949888 }
  0xd5   :  { %8406 = dma.done.wait [#allocation8], 2064  }
  0xd6   :  { %8407 = vsyncadd [#allocation8], 4294965232 }
  0xd7   :  { %8408 = dma.done.wait [#allocation11], 16400  }
  0xd8   :  { %8409 = vsyncadd [#allocation11], 4294950896 }
  0xd9   :  { %8410 = dma.done.wait [#allocation14], 8192  }
  0xda   :  { %8411 = vsyncadd [#allocation14], 4294959104 }
  0xdb   :  { %8412 = dma.done.wait [#allocation17], 32  }
  0xdc   :  { %8413 = vsyncadd [#allocation17], 4294967264  ;;  %s10048_s7 = sld [smem:[#allocation25_spill]]  ;;  %vm262_vm0 = vcmask 523264   ;;  %v7489_v3 = vld [vmem:[#allocation2 + $0x10] sm:$0xff]   ;;  %v7491_v4 = vld [vmem:[#allocation2] sm:$0xff]  }
  0xdd   :  { %7018 = vmatprep.mubr.msk.bf16.mxu1 %vm262_vm0, %v7489_v3  ;;  %7006 = vmatprep.mubr.msk.bf16.mxu0 %vm262_vm0, %v7491_v4  ;;  %s10049_s16 = sld [smem:[#allocation27_spill]]  ;;  %v7490_v7 = vld [vmem:[#allocation2 + $0x18] sm:$0xff]   ;;  %v7492_v8 = vld [vmem:[#allocation2 + $0x8] sm:$0xff]   ;;  %v7493_v9 = vld [vmem:[#allocation2 + $0x20] sm:$0xff]   ;;  %v8431_v25 = vmov 0   ;;  %vm477_vm1 = vcmask 785408  }
  0xde   :  { %v7494_v18 = vld [vmem:[#allocation2 + $0x28] sm:$0xff]   ;;  %v7495_v19 = vld [vmem:[#allocation2 + $0x30] sm:$0xff]   ;;  %v7496_v21 = vld [vmem:[#allocation2 + $0x38] sm:$0xff]   ;;  %s10050_s10 = sld [smem:[#allocation28_spill]]  ;;  %vm1115_vm10 = vcmask 261120   ;;  %s10051_s1 = sld [smem:[#allocation29_spill]] }
  0xdf   :  { %s10052_s0 = sld [smem:[#allocation30_spill]]  ;;  %s10053_s25 = sld [smem:[#allocation32_spill]]  ;;  %vm2775_vm15 = vcmask 130048  }
  0xe0   :  { %s10054_s26 = sld [smem:[#allocation33_spill]] }
  0xe2   :  { %v7485_v0 = vld [vmem:[%s10048_s7] sm:$0xff]   ;;  %v8716_v1 = vld [vmem:[%s10048_s7 + $0x8] sm:$0xff]   ;;  %v7487_v2 = vld [vmem:[%s10048_s7 + $0x10] sm:$0xff]  }
  0xe3   :  { %7010 = vmatprep.subr.bf16.mxu1 %v7485_v0  ;;  %6998 = vmatprep.subr.bf16.mxu0 %v7485_v0  ;;  %v7488_v5 = vld [vmem:[%s10048_s7 + $0x18] sm:$0xff]   ;;  %v7499_v6 = vld [vmem:[%s10049_s16 + $0x64] ss:$8 sps:$4 sm:$0xff]   ;;  %v7497_v10 = vld [vmem:[%s10049_s16 + $0x60] ss:$8 sps:$4 sm:$0xff]  }
  0xe4   :  { %7011 = vmatpush3.bf16.msra.mxu1 %v7485_v0  ;;  %6999 = vmatpush3.bf16.msra.mxu0 %v7485_v0  ;;  %v7502_v11 = vld [vmem:[%s10049_s16 + $0x74] ss:$8 sps:$4 sm:$0xff]   ;;  %v7500_v12 = vld [vmem:[%s10049_s16 + $0x70] ss:$8 sps:$4 sm:$0xff]   ;;  %v7505_v13 = vld [vmem:[%s10049_s16 + $0x84] ss:$8 sps:$4 sm:$0xff]  }
  0xe5   :  { %7012 = vmatprep.subr.bf16.mxu1 %v8716_v1  ;;  %7000 = vmatprep.subr.bf16.mxu0 %v8716_v1  ;;  %v7503_v14 = vld [vmem:[%s10049_s16 + $0x80] ss:$8 sps:$4 sm:$0xff]   ;;  %v7508_v15 = vld [vmem:[%s10049_s16 + $0x94] ss:$8 sps:$4 sm:$0xff]   ;;  %v7506_v16 = vld [vmem:[%s10049_s16 + $0x90] ss:$8 sps:$4 sm:$0xff]  }
  0xe6   :  { %v7511_v17 = vld [vmem:[%s10049_s16 + $0xa4] ss:$8 sps:$4 sm:$0xff]   ;;  %v7509_v20 = vld [vmem:[%s10049_s16 + $0xa0] ss:$8 sps:$4 sm:$0xff]   ;;  %v7514_v22 = vld [vmem:[%s10049_s16 + $0xb4] ss:$8 sps:$4 sm:$0xff]  }
  0xe7   :  { %v7512_v23 = vld [vmem:[%s10049_s16 + $0xb0] ss:$8 sps:$4 sm:$0xff]   ;;  %v7517_v24 = vld [vmem:[%s10049_s16 + $0x4] ss:$8 sps:$4 sm:$0xff]   ;;  %v7515_v34 = vld [vmem:[%s10049_s16] ss:$8 sps:$4 sm:$0xff]  }
  0xe8   :  { %7013 = vmatpush3.bf16.msra.mxu1 %v8716_v1  ;;  %7001 = vmatpush3.bf16.msra.mxu0 %v8716_v1  ;;  %v7520_v38 = vld [vmem:[%s10049_s16 + $0x14] ss:$8 sps:$4 sm:$0xff]   ;;  %v7518_v40 = vld [vmem:[%s10049_s16 + $0x10] ss:$8 sps:$4 sm:$0xff]   ;;  %v7523_v41 = vld [vmem:[%s10049_s16 + $0x24] ss:$8 sps:$4 sm:$0xff]  }
  0xe9   :  { %7014 = vmatprep.subr.bf16.mxu1 %v7487_v2  ;;  %7002 = vmatprep.subr.bf16.mxu0 %v7487_v2  ;;  %v7521_v42 = vld [vmem:[%s10049_s16 + $0x20] ss:$8 sps:$4 sm:$0xff]   ;;  %v7526_v43 = vld [vmem:[%s10049_s16 + $0x34] ss:$8 sps:$4 sm:$0xff]   ;;  %v7524_v44 = vld [vmem:[%s10049_s16 + $0x30] ss:$8 sps:$4 sm:$0xff]  }
  0xea   :  { %v7529_v45 = vld [vmem:[%s10049_s16 + $0x44] ss:$8 sps:$4 sm:$0xff]   ;;  %v7527_v49 = vld [vmem:[%s10049_s16 + $0x40] ss:$8 sps:$4 sm:$0xff]   ;;  %v7532_v52 = vld [vmem:[%s10049_s16 + $0x54] ss:$8 sps:$4 sm:$0xff]  }
  0xeb   :  { %v7530_v54 = vld [vmem:[%s10049_s16 + $0x50] ss:$8 sps:$4 sm:$0xff]   ;;  %v7535_v55 = vld [vmem:[%s10049_s16 + $0xc4] ss:$8 sps:$4 sm:$0xff]   ;;  %v7533_v56 = vld [vmem:[%s10049_s16 + $0xc0] ss:$8 sps:$4 sm:$0xff]  }
  0xec   :  { %7015 = vmatpush3.bf16.msra.mxu1 %v7487_v2  ;;  %7003 = vmatpush3.bf16.msra.mxu0 %v7487_v2  ;;  %v7538_v57 = vld [vmem:[%s10049_s16 + $0xd4] ss:$8 sps:$4 sm:$0xff]   ;;  %v7536_v58 = vld [vmem:[%s10049_s16 + $0xd0] ss:$8 sps:$4 sm:$0xff]   ;;  %v7541_v59 = vld [vmem:[%s10049_s16 + $0xe4] ss:$8 sps:$4 sm:$0xff]  }
  0xed   :  { %7016 = vmatprep.subr.bf16.mxu1 %v7488_v5  ;;  %7004 = vmatprep.subr.bf16.mxu0 %v7488_v5  ;;  %v7539_v63 = vld [vmem:[%s10049_s16 + $0xe0] ss:$8 sps:$4 sm:$0xff]   ;;  %v7542_v4 = vld [vmem:[%s10049_s16 + $0xf0] ss:$8 sps:$4 sm:$0xff]  }
  0xf0   :  { %7017 = vmatpush3.bf16.msra.mxu1 %v7488_v5  ;;  %7005 = vmatpush3.bf16.msra.mxu0 %v7488_v5 }
  0xf1   :  { %7022 = vmatprep.subr.bf16.mxu1 %v7485_v0  ;;  %484 = vmatprep.subr.bf16.mxu0 %v7499_v6  ;;  %v7545_v6 = vld [vmem:[%s10049_s16 + $0x100] ss:$8 sps:$4 sm:$0xff]  }
  0xf3   :  { %7019 = vmatmul.mubr.msk.bf16.vlgmr.msra.gmra.mrb[0].mxu1 %vm262_vm0, %v7490_v7  ;;  %7007 = vmatmul.mubr.msk.bf16.vlgmr.msra.gmra.mrb[0].mxu0 %vm262_vm0, %v7492_v8  ;;  %v7550_v7 = vld [vmem:[%s10049_s16 + $0x114] ss:$8 sps:$4 sm:$0xff]   ;;  %v7548_v8 = vld [vmem:[%s10049_s16 + $0x110] ss:$8 sps:$4 sm:$0xff]  }
  0xf4   :  { %7023 = vmatpush3.bf16.msra.mxu1 %v7485_v0  ;;  %7030 = vmatprep.mubr.msk.bf16.mxu1 %vm262_vm0, %v7493_v9  ;;  %v7553_v9 = vld [vmem:[%s10049_s16 + $0x124] ss:$8 sps:$4 sm:$0xff]  }
  0xf5   :  { %7024 = vmatprep.subr.bf16.mxu1 %v8716_v1  ;;  %485 = vmatpush1.bf16.msra.mxu0 %v7497_v10  ;;  %v7551_v10 = vld [vmem:[%s10049_s16 + $0x120] ss:$8 sps:$4 sm:$0xff]  }
  0xf6   :  { %486 = vmatprep.subr.bf16.mxu0 %v7502_v11  ;;  %516 = vmatprep.mubr.bf16.mxu0 %v8431_v25  ;;  %v7556_v11 = vld [vmem:[%s10049_s16 + $0x134] ss:$8 sps:$4 sm:$0xff]  }
  0xf8   :  { %7025 = vmatpush3.bf16.msra.mxu1 %v8716_v1 }
  0xf9   :  { %7026 = vmatprep.subr.bf16.mxu1 %v7487_v2  ;;  %487 = vmatpush1.bf16.msra.mxu0 %v7500_v12  ;;  %v7554_v12 = vld [vmem:[%s10049_s16 + $0x130] ss:$8 sps:$4 sm:$0xff]  }
  0xfa   :  { %488 = vmatprep.subr.bf16.mxu0 %v7505_v13  ;;  %v7559_v13 = vld [vmem:[%s10049_s16 + $0x144] ss:$8 sps:$4 sm:$0xff]  }
  0xfc   :  { %7027 = vmatpush3.bf16.msra.mxu1 %v7487_v2 }
  0xfd   :  { %7028 = vmatprep.subr.bf16.mxu1 %v7488_v5  ;;  %489 = vmatpush1.bf16.msra.mxu0 %v7503_v14  ;;  %v7557_v14 = vld [vmem:[%s10049_s16 + $0x140] ss:$8 sps:$4 sm:$0xff]  }
  0xfe   :  { %490 = vmatprep.subr.bf16.mxu0 %v7508_v15  ;;  %v7562_v15 = vld [vmem:[%s10049_s16 + $0x154] ss:$8 sps:$4 sm:$0xff]  }
 0x100   :  { %7029 = vmatpush3.bf16.msra.mxu1 %v7488_v5 }
 0x101   :  { %7034 = vmatprep.subr.bf16.mxu1 %v7485_v0  ;;  %491 = vmatpush1.bf16.msra.mxu0 %v7506_v16  ;;  %v7560_v16 = vld [vmem:[%s10049_s16 + $0x150] ss:$8 sps:$4 sm:$0xff]  }
 0x102   :  { %492 = vmatprep.subr.bf16.mxu0 %v7511_v17  ;;  %v7565_v17 = vld [vmem:[%s10049_s16 + $0x164] ss:$8 sps:$4 sm:$0xff]  }
 0x103   :  { %7031 = vmatmul.mubr.msk.bf16.vlgmr.msra.gmra.mrb[4].mxu1 %vm262_vm0, %v7494_v18  ;;  %v7563_v18 = vld [vmem:[%s10049_s16 + $0x160] ss:$8 sps:$4 sm:$0xff]  }
 0x104   :  { %7035 = vmatpush3.bf16.msra.mxu1 %v7485_v0  ;;  %7042 = vmatprep.mubr.msk.bf16.mxu1 %vm262_vm0, %v7495_v19  ;;  %v7568_v19 = vld [vmem:[%s10049_s16 + $0x174] ss:$8 sps:$4 sm:$0xff]  }
 0x105   :  { %7036 = vmatprep.subr.bf16.mxu1 %v8716_v1  ;;  %493 = vmatpush1.bf16.msra.mxu0 %v7509_v20  ;;  %v7566_v20 = vld [vmem:[%s10049_s16 + $0x170] ss:$8 sps:$4 sm:$0xff]  }
 0x106   :  { %494 = vmatprep.subr.bf16.mxu0 %v7514_v22 }
 0x108   :  { %7037 = vmatpush3.bf16.msra.mxu1 %v8716_v1 }
 0x109   :  { %7038 = vmatprep.subr.bf16.mxu1 %v7487_v2  ;;  %495 = vmatpush1.bf16.msra.mxu0 %v7512_v23 }
 0x10a   :  { %603 = vmatprep.subr.bf16.mxu0 %v7517_v24 }
 0x10c   :  { %7039 = vmatpush3.bf16.msra.mxu1 %v7487_v2  ;;  %v7544_v2 = vld [vmem:[%s10049_s16 + $0xf4] ss:$8 sps:$4 sm:$0xff]  }
 0x10d   :  { %7040 = vmatprep.subr.bf16.mxu1 %v7488_v5 }
 0x110   :  { %7041 = vmatpush3.bf16.msra.mxu1 %v7488_v5  ;;  %v7547_v5 = vld [vmem:[%s10049_s16 + $0x104] ss:$8 sps:$4 sm:$0xff]  }
 0x113   :  { %7043 = vmatmul.mubr.msk.bf16.vlgmr.msra.gmra.mrb[8].mxu1 %vm262_vm0, %v7496_v21 }
 0x114   :  { %1151 = vmatprep.mubr.bf16.mxu1 %v8431_v25 }
 0x1c6   :  { %v7020_v26 = vpop.f32.mrb[0].mxu1  ;;  %v8781_v27 = vpop.f32.mrb[0].mxu0 }
 0x1c7   :  { %v387_v28 = vpop.f32.mrb[1].mxu1  ;;  %v303_v29 = vpop.f32.mrb[1].mxu0 }
 0x1c8   :  { %v7021_v30 = vpop.f32.mrb[2].mxu1  ;;  %v7009_v31 = vpop.f32.mrb[2].mxu0 }
 0x1c9   :  { %v403_v32 = vpack.c.bf16 %v7021_v30, %v7020_v26  ;;  %v390_v33 = vpop.f32.mrb[3].mxu1  ;;  %v319_v35 = vpack.c.bf16 %v7009_v31, %v8781_v27  ;;  %v306_v36 = vpop.f32.mrb[3].mxu0 }
 0x1ca   :  { %v402_v37 = vpack.c.bf16 %v390_v33, %v387_v28  ;;  %v318_v39 = vpack.c.bf16 %v306_v36, %v303_v29 }
 0x1cc   :  { %6166 = vmatmul.mubr.msk.bf16.vlgmr.msra.gmra.mrb[4].mxu0 %vm477_vm1, %v402_v37 }
 0x1cd   :  { %604 = vmatpush1.bf16.msra.mxu0 %v7515_v34  ;;  %526 = vmatprep.mubr.bf16.mxu0 %v8431_v25 }
 0x1ce   :  { %605 = vmatprep.subr.bf16.mxu0 %v7520_v38 }
 0x1d1   :  { %606 = vmatpush1.bf16.msra.mxu0 %v7518_v40 }
 0x1d2   :  { %607 = vmatprep.subr.bf16.mxu0 %v7523_v41 }
 0x1d4   :  { %6167 = vmatmul.mubr.msk.bf16.gmra.mrb[8].mxu0 %vm477_vm1, %v403_v32 }
 0x1d5   :  { %608 = vmatpush1.bf16.msra.mxu0 %v7521_v42  ;;  %635 = vmatprep.mubr.bf16.mxu0 %v8431_v25 }
 0x1d6   :  { %609 = vmatprep.subr.bf16.mxu0 %v7526_v43  ;;  %v8812_v46 = vpop.f32.mrb[4].mxu1 }
 0x1d7   :  { %v711_v47 = vpop.f32.mrb[5].mxu1 }
 0x1d8   :  { %v7033_v48 = vpop.f32.mrb[6].mxu1 }
 0x1d9   :  { %610 = vmatpush1.bf16.msra.mxu0 %v7524_v44  ;;  %v727_v50 = vpack.c.bf16 %v7033_v48, %v8812_v46  ;;  %v714_v51 = vpop.f32.mrb[7].mxu1 }
 0x1da   :  { %611 = vmatprep.subr.bf16.mxu0 %v7529_v45  ;;  %v726_v53 = vpack.c.bf16 %v714_v51, %v711_v47  ;;  %v7570_v51 = vld [vmem:[%s10050_s10 + $0x10] sm:$0xff]  }
 0x1dd   :  { %612 = vmatpush1.bf16.msra.mxu0 %v7527_v49 }
 0x1de   :  { %613 = vmatprep.subr.bf16.mxu0 %v7532_v52  ;;  %v7574_v52 = vld [vmem:[%s10051_s1 + $0x104] ss:$8 sps:$4 sm:$0xff]  }
 0x1e1   :  { %614 = vmatpush1.bf16.msra.mxu0 %v7530_v54  ;;  %v7599_v54 = vld [vmem:[%s10050_s10 + $0x18] sm:$0xff]  }
 0x1e2   :  { %807 = vmatprep.subr.bf16.mxu0 %v7535_v55  ;;  %v7572_v55 = vld [vmem:[%s10051_s1 + $0x100] ss:$8 sps:$4 sm:$0xff]  }
 0x1e4   :  { %6180 = vmatmul.mubr.msk.bf16.vlgmr.msra.gmra.mrb[4].mxu0 %vm477_vm1, %v318_v39 }
 0x1e5   :  { %808 = vmatpush1.bf16.msra.mxu0 %v7533_v56  ;;  %645 = vmatprep.mubr.bf16.mxu0 %v8431_v25  ;;  %v7577_v56 = vld [vmem:[%s10051_s1 + $0x114] ss:$8 sps:$4 sm:$0xff]  }
 0x1e6   :  { %809 = vmatprep.subr.bf16.mxu0 %v7538_v57  ;;  %v7044_v60 = vpop.f32.mrb[8].mxu1  ;;  %v7575_v57 = vld [vmem:[%s10051_s1 + $0x110] ss:$8 sps:$4 sm:$0xff]  }
 0x1e7   :  { %v923_v61 = vpop.f32.mrb[9].mxu1 }
 0x1e8   :  { %v7045_v62 = vpop.f32.mrb[10].mxu1 }
 0x1e9   :  { %810 = vmatpush1.bf16.msra.mxu0 %v7536_v58  ;;  %v939_v0 = vpack.c.bf16 %v7045_v62, %v7044_v60  ;;  %v926_v1 = vpop.f32.mrb[11].mxu1  ;;  %v7580_v58 = vld [vmem:[%s10051_s1 + $0x124] ss:$8 sps:$4 sm:$0xff]   ;;  %v7583_v60 = vld [vmem:[%s10051_s1 + $0x134] ss:$8 sps:$4 sm:$0xff]  }
 0x1ea   :  { %811 = vmatprep.subr.bf16.mxu0 %v7541_v59  ;;  %v938_v3 = vpack.c.bf16 %v926_v1, %v923_v61  ;;  %v7578_v59 = vld [vmem:[%s10051_s1 + $0x120] ss:$8 sps:$4 sm:$0xff]   ;;  %v7581_v61 = vld [vmem:[%s10051_s1 + $0x130] ss:$8 sps:$4 sm:$0xff]   ;;  %v7586_v62 = vld [vmem:[%s10051_s1 + $0x144] ss:$8 sps:$4 sm:$0xff]  }
 0x1eb   :  { %v7587_v1 = vld [vmem:[%s10051_s1 + $0x150] ss:$8 sps:$4 sm:$0xff]  }
 0x1ec   :  { %6181 = vmatmul.mubr.msk.bf16.gmra.mrb[8].mxu0 %vm477_vm1, %v319_v35 }
 0x1ed   :  { %812 = vmatpush1.bf16.msra.mxu0 %v7539_v63  ;;  %839 = vmatprep.mubr.bf16.mxu0 %v8431_v25  ;;  %v7584_v63 = vld [vmem:[%s10051_s1 + $0x140] ss:$8 sps:$4 sm:$0xff]  }
 0x1ee   :  { %813 = vmatprep.subr.bf16.mxu0 %v7544_v2  ;;  %v7592_v2 = vld [vmem:[%s10051_s1 + $0x164] ss:$8 sps:$4 sm:$0xff]  }
 0x1f1   :  { %814 = vmatpush1.bf16.msra.mxu0 %v7542_v4  ;;  %v7595_v4 = vld [vmem:[%s10051_s1 + $0x174] ss:$8 sps:$4 sm:$0xff]  }
 0x1f2   :  { %815 = vmatprep.subr.bf16.mxu0 %v7547_v5  ;;  %v7593_v5 = vld [vmem:[%s10051_s1 + $0x170] ss:$8 sps:$4 sm:$0xff]  }
 0x1f5   :  { %816 = vmatpush1.bf16.msra.mxu0 %v7545_v6  ;;  %v7598_v6 = vld [vmem:[%s10051_s1 + $0x184] ss:$8 sps:$4 sm:$0xff]  }
 0x1f6   :  { %817 = vmatprep.subr.bf16.mxu0 %v7550_v7  ;;  %v7596_v7 = vld [vmem:[%s10051_s1 + $0x180] ss:$8 sps:$4 sm:$0xff]  }
 0x1f9   :  { %818 = vmatpush1.bf16.msra.mxu0 %v7548_v8  ;;  %v7602_v8 = vld [vmem:[%s10051_s1 + $0x194] ss:$8 sps:$4 sm:$0xff]  }
 0x1fa   :  { %1019 = vmatprep.subr.bf16.mxu0 %v7553_v9  ;;  %v7600_v9 = vld [vmem:[%s10051_s1 + $0x190] ss:$8 sps:$4 sm:$0xff]  }
 0x1fc   :  { %6210 = vmatmul.mubr.msk.bf16.vlgmr.msra.gmra.mrb[4].mxu0 %vm477_vm1, %v726_v53  ;;  %v7571_v53 = vld [vmem:[%s10050_s10 + $0x8] sm:$0xff]  }
 0x1fd   :  { %1020 = vmatpush1.bf16.msra.mxu0 %v7551_v10  ;;  %849 = vmatprep.mubr.bf16.mxu0 %v8431_v25  ;;  %v7605_v10 = vld [vmem:[%s10051_s1 + $0x1a4] ss:$8 sps:$4 sm:$0xff]  }
 0x1fe   :  { %1021 = vmatprep.subr.bf16.mxu0 %v7556_v11  ;;  %v7603_v11 = vld [vmem:[%s10051_s1 + $0x1a0] ss:$8 sps:$4 sm:$0xff]  }
 0x201   :  { %1022 = vmatpush1.bf16.msra.mxu0 %v7554_v12  ;;  %v7608_v12 = vld [vmem:[%s10051_s1 + $0x1b4] ss:$8 sps:$4 sm:$0xff]  }
 0x202   :  { %1023 = vmatprep.subr.bf16.mxu0 %v7559_v13  ;;  %v7606_v13 = vld [vmem:[%s10051_s1 + $0x1b0] ss:$8 sps:$4 sm:$0xff]  }
 0x204   :  { %6211 = vmatmul.mubr.msk.bf16.gmra.mrb[8].mxu0 %vm477_vm1, %v727_v50  ;;  %v7569_v50 = vld [vmem:[%s10050_s10] sm:$0xff]  }
 0x205   :  { %1024 = vmatpush1.bf16.msra.mxu0 %v7557_v14  ;;  %1051 = vmatprep.mubr.bf16.mxu0 %v8431_v25  ;;  %v7611_v14 = vld [vmem:[%s10051_s1 + $0x1c4] ss:$8 sps:$4 sm:$0xff]  }
 0x206   :  { %1025 = vmatprep.subr.bf16.mxu0 %v7562_v15  ;;  %v7609_v15 = vld [vmem:[%s10051_s1 + $0x1c0] ss:$8 sps:$4 sm:$0xff]  }
 0x209   :  { %1026 = vmatpush1.bf16.msra.mxu0 %v7560_v16  ;;  %v7614_v16 = vld [vmem:[%s10051_s1 + $0x1d4] ss:$8 sps:$4 sm:$0xff]  }
 0x20a   :  { %1027 = vmatprep.subr.bf16.mxu0 %v7565_v17  ;;  %v7612_v17 = vld [vmem:[%s10051_s1 + $0x1d0] ss:$8 sps:$4 sm:$0xff]  }
 0x20d   :  { %1028 = vmatpush1.bf16.msra.mxu0 %v7563_v18  ;;  %v7615_v18 = vld [vmem:[%s10051_s1 + $0x1e0] ss:$8 sps:$4 sm:$0xff]  }
 0x20e   :  { %1029 = vmatprep.subr.bf16.mxu0 %v7568_v19  ;;  %v7617_v19 = vld [vmem:[%s10051_s1 + $0x1e4] ss:$8 sps:$4 sm:$0xff]  }
 0x211   :  { %1030 = vmatpush1.bf16.msra.mxu0 %v7566_v20  ;;  %v7620_v20 = vld [vmem:[%s10051_s1 + $0x1f4] ss:$8 sps:$4 sm:$0xff]  }
 0x214   :  { %6240 = vmatmul.mubr.msk.bf16.vlgmr.msra.gmra.mrb[4].mxu0 %vm477_vm1, %v938_v3  ;;  %v7590_v3 = vld [vmem:[%s10051_s1 + $0x160] ss:$8 sps:$4 sm:$0xff]  }
 0x215   :  { %1061 = vmatprep.mubr.bf16.mxu0 %v8431_v25 }
 0x21c   :  { %6241 = vmatmul.mubr.msk.bf16.gmra.mrb[8].mxu0 %vm477_vm1, %v939_v0  ;;  %v7589_v0 = vld [vmem:[%s10051_s1 + $0x154] ss:$8 sps:$4 sm:$0xff]  }
 0x21d   :  { %1734 = vmatprep.mubr.bf16.mxu0 %v8431_v25 }
 0x2e7   :  { %v1053_v21 = vpop.f32.mrb[4].mxu0 }
 0x2e8   :  { %v1088_v22 = vmul.f32 0.2, %v1053_v21  ;;  %v1055_v23 = vpop.f32.mrb[5].mxu0  ;;  %vm1080_vm2 = vcmp.ge.f32.partialorder %v1053_v21, 0.0 }
 0x2e9   :  { %v1089_v24 = vmul.f32 0.2, %v1055_v23  ;;  %v1057_v26 = vpop.f32.mrb[6].mxu0  ;;  %vm1081_vm3 = vcmp.ge.f32.partialorder %v1055_v23, 0.0 }
 0x2ea   :  { %vm1082_vm4 = vcmp.ge.f32.partialorder %v1057_v26, 0.0  ;;  %v1090_v27 = vmul.f32 0.2, %v1057_v26  ;;  %v1059_v28 = vpop.f32.mrb[7].mxu0  ;;  %v1096_v30 = vsel %vm1080_vm2, %v1053_v21, %v1088_v22  ;;  %v7618_v21 = vld [vmem:[%s10051_s1 + $0x1f0] ss:$8 sps:$4 sm:$0xff]  }
 0x2eb   :  { %vm1083_vm5 = vcmp.ge.f32.partialorder %v1059_v28, 0.0  ;;  %v1091_v29 = vmul.f32 0.2, %v1059_v28  ;;  %v1097_v32 = vsel %vm1081_vm3, %v1055_v23, %v1089_v24  ;;  %v7623_v22 = vld [vmem:[%s10051_s1 + $0x4] ss:$8 sps:$4 sm:$0xff]   ;;  %vm4391_vm2 = vcmask 1043456  }
 0x2ec   :  { %v1098_v31 = vsel %vm1082_vm4, %v1057_v26, %v1090_v27  ;;  %vm4387_vm3 = vcmask 64512  }
 0x2ed   :  { %v1104_v33 = vpack.c.bf16 %v1098_v31, %v1096_v30  ;;  %v1099_v34 = vsel %vm1083_vm5, %v1059_v28, %v1091_v29 }
 0x2ee   :  { %v1105_v35 = vpack.c.bf16 %v1099_v34, %v1097_v32 }
 0x2ef   :  { %v1063_v36 = vpop.f32.mrb[8].mxu0 }
 0x2f0   :  { %v1092_v37 = vmul.f32 0.2, %v1063_v36  ;;  %v1065_v38 = vpop.f32.mrb[9].mxu0  ;;  %1119 = vmatprep.subr.bf16.mxu1 %v1105_v35  ;;  %1702 = vmatprep.subr.bf16.mxu0 %v1105_v35  ;;  %vm1084_vm6 = vcmp.ge.f32.partialorder %v1063_v36, 0.0 }
 0x2f1   :  { %v1093_v39 = vmul.f32 0.2, %v1065_v38  ;;  %v1067_v40 = vpop.f32.mrb[10].mxu0  ;;  %1120 = vmatpush1.bf16.msra.mxu1 %v1104_v33  ;;  %1703 = vmatpush1.bf16.msra.mxu0 %v1104_v33  ;;  %vm1085_vm7 = vcmp.ge.f32.partialorder %v1065_v38, 0.0 }
 0x2f2   :  { %vm1086_vm8 = vcmp.ge.f32.partialorder %v1067_v40, 0.0  ;;  %v1094_v41 = vmul.f32 0.2, %v1067_v40  ;;  %v1069_v42 = vpop.f32.mrb[11].mxu0  ;;  %v1100_v44 = vsel %vm1084_vm6, %v1063_v36, %v1092_v37  ;;  %vm6025_vm6 = vcmask 31744  }
 0x2f3   :  { %vm1087_vm9 = vcmp.ge.f32.partialorder %v1069_v42, 0.0  ;;  %v1095_v43 = vmul.f32 0.2, %v1069_v42  ;;  %v1101_v46 = vsel %vm1085_vm7, %v1065_v38, %v1093_v39  ;;  %vm6106_vm7 = vcmask 1041408  }
 0x2f4   :  { %v1102_v45 = vsel %vm1086_vm8, %v1067_v40, %v1094_v41  ;;  %vm6118_vm8 = vcmask 1024  }
 0x2f5   :  { %v1106_v47 = vpack.c.bf16 %v1102_v45, %v1100_v44  ;;  %v1103_v48 = vsel %vm1087_vm9, %v1069_v42, %v1095_v43  ;;  %v7621_v42 = vld [vmem:[%s10051_s1] ss:$8 sps:$4 sm:$0xff]   ;;  %v7626_v43 = vld [vmem:[%s10051_s1 + $0x14] ss:$8 sps:$4 sm:$0xff]   ;;  %v7624_v44 = vld [vmem:[%s10051_s1 + $0x10] ss:$8 sps:$4 sm:$0xff]  }
 0x2f6   :  { %v1107_v49 = vpack.c.bf16 %v1103_v48, %v1101_v46  ;;  %v7629_v45 = vld [vmem:[%s10051_s1 + $0x24] ss:$8 sps:$4 sm:$0xff]   ;;  %v7627_v46 = vld [vmem:[%s10051_s1 + $0x20] ss:$8 sps:$4 sm:$0xff]   ;;  %v7630_v48 = vld [vmem:[%s10051_s1 + $0x30] ss:$8 sps:$4 sm:$0xff]  }
 0x2f8   :  { %1121 = vmatprep.subr.bf16.mxu1 %v1107_v49  ;;  %1704 = vmatprep.subr.bf16.mxu0 %v1107_v49 }
 0x2f9   :  { %1122 = vmatpush1.bf16.msra.mxu1 %v1106_v47  ;;  %1705 = vmatpush1.bf16.msra.mxu0 %v1106_v47 }
 0x2fa   :  { %1207 = vmatprep.subr.bf16.mxu1 %v1105_v35  ;;  %1998 = vmatprep.subr.bf16.mxu0 %v1105_v35 }
 0x2fc   :  { %6243 = vmatmul.mubr.msk.bf16.vlgmr.msra.gmra.mrb[12].mxu1 %vm1115_vm10, %v7569_v50  ;;  %6347 = vmatmul.mubr.msk.bf16.vlgmr.msra.gmra.mrb[12].mxu0 %vm1115_vm10, %v7570_v51  ;;  %v7633_v50 = vld [vmem:[%s10051_s1 + $0x40] ss:$8 sps:$4 sm:$0xff]   ;;  %v7638_v51 = vld [vmem:[%s10051_s1 + $0x54] ss:$8 sps:$4 sm:$0xff]  }
 0x2fd   :  { %1208 = vmatpush1.bf16.msra.mxu1 %v1104_v33  ;;  %1999 = vmatpush1.bf16.msra.mxu0 %v1104_v33 }
 0x2fe   :  { %1209 = vmatprep.subr.bf16.mxu1 %v1107_v49  ;;  %2000 = vmatprep.subr.bf16.mxu0 %v1107_v49  ;;  %v7635_v49 = vld [vmem:[%s10051_s1 + $0x44] ss:$8 sps:$4 sm:$0xff]  }
 0x2ff   :  { %1239 = vmatprep.mubr.bf16.mxu1 %v8431_v25  ;;  %2030 = vmatprep.mubr.bf16.mxu0 %v8431_v25 }
 0x301   :  { %1210 = vmatpush1.bf16.msra.mxu1 %v1106_v47  ;;  %2001 = vmatpush1.bf16.msra.mxu0 %v1106_v47  ;;  %v7632_v47 = vld [vmem:[%s10051_s1 + $0x34] ss:$8 sps:$4 sm:$0xff]  }
 0x302   :  { %1445 = vmatprep.subr.bf16.mxu1 %v7574_v52  ;;  %v7636_v52 = vld [vmem:[%s10051_s1 + $0x50] ss:$8 sps:$4 sm:$0xff]  }
 0x304   :  { %6247 = vmatmul.mubr.msk.bf16.vlgmr.msra.gmra.mrb[16].mxu1 %vm1115_vm10, %v7571_v53  ;;  %6415 = vmatmul.mubr.msk.bf16.vlgmr.msra.gmra.mrb[16].mxu0 %vm1115_vm10, %v7599_v54  ;;  %v7641_v53 = vld [vmem:[%s10051_s1 + $0x64] ss:$8 sps:$4 sm:$0xff]   ;;  %v7639_v54 = vld [vmem:[%s10051_s1 + $0x60] ss:$8 sps:$4 sm:$0xff]  }
 0x305   :  { %1446 = vmatpush1.bf16.msra.mxu1 %v7572_v55  ;;  %v7644_v55 = vld [vmem:[%s10051_s1 + $0x74] ss:$8 sps:$4 sm:$0xff]  }
 0x306   :  { %1447 = vmatprep.subr.bf16.mxu1 %v7577_v56  ;;  %v7642_v56 = vld [vmem:[%s10051_s1 + $0x70] ss:$8 sps:$4 sm:$0xff]  }
 0x309   :  { %1448 = vmatpush1.bf16.msra.mxu1 %v7575_v57  ;;  %v7647_v57 = vld [vmem:[%s10051_s1 + $0x84] ss:$8 sps:$4 sm:$0xff]  }
 0x30a   :  { %1449 = vmatprep.subr.bf16.mxu1 %v7580_v58  ;;  %v7645_v58 = vld [vmem:[%s10051_s1 + $0x80] ss:$8 sps:$4 sm:$0xff]  }
 0x30d   :  { %1450 = vmatpush1.bf16.msra.mxu1 %v7578_v59  ;;  %v7650_v59 = vld [vmem:[%s10051_s1 + $0x94] ss:$8 sps:$4 sm:$0xff]  }
 0x30e   :  { %1451 = vmatprep.subr.bf16.mxu1 %v7583_v60  ;;  %v7648_v60 = vld [vmem:[%s10051_s1 + $0x90] ss:$8 sps:$4 sm:$0xff]  }
 0x311   :  { %1452 = vmatpush1.bf16.msra.mxu1 %v7581_v61  ;;  %v7653_v61 = vld [vmem:[%s10051_s1 + $0xa4] ss:$8 sps:$4 sm:$0xff]  }
 0x312   :  { %1453 = vmatprep.subr.bf16.mxu1 %v7586_v62  ;;  %v7651_v62 = vld [vmem:[%s10051_s1 + $0xa0] ss:$8 sps:$4 sm:$0xff]  }
 0x315   :  { %1454 = vmatpush1.bf16.msra.mxu1 %v7584_v63  ;;  %v7656_v63 = vld [vmem:[%s10051_s1 + $0xb4] ss:$8 sps:$4 sm:$0xff]  }
 0x316   :  { %1455 = vmatprep.subr.bf16.mxu1 %v7589_v0  ;;  %v7654_v0 = vld [vmem:[%s10051_s1 + $0xb0] ss:$8 sps:$4 sm:$0xff]  }
 0x319   :  { %1456 = vmatpush1.bf16.msra.mxu1 %v7587_v1  ;;  %v7659_v1 = vld [vmem:[%s10051_s1 + $0xc4] ss:$8 sps:$4 sm:$0xff]  }
 0x31a   :  { %1457 = vmatprep.subr.bf16.mxu1 %v7592_v2  ;;  %v7657_v2 = vld [vmem:[%s10051_s1 + $0xc0] ss:$8 sps:$4 sm:$0xff]  }
 0x31d   :  { %1458 = vmatpush1.bf16.msra.mxu1 %v7590_v3  ;;  %v7662_v3 = vld [vmem:[%s10051_s1 + $0xd4] ss:$8 sps:$4 sm:$0xff]  }
 0x31e   :  { %1459 = vmatprep.subr.bf16.mxu1 %v7595_v4  ;;  %v7660_v4 = vld [vmem:[%s10051_s1 + $0xd0] ss:$8 sps:$4 sm:$0xff]  }
 0x321   :  { %1460 = vmatpush1.bf16.msra.mxu1 %v7593_v5  ;;  %v7665_v5 = vld [vmem:[%s10051_s1 + $0xe4] ss:$8 sps:$4 sm:$0xff]  }
 0x322   :  { %1461 = vmatprep.subr.bf16.mxu1 %v7598_v6  ;;  %v7663_v6 = vld [vmem:[%s10051_s1 + $0xe0] ss:$8 sps:$4 sm:$0xff]  }
 0x325   :  { %1462 = vmatpush1.bf16.msra.mxu1 %v7596_v7 }
 0x326   :  { %1463 = vmatprep.subr.bf16.mxu1 %v7602_v8  ;;  %v7668_v8 = vld [vmem:[%s10051_s1 + $0xf4] ss:$8 sps:$4 sm:$0xff]  }
 0x329   :  { %1464 = vmatpush1.bf16.msra.mxu1 %v7600_v9 }
 0x32a   :  { %1465 = vmatprep.subr.bf16.mxu1 %v7605_v10 }
 0x32d   :  { %1466 = vmatpush1.bf16.msra.mxu1 %v7603_v11 }
 0x32e   :  { %1467 = vmatprep.subr.bf16.mxu1 %v7608_v12 }
 0x331   :  { %1468 = vmatpush1.bf16.msra.mxu1 %v7606_v13  ;;  %v7666_v13 = vld [vmem:[%s10051_s1 + $0xf0] ss:$8 sps:$4 sm:$0xff]  }
 0x332   :  { %1469 = vmatprep.subr.bf16.mxu1 %v7611_v14 }
 0x335   :  { %1470 = vmatpush1.bf16.msra.mxu1 %v7609_v15  ;;  %v7671_v15 = vld [vmem:[%s10051_s1 + $0x204] ss:$8 sps:$4 sm:$0xff]  }
 0x336   :  { %1471 = vmatprep.subr.bf16.mxu1 %v7614_v16  ;;  %v7669_v16 = vld [vmem:[%s10051_s1 + $0x200] ss:$8 sps:$4 sm:$0xff]  }
 0x339   :  { %1472 = vmatpush1.bf16.msra.mxu1 %v7612_v17  ;;  %v7674_v17 = vld [vmem:[%s10051_s1 + $0x214] ss:$8 sps:$4 sm:$0xff]  }
 0x33a   :  { %1473 = vmatprep.subr.bf16.mxu1 %v7617_v19  ;;  %v7677_v19 = vld [vmem:[%s10051_s1 + $0x224] ss:$8 sps:$4 sm:$0xff]  }
 0x33d   :  { %1474 = vmatpush1.bf16.msra.mxu1 %v7615_v18  ;;  %v7672_v18 = vld [vmem:[%s10051_s1 + $0x210] ss:$8 sps:$4 sm:$0xff]  }
 0x33e   :  { %1475 = vmatprep.subr.bf16.mxu1 %v7620_v20  ;;  %v2299_v20 = vld [vmem:[%s10052_s0 + $0x80] sm:$0xff] }
 0x341   :  { %1476 = vmatpush1.bf16.msra.mxu1 %v7618_v21  ;;  %v2300_v21 = vld [vmem:[%s10052_s0 + $0x88] sm:$0xff] }
 0x342   :  { %1648 = vmatprep.subr.bf16.mxu1 %v7623_v22  ;;  %v2283_v22 = vld [vmem:[%s10052_s0] sm:$0xff] }
 0x3cf   :  { %v9025_v23 = vpop.f32.mrb[12].mxu1  ;;  %v9031_v30 = vpop.f32.mrb[12].mxu0 }
 0x3d0   :  { %v1155_v24 = vpop.f32.mrb[13].mxu1  ;;  %v9033_v31 = vpop.f32.mrb[13].mxu0 }
 0x3d1   :  { %v9027_v26 = vpop.f32.mrb[14].mxu1  ;;  %v9035_v32 = vpop.f32.mrb[14].mxu0 }
 0x3d2   :  { %v1162_v27 = vpack.c.bf16 %v9027_v26, %v9025_v23  ;;  %v1159_v28 = vpop.f32.mrb[15].mxu1  ;;  %v1745_v33 = vpack.c.bf16 %v9035_v32, %v9031_v30  ;;  %v9039_v35 = vpop.f32.mrb[15].mxu0  ;;  %v9178_v23 = vpack.c.bf16 %v2300_v21, %v2299_v20  ;;  %v2301_v26 = vld [vmem:[%s10052_s0 + $0x90] sm:$0xff]  ;;  %v7723_v30 = vld [vmem:[%s10051_s1 + $0x320] ss:$8 sps:$4 sm:$0xff]  }
 0x3d3   :  { %v1163_v29 = vpack.c.bf16 %v1159_v28, %v1155_v24  ;;  %v1746_v37 = vpack.c.bf16 %v9039_v35, %v9033_v31  ;;  %v2284_v24 = vld [vmem:[%s10052_s0 + $0x8] sm:$0xff]  ;;  %v2285_v31 = vld [vmem:[%s10052_s0 + $0x10] sm:$0xff]  ;;  %v2303_v35 = vld [vmem:[%s10052_s0 + $0xa0] sm:$0xff] }
 0x3d4   :  { %v9189_v28 = vpack.c.bf16 %v2284_v24, %v2283_v22  ;;  %7047 = vmatprep.subr.bf16.mxu0 %v9178_v23  ;;  %v7728_v32 = vld [vmem:[%s10051_s1 + $0x334] ss:$8 sps:$4 sm:$0xff]   ;;  %v7737_v20 = vld [vmem:[%s10051_s1 + $0x364] ss:$8 sps:$4 sm:$0xff]   ;;  %v7735_v21 = vld [vmem:[%s10051_s1 + $0x360] ss:$8 sps:$4 sm:$0xff]  }
 0x3d5   :  { %v7740_v22 = vld [vmem:[%s10051_s1 + $0x374] ss:$8 sps:$4 sm:$0xff]   ;;  %v7738_v24 = vld [vmem:[%s10051_s1 + $0x370] ss:$8 sps:$4 sm:$0xff]  }
 0x3d6   :  { %7049 = vmatpush3.bf16.msra.mxu0 %v9189_v28 }
 0x3d7   :  { %v1241_v34 = vpop.f32.mrb[16].mxu1  ;;  %v9130_v7 = vpop.f32.mrb[16].mxu0 }
 0x3d8   :  { %v1243_v36 = vpop.f32.mrb[17].mxu1  ;;  %v9135_v9 = vpop.f32.mrb[17].mxu0 }
 0x3d9   :  { %v1245_v38 = vpop.f32.mrb[18].mxu1  ;;  %v9137_v10 = vpop.f32.mrb[18].mxu0 }
 0x3da   :  { %v1250_v39 = vpack.c.bf16 %v1245_v38, %v1241_v34  ;;  %v1247_v40 = vpop.f32.mrb[19].mxu1  ;;  %v2041_v11 = vpack.c.bf16 %v9137_v10, %v9130_v7  ;;  %v9141_v12 = vpop.f32.mrb[19].mxu0  ;;  %v2286_v34 = vld [vmem:[%s10052_s0 + $0x18] sm:$0xff]  ;;  %v7675_v38 = vld [vmem:[%s10051_s1 + $0x220] ss:$8 sps:$4 sm:$0xff]  }
 0x3db   :  { %v1251_v41 = vpack.c.bf16 %v1247_v40, %v1243_v36  ;;  %v2042_v14 = vpack.c.bf16 %v9141_v12, %v9135_v9  ;;  %v2304_v36 = vld [vmem:[%s10052_s0 + $0xa8] sm:$0xff]  ;;  %v2287_v40 = vld [vmem:[%s10052_s0 + $0x20] sm:$0xff] }
 0x3dc   :  { %v7731_v9 = vld [vmem:[%s10051_s1 + $0x344] ss:$8 sps:$4 sm:$0xff]   ;;  %v7729_v12 = vld [vmem:[%s10051_s1 + $0x340] ss:$8 sps:$4 sm:$0xff]  }
 0x3dd   :  { %1477 = vmatprep.mubr.bf16.mxu1 %v1251_v41  ;;  %v2288_v41 = vld [vmem:[%s10052_s0 + $0x28] sm:$0xff] }
 0x3de   :  { %1478 = vmatmul.mubr.bf16.vlgmr.msra.gmra.mrb[20].mxu1 %v1250_v39  ;;  %v9213_v39 = vpack.c.bf16 %v2304_v36, %v2303_v35  ;;  %v7749_v35 = vld [vmem:[%s10051_s1 + $0x3a4] ss:$8 sps:$4 sm:$0xff]   ;;  %v7747_v36 = vld [vmem:[%s10051_s1 + $0x3a0] ss:$8 sps:$4 sm:$0xff]  }
 0x3df   :  { %1649 = vmatpush1.bf16.msra.mxu1 %v7621_v42  ;;  %1680 = vmatprep.mubr.bf16.mxu1 %v1163_v29  ;;  %v7680_v42 = vld [vmem:[%s10051_s1 + $0x234] ss:$8 sps:$4 sm:$0xff]   ;;  %v2308_v7 = vld [vmem:[%s10052_s0 + $0xc8] sm:$0xff] }
 0x3e0   :  { %1650 = vmatprep.subr.bf16.mxu1 %v7626_v43  ;;  %v2305_v43 = vld [vmem:[%s10052_s0 + $0xb0] sm:$0xff] }
 0x3e3   :  { %1651 = vmatpush1.bf16.msra.mxu1 %v7624_v44  ;;  %v2306_v44 = vld [vmem:[%s10052_s0 + $0xb8] sm:$0xff] }
 0x3e4   :  { %1652 = vmatprep.subr.bf16.mxu1 %v7629_v45  ;;  %v9231_v45 = vpack.c.bf16 %v2288_v41, %v2287_v40  ;;  %v7750_v40 = vld [vmem:[%s10051_s1 + $0x3b0] ss:$8 sps:$4 sm:$0xff]   ;;  %v7755_v41 = vld [vmem:[%s10051_s1 + $0x3c4] ss:$8 sps:$4 sm:$0xff]  }
 0x3e7   :  { %1653 = vmatpush1.bf16.msra.mxu1 %v7627_v46  ;;  %v7678_v46 = vld [vmem:[%s10051_s1 + $0x230] ss:$8 sps:$4 sm:$0xff]  }
 0x3e8   :  { %1654 = vmatprep.subr.bf16.mxu1 %v7632_v47  ;;  %v9237_v47 = vpack.c.bf16 %v2306_v44, %v2305_v43  ;;  %v7758_v43 = vld [vmem:[%s10051_s1 + $0x3d4] ss:$8 sps:$4 sm:$0xff]   ;;  %v7756_v44 = vld [vmem:[%s10051_s1 + $0x3d0] ss:$8 sps:$4 sm:$0xff]  }
 0x3eb   :  { %1655 = vmatpush1.bf16.msra.mxu1 %v7630_v48  ;;  %v7683_v48 = vld [vmem:[%s10051_s1 + $0x244] ss:$8 sps:$4 sm:$0xff]  }
 0x3ec   :  { %1656 = vmatprep.subr.bf16.mxu1 %v7635_v49  ;;  %v7681_v49 = vld [vmem:[%s10051_s1 + $0x240] ss:$8 sps:$4 sm:$0xff]  }
 0x3ef   :  { %1657 = vmatpush1.bf16.msra.mxu1 %v7633_v50  ;;  %v7686_v50 = vld [vmem:[%s10051_s1 + $0x254] ss:$8 sps:$4 sm:$0xff]  }
 0x3f0   :  { %1658 = vmatprep.subr.bf16.mxu1 %v7638_v51  ;;  %v7684_v51 = vld [vmem:[%s10051_s1 + $0x250] ss:$8 sps:$4 sm:$0xff]  }
 0x3f3   :  { %1659 = vmatpush1.bf16.msra.mxu1 %v7636_v52  ;;  %v7689_v52 = vld [vmem:[%s10051_s1 + $0x264] ss:$8 sps:$4 sm:$0xff]  }
 0x3f4   :  { %1660 = vmatprep.subr.bf16.mxu1 %v7641_v53  ;;  %v7687_v53 = vld [vmem:[%s10051_s1 + $0x260] ss:$8 sps:$4 sm:$0xff]  }
 0x3f7   :  { %1661 = vmatpush1.bf16.msra.mxu1 %v7639_v54  ;;  %v7692_v54 = vld [vmem:[%s10051_s1 + $0x274] ss:$8 sps:$4 sm:$0xff]  }
 0x3f8   :  { %1662 = vmatprep.subr.bf16.mxu1 %v7644_v55  ;;  %v7690_v55 = vld [vmem:[%s10051_s1 + $0x270] ss:$8 sps:$4 sm:$0xff]  }
 0x3fb   :  { %1663 = vmatpush1.bf16.msra.mxu1 %v7642_v56  ;;  %v7695_v56 = vld [vmem:[%s10051_s1 + $0x284] ss:$8 sps:$4 sm:$0xff]  }
 0x3fc   :  { %1664 = vmatprep.subr.bf16.mxu1 %v7647_v57  ;;  %v7693_v57 = vld [vmem:[%s10051_s1 + $0x280] ss:$8 sps:$4 sm:$0xff]  }
 0x3ff   :  { %1665 = vmatpush1.bf16.msra.mxu1 %v7645_v58  ;;  %v7698_v58 = vld [vmem:[%s10051_s1 + $0x294] ss:$8 sps:$4 sm:$0xff]  }
 0x400   :  { %1666 = vmatprep.subr.bf16.mxu1 %v7650_v59  ;;  %v7696_v59 = vld [vmem:[%s10051_s1 + $0x290] ss:$8 sps:$4 sm:$0xff]  }
 0x403   :  { %1667 = vmatpush1.bf16.msra.mxu1 %v7648_v60  ;;  %v7701_v60 = vld [vmem:[%s10051_s1 + $0x2a4] ss:$8 sps:$4 sm:$0xff]  }
 0x404   :  { %1668 = vmatprep.subr.bf16.mxu1 %v7653_v61  ;;  %v7699_v61 = vld [vmem:[%s10051_s1 + $0x2a0] ss:$8 sps:$4 sm:$0xff]  }
 0x407   :  { %1669 = vmatpush1.bf16.msra.mxu1 %v7651_v62  ;;  %v7704_v62 = vld [vmem:[%s10051_s1 + $0x2b4] ss:$8 sps:$4 sm:$0xff]  }
 0x408   :  { %1670 = vmatprep.subr.bf16.mxu1 %v7656_v63  ;;  %v7702_v63 = vld [vmem:[%s10051_s1 + $0x2b0] ss:$8 sps:$4 sm:$0xff]  }
 0x40b   :  { %1671 = vmatpush1.bf16.msra.mxu1 %v7654_v0  ;;  %v7707_v0 = vld [vmem:[%s10051_s1 + $0x2c4] ss:$8 sps:$4 sm:$0xff]  }
 0x40c   :  { %1672 = vmatprep.subr.bf16.mxu1 %v7659_v1  ;;  %v7705_v1 = vld [vmem:[%s10051_s1 + $0x2c0] ss:$8 sps:$4 sm:$0xff]  }
 0x40f   :  { %1673 = vmatpush1.bf16.msra.mxu1 %v7657_v2  ;;  %v7710_v2 = vld [vmem:[%s10051_s1 + $0x2d4] ss:$8 sps:$4 sm:$0xff]  }
 0x410   :  { %1674 = vmatprep.subr.bf16.mxu1 %v7662_v3  ;;  %v7708_v3 = vld [vmem:[%s10051_s1 + $0x2d0] ss:$8 sps:$4 sm:$0xff]  }
 0x413   :  { %1675 = vmatpush1.bf16.msra.mxu1 %v7660_v4  ;;  %v7713_v4 = vld [vmem:[%s10051_s1 + $0x2e4] ss:$8 sps:$4 sm:$0xff]  }
 0x414   :  { %1676 = vmatprep.subr.bf16.mxu1 %v7665_v5  ;;  %v7711_v5 = vld [vmem:[%s10051_s1 + $0x2e0] ss:$8 sps:$4 sm:$0xff]  }
 0x417   :  { %1677 = vmatpush1.bf16.msra.mxu1 %v7663_v6  ;;  %v7716_v6 = vld [vmem:[%s10051_s1 + $0x2f4] ss:$8 sps:$4 sm:$0xff]  }
 0x418   :  { %1678 = vmatprep.subr.bf16.mxu1 %v7668_v8  ;;  %v7714_v8 = vld [vmem:[%s10051_s1 + $0x2f0] ss:$8 sps:$4 sm:$0xff]  }
 0x41b   :  { %1679 = vmatpush1.bf16.msra.mxu1 %v7666_v13  ;;  %v7719_v13 = vld [vmem:[%s10051_s1 + $0x304] ss:$8 sps:$4 sm:$0xff]  }
 0x41c   :  { %1940 = vmatprep.subr.bf16.mxu1 %v7671_v15  ;;  %v7717_v15 = vld [vmem:[%s10051_s1 + $0x300] ss:$8 sps:$4 sm:$0xff]  }
 0x41e   :  { %1681 = vmatmul.mubr.bf16.vlgmr.msra.gmra.mrb[20].mxu1 %v1162_v27  ;;  %v2302_v27 = vld [vmem:[%s10052_s0 + $0x98] sm:$0xff] }
 0x41f   :  { %1941 = vmatpush1.bf16.msra.mxu1 %v7669_v16  ;;  %1972 = vmatprep.mubr.bf16.mxu1 %v1746_v37  ;;  %v9191_v29 = vpack.c.bf16 %v2302_v27, %v2301_v26  ;;  %v9207_v37 = vpack.c.bf16 %v2286_v34, %v2285_v31  ;;  %v7722_v16 = vld [vmem:[%s10051_s1 + $0x314] ss:$8 sps:$4 sm:$0xff]   ;;  %v7743_v26 = vld [vmem:[%s10051_s1 + $0x384] ss:$8 sps:$4 sm:$0xff]   ;;  %v7741_v27 = vld [vmem:[%s10051_s1 + $0x380] ss:$8 sps:$4 sm:$0xff]  }
 0x420   :  { %1942 = vmatprep.subr.bf16.mxu1 %v7674_v17  ;;  %v7720_v17 = vld [vmem:[%s10051_s1 + $0x310] ss:$8 sps:$4 sm:$0xff]   ;;  %v7746_v31 = vld [vmem:[%s10051_s1 + $0x394] ss:$8 sps:$4 sm:$0xff]  }
 0x421   :  { %7051 = vmatprep.subr.bf16.mxu0 %v9191_v29  ;;  %v7744_v34 = vld [vmem:[%s10051_s1 + $0x390] ss:$8 sps:$4 sm:$0xff]  }
 0x422   :  { %7053 = vmatpush3.bf16.msra.mxu0 %v9207_v37 }
 0x423   :  { %1943 = vmatpush1.bf16.msra.mxu1 %v7672_v18  ;;  %7055 = vmatprep.subr.bf16.mxu0 %v9213_v39  ;;  %v7725_v18 = vld [vmem:[%s10051_s1 + $0x324] ss:$8 sps:$4 sm:$0xff]  }
 0x424   :  { %1944 = vmatprep.subr.bf16.mxu1 %v7677_v19  ;;  %v7732_v19 = vld [vmem:[%s10051_s1 + $0x350] ss:$8 sps:$4 sm:$0xff]  }
 0x426   :  { %7057 = vmatpush3.bf16.msra.mxu0 %v9231_v45 }
 0x427   :  { %1945 = vmatpush1.bf16.msra.mxu1 %v7675_v38  ;;  %7059 = vmatprep.subr.bf16.mxu0 %v9237_v47  ;;  %v7752_v38 = vld [vmem:[%s10051_s1 + $0x3b4] ss:$8 sps:$4 sm:$0xff]  }
 0x428   :  { %1946 = vmatprep.subr.bf16.mxu1 %v7680_v42  ;;  %v7753_v42 = vld [vmem:[%s10051_s1 + $0x3c0] ss:$8 sps:$4 sm:$0xff]  }
 0x42b   :  { %1947 = vmatpush1.bf16.msra.mxu1 %v7678_v46  ;;  %v7761_v46 = vld [vmem:[%s10051_s1 + $0x3e4] ss:$8 sps:$4 sm:$0xff]  }
 0x42c   :  { %1948 = vmatprep.subr.bf16.mxu1 %v7683_v48  ;;  %v7759_v48 = vld [vmem:[%s10051_s1 + $0x3e0] ss:$8 sps:$4 sm:$0xff]  }
 0x42f   :  { %1949 = vmatpush1.bf16.msra.mxu1 %v7681_v49  ;;  %v7764_v49 = vld [vmem:[%s10051_s1 + $0x3f4] ss:$8 sps:$4 sm:$0xff]  }
 0x430   :  { %1950 = vmatprep.subr.bf16.mxu1 %v7686_v50  ;;  %v7762_v50 = vld [vmem:[%s10051_s1 + $0x3f0] ss:$8 sps:$4 sm:$0xff]  }
 0x433   :  { %1951 = vmatpush1.bf16.msra.mxu1 %v7684_v51  ;;  %v2289_v51 = vld [vmem:[%s10052_s0 + $0x30] sm:$0xff] }
 0x434   :  { %1952 = vmatprep.subr.bf16.mxu1 %v7689_v52  ;;  %v2290_v52 = vld [vmem:[%s10052_s0 + $0x38] sm:$0xff] }
 0x437   :  { %1953 = vmatpush1.bf16.msra.mxu1 %v7687_v53  ;;  %v9424_v53 = vpack.c.bf16 %v2290_v52, %v2289_v51 }
 0x438   :  { %1954 = vmatprep.subr.bf16.mxu1 %v7692_v54  ;;  %v2307_v54 = vld [vmem:[%s10052_s0 + $0xc0] sm:$0xff] }
 0x439   :  { %7061 = vmatpush3.bf16.msra.mxu0 %v9424_v53  ;;  %v9433_v10 = vpack.c.bf16 %v2308_v7, %v2307_v54 }
 0x43b   :  { %1955 = vmatpush1.bf16.msra.mxu1 %v7690_v55  ;;  %v2292_v55 = vld [vmem:[%s10052_s0 + $0x48] sm:$0xff]  ;;  %7063 = vmatprep.subr.bf16.mxu0 %v9433_v10 }
 0x43c   :  { %1956 = vmatprep.subr.bf16.mxu1 %v7695_v56 }
 0x43f   :  { %1957 = vmatpush1.bf16.msra.mxu1 %v7693_v57  ;;  %v2309_v57 = vld [vmem:[%s10052_s0 + $0xd0] sm:$0xff] }
 0x440   :  { %1958 = vmatprep.subr.bf16.mxu1 %v7698_v58  ;;  %v2310_v58 = vld [vmem:[%s10052_s0 + $0xd8] sm:$0xff] }
 0x443   :  { %1959 = vmatpush1.bf16.msra.mxu1 %v7696_v59  ;;  %v7066_v59 = vpack.c.bf16 %v2310_v58, %v2309_v57 }
 0x444   :  { %1960 = vmatprep.subr.bf16.mxu1 %v7701_v60  ;;  %v2293_v60 = vld [vmem:[%s10052_s0 + $0x50] sm:$0xff] }
 0x447   :  { %1961 = vmatpush1.bf16.msra.mxu1 %v7699_v61  ;;  %v2294_v61 = vld [vmem:[%s10052_s0 + $0x58] sm:$0xff] }
 0x448   :  { %1962 = vmatprep.subr.bf16.mxu1 %v7704_v62  ;;  %v7068_v62 = vpack.c.bf16 %v2294_v61, %v2293_v60 }
 0x44b   :  { %1963 = vmatpush1.bf16.msra.mxu1 %v7702_v63  ;;  %v2311_v63 = vld [vmem:[%s10052_s0 + $0xe0] sm:$0xff] }
 0x44c   :  { %1964 = vmatprep.subr.bf16.mxu1 %v7707_v0  ;;  %v2312_v0 = vld [vmem:[%s10052_s0 + $0xe8] sm:$0xff] }
 0x44f   :  { %1965 = vmatpush1.bf16.msra.mxu1 %v7705_v1  ;;  %v7070_v1 = vpack.c.bf16 %v2312_v0, %v2311_v63 }
 0x450   :  { %1966 = vmatprep.subr.bf16.mxu1 %v7710_v2  ;;  %v2295_v2 = vld [vmem:[%s10052_s0 + $0x60] sm:$0xff] }
 0x453   :  { %1967 = vmatpush1.bf16.msra.mxu1 %v7708_v3  ;;  %v2296_v3 = vld [vmem:[%s10052_s0 + $0x68] sm:$0xff] }
 0x454   :  { %1968 = vmatprep.subr.bf16.mxu1 %v7713_v4  ;;  %v7072_v4 = vpack.c.bf16 %v2296_v3, %v2295_v2 }
 0x457   :  { %1969 = vmatpush1.bf16.msra.mxu1 %v7711_v5  ;;  %v2313_v5 = vld [vmem:[%s10052_s0 + $0xf0] sm:$0xff] }
 0x458   :  { %1970 = vmatprep.subr.bf16.mxu1 %v7716_v6  ;;  %v2314_v6 = vld [vmem:[%s10052_s0 + $0xf8] sm:$0xff] }
 0x45b   :  { %1971 = vmatpush1.bf16.msra.mxu1 %v7714_v8  ;;  %v7074_v8 = vpack.c.bf16 %v2314_v6, %v2313_v5 }
 0x45c   :  { %2236 = vmatprep.subr.bf16.mxu1 %v7719_v13  ;;  %v2297_v13 = vld [vmem:[%s10052_s0 + $0x70] sm:$0xff] }
 0x45e   :  { %1973 = vmatmul.mubr.bf16.vlgmr.msra.gmra.mrb[20].mxu1 %v1745_v33  ;;  %v7726_v33 = vld [vmem:[%s10051_s1 + $0x330] ss:$8 sps:$4 sm:$0xff]  }
 0x45f   :  { %2237 = vmatpush1.bf16.msra.mxu1 %v7717_v15  ;;  %2268 = vmatprep.mubr.bf16.mxu1 %v2042_v14  ;;  %v7734_v14 = vld [vmem:[%s10051_s1 + $0x354] ss:$8 sps:$4 sm:$0xff]  }
 0x460   :  { %2238 = vmatprep.subr.bf16.mxu1 %v7722_v16  ;;  %v2298_v15 = vld [vmem:[%s10052_s0 + $0x78] sm:$0xff] }
 0x461   :  { %v7076_v16 = vpack.c.bf16 %v2298_v15, %v2297_v13 }
 0x463   :  { %2239 = vmatpush1.bf16.msra.mxu1 %v7720_v17  ;;  %v2316_v17 = vld [vmem:[#allocation4 + $0x8] sm:$0xff] }
 0x464   :  { %2240 = vmatprep.subr.bf16.mxu1 %v7725_v18  ;;  %v2318_v18 = vld [vmem:[#allocation4 + $0x18] sm:$0xff] }
 0x467   :  { %2241 = vmatpush1.bf16.msra.mxu1 %v7723_v30  ;;  %v2315_v30 = vld [vmem:[#allocation4] sm:$0xff] }
 0x468   :  { %2242 = vmatprep.subr.bf16.mxu1 %v7728_v32  ;;  %v9482_v32 = vpack.c.bf16 %v2318_v18, %v2316_v17 }
 0x46b   :  { %2243 = vmatpush1.bf16.msra.mxu1 %v7726_v33  ;;  %v2317_v33 = vld [vmem:[#allocation4 + $0x10] sm:$0xff] }
 0x46c   :  { %2244 = vmatprep.subr.bf16.mxu1 %v7731_v9  ;;  %v9484_v9 = vpack.c.bf16 %v2317_v33, %v2315_v30 }
 0x46f   :  { %2245 = vmatpush1.bf16.msra.mxu1 %v7729_v12 }
 0x470   :  { %2246 = vmatprep.subr.bf16.mxu1 %v7734_v14 }
 0x473   :  { %2247 = vmatpush1.bf16.msra.mxu1 %v7732_v19 }
 0x474   :  { %2248 = vmatprep.subr.bf16.mxu1 %v7737_v20 }
 0x477   :  { %2249 = vmatpush1.bf16.msra.mxu1 %v7735_v21 }
 0x478   :  { %2250 = vmatprep.subr.bf16.mxu1 %v7740_v22 }
 0x47b   :  { %2251 = vmatpush1.bf16.msra.mxu1 %v7738_v24 }
 0x47c   :  { %2252 = vmatprep.subr.bf16.mxu1 %v7743_v26 }
 0x47f   :  { %2253 = vmatpush1.bf16.msra.mxu1 %v7741_v27 }
 0x480   :  { %2254 = vmatprep.subr.bf16.mxu1 %v7746_v31 }
 0x483   :  { %2255 = vmatpush1.bf16.msra.mxu1 %v7744_v34 }
 0x484   :  { %2256 = vmatprep.subr.bf16.mxu1 %v7749_v35 }
 0x487   :  { %2257 = vmatpush1.bf16.msra.mxu1 %v7747_v36 }
 0x488   :  { %2258 = vmatprep.subr.bf16.mxu1 %v7752_v38 }
 0x48b   :  { %2259 = vmatpush1.bf16.msra.mxu1 %v7750_v40 }
 0x48c   :  { %2260 = vmatprep.subr.bf16.mxu1 %v7755_v41 }
 0x48f   :  { %2261 = vmatpush1.bf16.msra.mxu1 %v7753_v42 }
 0x490   :  { %2262 = vmatprep.subr.bf16.mxu1 %v7758_v43  ;;  %v8432_v43 = vmov 0.0  }
 0x493   :  { %2263 = vmatpush1.bf16.msra.mxu1 %v7756_v44 }
 0x494   :  { %2264 = vmatprep.subr.bf16.mxu1 %v7761_v46 }
 0x497   :  { %2265 = vmatpush1.bf16.msra.mxu1 %v7759_v48 }
 0x498   :  { %2266 = vmatprep.subr.bf16.mxu1 %v7764_v49 }
 0x49b   :  { %2267 = vmatpush1.bf16.msra.mxu1 %v7762_v50  ;;  %v2482_v50 = vlaneseq }
 0x49c   :  { %7079 = vmatprep.subr.bf16.mxu1 %v9482_v32 }
 0x49d   :  { %v2483_v51 = vshrl.u32 %v2482_v50, 7 }
 0x49e   :  { %2269 = vmatmul.mubr.bf16.vlgmr.msra.gmra.mrb[20].mxu1 %v2041_v11  ;;  %v2291_v11 = vld [vmem:[%s10052_s0 + $0x40] sm:$0xff] }
 0x49f   :  { %v9441_v56 = vpack.c.bf16 %v2292_v55, %v2291_v11  ;;  %7081 = vmatpush1.bf16.msra.mxu1 %v9484_v9  ;;  %2475 = vmatprep.mubr.f32.mxu1 %v8432_v43  ;;  %v9501_v52 = vsub.s32 0, %v2483_v51 }
 0x4a1   :  { %7065 = vmatpush3.bf16.msra.mxu0 %v9441_v56 }
 0x4a2   :  { %7067 = vmatprep.subr.bf16.mxu0 %v7066_v59 }
 0x4a5   :  { %7069 = vmatpush3.bf16.msra.mxu0 %v7068_v62 }
 0x4a6   :  { %7071 = vmatprep.subr.bf16.mxu0 %v7070_v1 }
 0x4a9   :  { %7073 = vmatpush3.bf16.msra.mxu0 %v7072_v4 }
 0x4aa   :  { %7075 = vmatprep.subr.bf16.mxu0 %v7074_v8 }
 0x4ad   :  { %7077 = vmatpush3.bf16.msra.mxu0 %v7076_v16 }
 0x4ae   :  { %7087 = vmatprep.subr.bf16.mxu0 %v9178_v23 }
 0x571   :  { %v2270_v12 = vpop.f32.mrb[20].mxu1 }
 0x572   :  { %v2272_v14 = vpop.f32.mrb[21].mxu1 }
 0x573   :  { %v2274_v19 = vpop.f32.mrb[22].mxu1 }
 0x574   :  { %v2323_v20 = vadd.f32 %v2274_v19, %v2270_v12  ;;  %v2276_v21 = vpop.f32.mrb[23].mxu1 }
 0x575   :  { %v2330_v22 = vadd.f32 %v2276_v21, %v2272_v14 }
 0x576   :  { %v2324_v24 = vrot.slane %v2323_v20, 4 }
 0x577   :  { %v2331_v23 = vrot.slane %v2330_v22, 4 }
 0x578   :  { %v2325_v26 = vadd.f32 %v2324_v24, %v2323_v20 }
 0x579   :  { %v2332_v27 = vadd.f32 %v2331_v23, %v2330_v22 }
 0x57a   :  { %v2326_v31 = vrot.slane %v2325_v26, 2 }
 0x57b   :  { %v2333_v34 = vrot.slane %v2332_v27, 2 }
 0x57c   :  { %v2327_v35 = vadd.f32 %v2326_v31, %v2325_v26 }
 0x57d   :  { %v2334_v36 = vadd.f32 %v2333_v34, %v2332_v27 }
 0x57e   :  { %v2328_v38 = vrot.slane %v2327_v35, 1 }
 0x57f   :  { %v2335_v40 = vrot.slane %v2334_v36, 1 }
 0x580   :  { %v2329_v42 = vadd.f32 %v2328_v38, %v2327_v35 }
 0x581   :  { %v2336_v41 = vadd.f32 %v2335_v40, %v2334_v36 }
 0x583   :  { %2401 = vmatprep.mubr.f32.mxu0 %v2336_v41 }
 0x584   :  { %2402 = vmatmul.mubr.f32.vlgmr.msra.gmra.mrb[20].mxu0 %v2329_v42 }
 0x585   :  { %7089 = vmatpush3.bf16.msra.mxu0 %v9189_v28  ;;  %v2320_v28 = vld [vmem:[#allocation4 + $0x28] sm:$0xff] }
 0x586   :  { %7091 = vmatprep.subr.bf16.mxu0 %v9191_v29  ;;  %v2322_v29 = vld [vmem:[#allocation4 + $0x38] sm:$0xff] }
 0x589   :  { %7093 = vmatpush3.bf16.msra.mxu0 %v9207_v37  ;;  %v7082_v37 = vpack.c.bf16 %v2322_v29, %v2320_v28 }
 0x58a   :  { %7095 = vmatprep.subr.bf16.mxu0 %v9213_v39  ;;  %v2319_v39 = vld [vmem:[#allocation4 + $0x20] sm:$0xff] }
 0x58b   :  { %7083 = vmatprep.subr.bf16.mxu1 %v7082_v37 }
 0x58d   :  { %7097 = vmatpush3.bf16.msra.mxu0 %v9231_v45  ;;  %v2321_v45 = vld [vmem:[#allocation4 + $0x30] sm:$0xff] }
 0x58e   :  { %7099 = vmatprep.subr.bf16.mxu0 %v9237_v47  ;;  %v7084_v47 = vpack.c.bf16 %v2321_v45, %v2319_v39 }
 0x590   :  { %7085 = vmatpush1.bf16.msra.mxu1 %v7084_v47 }
 0x591   :  { %7101 = vmatpush3.bf16.msra.mxu0 %v9424_v53 }
 0x592   :  { %7103 = vmatprep.subr.bf16.mxu0 %v9433_v10 }
 0x595   :  { %7105 = vmatpush3.bf16.msra.mxu0 %v9441_v56 }
 0x596   :  { %7107 = vmatprep.subr.bf16.mxu0 %v7066_v59 }
 0x599   :  { %7109 = vmatpush3.bf16.msra.mxu0 %v7068_v62 }
 0x59a   :  { %7111 = vmatprep.subr.bf16.mxu0 %v7070_v1 }
 0x59d   :  { %7113 = vmatpush3.bf16.msra.mxu0 %v7072_v4 }
 0x59e   :  { %7115 = vmatprep.subr.bf16.mxu0 %v7074_v8 }
 0x5a1   :  { %7117 = vmatpush3.bf16.msra.mxu0 %v7076_v16 }
 0x5a2   :  { %7119 = vmatprep.subr.bf16.mxu0 %v9482_v32 }
 0x657   :  { %v6820_v44 = vpop.f32.mrb[20].mxu0 }
 0x658   :  { %v6821_v46 = vpop.f32.mrb[21].mxu0 }
 0x659   :  { %v6822_v48 = vadd.f32 %v6821_v46, %v6820_v44 }
 0x65b   :  { %v2407_v49 = vmul.f32 0.0078125, %v6822_v48 }
 0x65d   :  { %6480 = vmatmul.mubr.msk.f32.vlgmr.msra.gmra.mrb[24].mxu1 %vm1115_vm10, %v2407_v49 }
 0x65e   :  { %3374 = vmatprep.mubr.bf16.mxu1 %v8431_v25 }
 0x730   :  { %v2477_v53 = vpop.f32.mrb[24].mxu1 }
 0x731   :  { %v2485_v54 = vrot.slane %v2477_v53, %v9501_v52  ;;  %v2479_v7 = vpop.f32.mrb[25].mxu1  ;;  %v2774_v53 = vld [vmem:[%s10014_s9] sm:$0xf] }
 0x732   :  { %v2489_v10 = vrot.slane %v2479_v7, %v9501_v52  ;;  %v7767_v7 = vld [vmem:[#allocation6 + $0x104] ss:$8 sps:$4 sm:$0xff]  }
 0x733   :  { %v2490_v11 = vsub.f32 %v2270_v12, %v2485_v54  ;;  %v2492_v55 = vsub.f32 %v2274_v19, %v2485_v54  ;;  %v2583_v19 = vld [vmem:[%s10053_s25] sm:$0x1]  ;;  %v6550_v54 = vld [vmem:[%s10014_s9 + $0x8] sm:$0xf] }
 0x734   :  { %v2491_v56 = vsub.f32 %v2272_v14, %v2489_v10  ;;  %v2493_v57 = vsub.f32 %v2276_v21, %v2489_v10  ;;  %v6484_v10 = vld [vmem:[%s10014_s9 + $0x4] sm:$0xf] }
 0x735   :  { %v2494_v58 = vmul.f32 %v2490_v11, %v2490_v11  ;;  %v2496_v59 = vmul.f32 %v2492_v55, %v2492_v55 }
 0x736   :  { %v2495_v60 = vmul.f32 %v2491_v56, %v2491_v56  ;;  %v2497_v61 = vmul.f32 %v2493_v57, %v2493_v57 }
 0x737   :  { %v2498_v62 = vadd.f32 %v2496_v59, %v2494_v58  ;;  %v7773_v58 = vld [vmem:[#allocation6 + $0x124] ss:$8 sps:$4 sm:$0xff]   ;;  %v7771_v59 = vld [vmem:[#allocation6 + $0x120] ss:$8 sps:$4 sm:$0xff]  }
 0x738   :  { %v2505_v63 = vadd.f32 %v2497_v61, %v2495_v60  ;;  %v7776_v60 = vld [vmem:[#allocation6 + $0x134] ss:$8 sps:$4 sm:$0xff]   ;;  %v7774_v61 = vld [vmem:[#allocation6 + $0x130] ss:$8 sps:$4 sm:$0xff]  }
 0x739   :  { %v2499_v0 = vrot.slane %v2498_v62, 4 }
 0x73a   :  { %v2506_v1 = vrot.slane %v2505_v63, 4 }
 0x73b   :  { %v2500_v2 = vadd.f32 %v2499_v0, %v2498_v62  ;;  %v7779_v62 = vld [vmem:[#allocation6 + $0x144] ss:$8 sps:$4 sm:$0xff]   ;;  %v7782_v0 = vld [vmem:[#allocation6 + $0x154] ss:$8 sps:$4 sm:$0xff]  }
 0x73c   :  { %v2507_v3 = vadd.f32 %v2506_v1, %v2505_v63  ;;  %v7777_v63 = vld [vmem:[#allocation6 + $0x140] ss:$8 sps:$4 sm:$0xff]   ;;  %v7780_v1 = vld [vmem:[#allocation6 + $0x150] ss:$8 sps:$4 sm:$0xff]  }
 0x73d   :  { %v2501_v4 = vrot.slane %v2500_v2, 2 }
 0x73e   :  { %v2508_v5 = vrot.slane %v2507_v3, 2 }
 0x73f   :  { %v2502_v6 = vadd.f32 %v2501_v4, %v2500_v2  ;;  %v7785_v2 = vld [vmem:[#allocation6 + $0x164] ss:$8 sps:$4 sm:$0xff]   ;;  %v7788_v4 = vld [vmem:[#allocation6 + $0x174] ss:$8 sps:$4 sm:$0xff]  }
 0x740   :  { %v2509_v8 = vadd.f32 %v2508_v5, %v2507_v3  ;;  %v7783_v3 = vld [vmem:[#allocation6 + $0x160] ss:$8 sps:$4 sm:$0xff]   ;;  %v7786_v5 = vld [vmem:[#allocation6 + $0x170] ss:$8 sps:$4 sm:$0xff]  }
 0x741   :  { %v2503_v13 = vrot.slane %v2502_v6, 1 }
 0x742   :  { %v2510_v15 = vrot.slane %v2509_v8, 1 }
 0x743   :  { %v2504_v17 = vadd.f32 %v2503_v13, %v2502_v6  ;;  %v7791_v6 = vld [vmem:[#allocation6 + $0x184] ss:$8 sps:$4 sm:$0xff]   ;;  %v7794_v13 = vld [vmem:[#allocation6 + $0x194] ss:$8 sps:$4 sm:$0xff]  }
 0x744   :  { %v2511_v16 = vadd.f32 %v2510_v15, %v2509_v8  ;;  %v7789_v8 = vld [vmem:[#allocation6 + $0x180] ss:$8 sps:$4 sm:$0xff]   ;;  %v7792_v15 = vld [vmem:[#allocation6 + $0x190] ss:$8 sps:$4 sm:$0xff]  }
 0x746   :  { %2576 = vmatprep.mubr.f32.mxu0 %v2511_v16  ;;  %v7797_v16 = vld [vmem:[#allocation6 + $0x1a4] ss:$8 sps:$4 sm:$0xff]  }
 0x747   :  { %2577 = vmatmul.mubr.f32.vlgmr.msra.gmra.mrb[22].mxu0 %v2504_v17  ;;  %v7795_v17 = vld [vmem:[#allocation6 + $0x1a0] ss:$8 sps:$4 sm:$0xff]  }
 0x748   :  { %7121 = vmatpush1.bf16.msra.mxu0 %v9484_v9  ;;  %2654 = vmatprep.mubr.f32.mxu0 %v8432_v43 }
 0x749   :  { %7123 = vmatprep.subr.bf16.mxu0 %v7082_v37 }
 0x74c   :  { %7125 = vmatpush1.bf16.msra.mxu0 %v7084_v47 }
 0x74d   :  { %7127 = vmatprep.subr.bf16.mxu0 %v9482_v32  ;;  %v2673_v32 = vld [vmem:[%s10013_s8] sm:$0x1]  ;;  %s10055_s8 = sld [smem:[#allocation34_spill]] }
 0x81a   :  { %v6855_v18 = vpop.f32.mrb[22].mxu0 }
 0x81b   :  { %v6856_v30 = vpop.f32.mrb[23].mxu0 }
 0x81c   :  { %v6857_v33 = vadd.f32 %v6856_v30, %v6855_v18  ;;  %v7800_v18 = vld [vmem:[#allocation6 + $0x1b4] ss:$8 sps:$4 sm:$0xff]   ;;  %v7798_v30 = vld [vmem:[#allocation6 + $0x1b0] ss:$8 sps:$4 sm:$0xff]  }
 0x81e   :  { %v2582_v12 = vmul.f32 0.0078125, %v6857_v33  ;;  %v7803_v33 = vld [vmem:[#allocation6 + $0x1c4] ss:$8 sps:$4 sm:$0xff]  }
 0x820   :  { %v2584_v14 = vadd.f32 1e-05, %v2582_v12  ;;  %v7801_v12 = vld [vmem:[#allocation6 + $0x1c0] ss:$8 sps:$4 sm:$0xff]  }
 0x822   :  { %8150 = vrsqrt.f32 %v2584_v14  ;;  %v7806_v14 = vld [vmem:[#allocation6 + $0x1d4] ss:$8 sps:$4 sm:$0xff]  }
 0x82c   :  { %v8151_v20 = vpop.eup %8150 }
 0x82d   :  { %v2586_v21 = vmul.f32 %v8151_v20, %v2583_v19  ;;  %v7804_v19 = vld [vmem:[#allocation6 + $0x1d0] ss:$8 sps:$4 sm:$0xff]   ;;  %v7809_v20 = vld [vmem:[#allocation6 + $0x1e4] ss:$8 sps:$4 sm:$0xff]  }
 0x82f   :  { %6481 = vmatmul.mubr.msk.f32.vlgmr.msra.gmra.mrb[24].mxu0 %vm1115_vm10, %v2586_v21  ;;  %v7807_v21 = vld [vmem:[#allocation6 + $0x1e0] ss:$8 sps:$4 sm:$0xff]  }
 0x830   :  { %7129 = vmatpush1.bf16.msra.mxu0 %v9484_v9  ;;  %2741 = vmatprep.mubr.f32.mxu0 %v8432_v43 }
 0x831   :  { %7131 = vmatprep.subr.bf16.mxu0 %v7082_v37 }
 0x834   :  { %7133 = vmatpush1.bf16.msra.mxu0 %v7084_v47 }
 0x837   :  { %6482 = vmatmul.mubr.msk.f32.vlgmr.msra.gmra.mrb[26].mxu0 %vm1115_vm10, %v2673_v32  ;;  %v7812_v32 = vld [vmem:[#allocation6 + $0x1f4] ss:$8 sps:$4 sm:$0xff]  }
 0x838   :  { %2811 = vmatprep.mubr.bf16.mxu0 %v8431_v25 }
 0x902   :  { %v2656_v22 = vpop.f32.mrb[24].mxu0 }
 0x903   :  { %v2658_v24 = vpop.f32.mrb[25].mxu0  ;;  %v2664_v23 = vrot.slane %v2656_v22, %v9501_v52  ;;  %v7810_v22 = vld [vmem:[#allocation6 + $0x1f0] ss:$8 sps:$4 sm:$0xff]  }
 0x904   :  { %v2668_v26 = vrot.slane %v2658_v24, %v9501_v52  ;;  %v7815_v24 = vld [vmem:[#allocation6 + $0x4] ss:$8 sps:$4 sm:$0xff]  }
 0x905   :  { %v2669_v9 = vmul.f32 %v2664_v23, %v2490_v11  ;;  %v2671_v31 = vmul.f32 %v2664_v23, %v2492_v55  ;;  %v7765_v11 = vld [vmem:[#allocation6 + $0x100] ss:$8 sps:$4 sm:$0xff]   ;;  %v6584_v55 = vld [vmem:[%s10014_s9 + $0xc] sm:$0xf] }
 0x906   :  { %v2670_v36 = vmul.f32 %v2668_v26, %v2491_v56  ;;  %v2672_v38 = vmul.f32 %v2668_v26, %v2493_v57  ;;  %v7770_v56 = vld [vmem:[#allocation6 + $0x114] ss:$8 sps:$4 sm:$0xff]   ;;  %v7768_v57 = vld [vmem:[#allocation6 + $0x110] ss:$8 sps:$4 sm:$0xff]  }
 0x90a   :  { %v2743_v27 = vpop.f32.mrb[26].mxu0 }
 0x90b   :  { %v2751_v34 = vrot.slane %v2743_v27, %v9501_v52  ;;  %v2745_v35 = vpop.f32.mrb[27].mxu0 }
 0x90c   :  { %v2755_v40 = vrot.slane %v2745_v35, %v9501_v52 }
 0x90d   :  { %v2756_v41 = vadd.f32 %v2751_v34, %v2669_v9  ;;  %v2758_v42 = vadd.f32 %v2751_v34, %v2671_v31 }
 0x90e   :  { %v2757_v28 = vadd.f32 %v2755_v40, %v2670_v36  ;;  %v2759_v29 = vadd.f32 %v2755_v40, %v2672_v38 }
 0x90f   :  { %vm2760_vm11 = vcmp.ge.f32.partialorder %v2756_v41, 0.0  ;;  %vm2762_vm12 = vcmp.ge.f32.partialorder %v2758_v42, 0.0  ;;  %v2764_v37 = vmul.f32 0.2, %v2756_v41  ;;  %v2766_v39 = vmul.f32 0.2, %v2758_v42 }
 0x910   :  { %vm2761_vm13 = vcmp.ge.f32.partialorder %v2757_v28, 0.0  ;;  %vm2763_vm14 = vcmp.ge.f32.partialorder %v2759_v29, 0.0  ;;  %v2765_v45 = vmul.f32 0.2, %v2757_v28  ;;  %v2767_v47 = vmul.f32 0.2, %v2759_v29 }
 0x911   :  { %v2768_v44 = vsel %vm2760_vm11, %v2756_v41, %v2764_v37  ;;  %v2770_v46 = vsel %vm2762_vm12, %v2758_v42, %v2766_v39  ;;  %v7818_v39 = vld [vmem:[#allocation6 + $0x14] ss:$8 sps:$4 sm:$0xff]  }
 0x912   :  { %v2769_v48 = vsel %vm2761_vm13, %v2757_v28, %v2765_v45  ;;  %v2771_v49 = vsel %vm2763_vm14, %v2759_v29, %v2767_v47  ;;  %v2772_v50 = vpack.c.bf16 %v2770_v46, %v2768_v44  ;;  %v7813_v28 = vld [vmem:[#allocation6] ss:$8 sps:$4 sm:$0xff]   ;;  %v7816_v47 = vld [vmem:[#allocation6 + $0x10] ss:$8 sps:$4 sm:$0xff]   ;;  %v7821_v44 = vld [vmem:[#allocation6 + $0x24] ss:$8 sps:$4 sm:$0xff]  }
 0x913   :  { %v2773_v51 = vpack.c.bf16 %v2771_v49, %v2769_v48  ;;  %v7819_v46 = vld [vmem:[#allocation6 + $0x20] ss:$8 sps:$4 sm:$0xff]   ;;  %v7824_v48 = vld [vmem:[#allocation6 + $0x34] ss:$8 sps:$4 sm:$0xff]   ;;  %v7822_v49 = vld [vmem:[#allocation6 + $0x30] ss:$8 sps:$4 sm:$0xff]  }
 0x915   :  { %2779 = vmatprep.subr.bf16.mxu0 %v2773_v51  ;;  %3342 = vmatprep.subr.bf16.mxu1 %v2773_v51 }
 0x916   :  { %2780 = vmatpush1.bf16.msra.mxu0 %v2772_v50  ;;  %3343 = vmatpush1.bf16.msra.mxu1 %v2772_v50 }
 0x917   :  { %2859 = vmatprep.subr.bf16.mxu0 %v2773_v51  ;;  %3626 = vmatprep.subr.bf16.mxu1 %v2773_v51  ;;  %v7825_v51 = vld [vmem:[#allocation6 + $0x40] ss:$8 sps:$4 sm:$0xff]  }
 0x919   :  { %6483 = vmatmul.mubr.msk.bf16.vlgmr.msra.gmra.mrb[28].mxu0 %vm2775_vm15, %v2774_v53  ;;  %6551 = vmatmul.mubr.msk.bf16.vlgmr.msra.gmra.mrb[28].mxu1 %vm2775_vm15, %v6550_v54  ;;  %v7830_v53 = vld [vmem:[#allocation6 + $0x54] ss:$8 sps:$4 sm:$0xff]   ;;  %v7828_v54 = vld [vmem:[#allocation6 + $0x50] ss:$8 sps:$4 sm:$0xff]  }
 0x91a   :  { %2860 = vmatpush1.bf16.msra.mxu0 %v2772_v50  ;;  %3627 = vmatpush1.bf16.msra.mxu1 %v2772_v50  ;;  %v7827_v50 = vld [vmem:[#allocation6 + $0x44] ss:$8 sps:$4 sm:$0xff]  }
 0x91b   :  { %2891 = vmatprep.mubr.bf16.mxu0 %v8431_v25  ;;  %3095 = vmatprep.subr.bf16.mxu0 %v7767_v7  ;;  %v7833_v7 = vld [vmem:[#allocation6 + $0x64] ss:$8 sps:$4 sm:$0xff]  }
 0x91c   :  { %3658 = vmatprep.mubr.bf16.mxu1 %v8431_v25 }
 0x921   :  { %6485 = vmatmul.mubr.msk.bf16.vlgmr.msra.gmra.mrb[32].mxu0 %vm2775_vm15, %v6484_v10  ;;  %6585 = vmatmul.mubr.msk.bf16.vlgmr.msra.gmra.mrb[32].mxu1 %vm2775_vm15, %v6584_v55  ;;  %v7831_v10 = vld [vmem:[#allocation6 + $0x60] ss:$8 sps:$4 sm:$0xff]   ;;  %v7834_v55 = vld [vmem:[#allocation6 + $0x70] ss:$8 sps:$4 sm:$0xff]  }
 0x922   :  { %3096 = vmatpush1.bf16.msra.mxu0 %v7765_v11  ;;  %4103 = vmatprep.mubr.f32.mxu1 %v8432_v43  ;;  %v7836_v11 = vld [vmem:[#allocation6 + $0x74] ss:$8 sps:$4 sm:$0xff]  }
 0x923   :  { %3097 = vmatprep.subr.bf16.mxu0 %v7770_v56  ;;  %v7839_v56 = vld [vmem:[#allocation6 + $0x84] ss:$8 sps:$4 sm:$0xff]  }
 0x926   :  { %3098 = vmatpush1.bf16.msra.mxu0 %v7768_v57  ;;  %v7837_v57 = vld [vmem:[#allocation6 + $0x80] ss:$8 sps:$4 sm:$0xff]  }
 0x927   :  { %3099 = vmatprep.subr.bf16.mxu0 %v7773_v58  ;;  %v7842_v58 = vld [vmem:[#allocation6 + $0x94] ss:$8 sps:$4 sm:$0xff]  }
 0x92a   :  { %3100 = vmatpush1.bf16.msra.mxu0 %v7771_v59  ;;  %v7840_v59 = vld [vmem:[#allocation6 + $0x90] ss:$8 sps:$4 sm:$0xff]  }
 0x92b   :  { %3101 = vmatprep.subr.bf16.mxu0 %v7776_v60  ;;  %v7845_v60 = vld [vmem:[#allocation6 + $0xa4] ss:$8 sps:$4 sm:$0xff]  }
 0x92e   :  { %3102 = vmatpush1.bf16.msra.mxu0 %v7774_v61  ;;  %v7843_v61 = vld [vmem:[#allocation6 + $0xa0] ss:$8 sps:$4 sm:$0xff]  }
 0x92f   :  { %3103 = vmatprep.subr.bf16.mxu0 %v7779_v62  ;;  %v7848_v62 = vld [vmem:[#allocation6 + $0xb4] ss:$8 sps:$4 sm:$0xff]  }
 0x932   :  { %3104 = vmatpush1.bf16.msra.mxu0 %v7777_v63  ;;  %v7846_v63 = vld [vmem:[#allocation6 + $0xb0] ss:$8 sps:$4 sm:$0xff]  }
 0x933   :  { %3105 = vmatprep.subr.bf16.mxu0 %v7782_v0  ;;  %v7851_v0 = vld [vmem:[#allocation6 + $0xc4] ss:$8 sps:$4 sm:$0xff]  }
 0x936   :  { %3106 = vmatpush1.bf16.msra.mxu0 %v7780_v1  ;;  %v7849_v1 = vld [vmem:[#allocation6 + $0xc0] ss:$8 sps:$4 sm:$0xff]  }
 0x937   :  { %3107 = vmatprep.subr.bf16.mxu0 %v7785_v2  ;;  %v7854_v2 = vld [vmem:[#allocation6 + $0xd4] ss:$8 sps:$4 sm:$0xff]  }
 0x93a   :  { %3108 = vmatpush1.bf16.msra.mxu0 %v7783_v3  ;;  %v7852_v3 = vld [vmem:[#allocation6 + $0xd0] ss:$8 sps:$4 sm:$0xff]  }
 0x93b   :  { %3109 = vmatprep.subr.bf16.mxu0 %v7788_v4  ;;  %v7857_v4 = vld [vmem:[#allocation6 + $0xe4] ss:$8 sps:$4 sm:$0xff]  }
 0x93e   :  { %3110 = vmatpush1.bf16.msra.mxu0 %v7786_v5  ;;  %v7855_v5 = vld [vmem:[#allocation6 + $0xe0] ss:$8 sps:$4 sm:$0xff]  }
 0x93f   :  { %3111 = vmatprep.subr.bf16.mxu0 %v7791_v6 }
 0x942   :  { %3112 = vmatpush1.bf16.msra.mxu0 %v7789_v8  ;;  %v7860_v8 = vld [vmem:[#allocation6 + $0xf4] ss:$8 sps:$4 sm:$0xff]  }
 0x943   :  { %3113 = vmatprep.subr.bf16.mxu0 %v7794_v13 }
 0x946   :  { %3114 = vmatpush1.bf16.msra.mxu0 %v7792_v15 }
 0x947   :  { %3115 = vmatprep.subr.bf16.mxu0 %v7797_v16 }
 0x94a   :  { %3116 = vmatpush1.bf16.msra.mxu0 %v7795_v17  ;;  %v7858_v17 = vld [vmem:[#allocation6 + $0xf0] ss:$8 sps:$4 sm:$0xff]  }
 0x94b   :  { %3117 = vmatprep.subr.bf16.mxu0 %v7800_v18  ;;  %v7863_v18 = vld [vmem:[#allocation6 + $0x204] ss:$8 sps:$4 sm:$0xff]  }
 0x94e   :  { %3118 = vmatpush1.bf16.msra.mxu0 %v7798_v30  ;;  %v7861_v30 = vld [vmem:[#allocation6 + $0x200] ss:$8 sps:$4 sm:$0xff]  }
 0x94f   :  { %3119 = vmatprep.subr.bf16.mxu0 %v7803_v33 }
 0x952   :  { %3120 = vmatpush1.bf16.msra.mxu0 %v7801_v12 }
 0x953   :  { %3121 = vmatprep.subr.bf16.mxu0 %v7806_v14  ;;  %v7866_v14 = vld [vmem:[#allocation6 + $0x214] ss:$8 sps:$4 sm:$0xff]  }
 0x956   :  { %3122 = vmatpush1.bf16.msra.mxu0 %v7804_v19  ;;  %v7864_v19 = vld [vmem:[#allocation6 + $0x210] ss:$8 sps:$4 sm:$0xff]  }
 0x957   :  { %3123 = vmatprep.subr.bf16.mxu0 %v7809_v20  ;;  %v7869_v20 = vld [vmem:[#allocation6 + $0x224] ss:$8 sps:$4 sm:$0xff]  }
 0x95a   :  { %3124 = vmatpush1.bf16.msra.mxu0 %v7807_v21  ;;  %v7867_v21 = vld [vmem:[#allocation6 + $0x220] ss:$8 sps:$4 sm:$0xff]  }
 0x95b   :  { %3125 = vmatprep.subr.bf16.mxu0 %v7812_v32  ;;  %v7872_v32 = vld [vmem:[#allocation6 + $0x234] ss:$8 sps:$4 sm:$0xff]  }
 0x95e   :  { %3126 = vmatpush1.bf16.msra.mxu0 %v7810_v22  ;;  %v7870_v22 = vld [vmem:[#allocation6 + $0x230] ss:$8 sps:$4 sm:$0xff]  }
 0x95f   :  { %3296 = vmatprep.subr.bf16.mxu0 %v7815_v24  ;;  %v7875_v24 = vld [vmem:[#allocation6 + $0x244] ss:$8 sps:$4 sm:$0xff]  }
 0x9ec   :  { %v9542_v23 = vpop.f32.mrb[28].mxu0  ;;  %v9544_v31 = vpop.f32.mrb[28].mxu1 }
 0x9ed   :  { %v2815_v26 = vpop.f32.mrb[29].mxu0  ;;  %v9546_v34 = vpop.f32.mrb[29].mxu1  ;;  %v2820_v12 = vpack.c.bf16 %v9542_v23, %v9542_v23  ;;  %v7878_v23 = vld [vmem:[#allocation6 + $0x254] ss:$8 sps:$4 sm:$0xff]  }
 0x9ee   :  { %v2817_v27 = vpop.f32.mrb[30].mxu0  ;;  %v3380_v35 = vpop.f32.mrb[30].mxu1  ;;  %v2821_v45 = vpack.c.bf16 %v2815_v26, %v2815_v26  ;;  %v3384_v33 = vpack.c.bf16 %v9546_v34, %v9546_v34  ;;  %v7873_v26 = vld [vmem:[#allocation6 + $0x240] ss:$8 sps:$4 sm:$0xff]  }
 0x9ef   :  { %v2818_v9 = vpop.f32.mrb[31].mxu0  ;;  %v3381_v38 = vpop.f32.mrb[31].mxu1  ;;  %v7876_v27 = vld [vmem:[#allocation6 + $0x250] ss:$8 sps:$4 sm:$0xff]   ;;  %v7879_v34 = vld [vmem:[#allocation6 + $0x260] ss:$8 sps:$4 sm:$0xff]  }
 0x9f0   :  { %v7881_v9 = vld [vmem:[#allocation6 + $0x264] ss:$8 sps:$4 sm:$0xff]   ;;  %v7884_v35 = vld [vmem:[#allocation6 + $0x274] ss:$8 sps:$4 sm:$0xff]  }
 0x9f1   :  { %v7887_v38 = vld [vmem:[#allocation6 + $0x284] ss:$8 sps:$4 sm:$0xff]  }
 0x9f4   :  { %v2893_v36 = vpop.f32.mrb[32].mxu0  ;;  %v9548_v6 = vpop.f32.mrb[32].mxu1 }
 0x9f5   :  { %v2895_v40 = vpop.f32.mrb[33].mxu0  ;;  %v2900_v29 = vpack.c.bf16 %v2893_v36, %v2893_v36  ;;  %v9550_v13 = vpop.f32.mrb[33].mxu1  ;;  %v7882_v36 = vld [vmem:[#allocation6 + $0x270] ss:$8 sps:$4 sm:$0xff]  }
 0x9f6   :  { %v2901_v41 = vpack.c.bf16 %v2895_v40, %v2895_v40  ;;  %v2897_v42 = vpop.f32.mrb[34].mxu0  ;;  %v3664_v15 = vpop.f32.mrb[34].mxu1  ;;  %v7885_v40 = vld [vmem:[#allocation6 + $0x280] ss:$8 sps:$4 sm:$0xff]  }
 0x9f7   :  { %v2898_v37 = vpop.f32.mrb[35].mxu0  ;;  %v3665_v16 = vpop.f32.mrb[35].mxu1  ;;  %v7888_v42 = vld [vmem:[#allocation6 + $0x290] ss:$8 sps:$4 sm:$0xff]   ;;  %v7939_v15 = vld [vmem:[#allocation6 + $0x3a0] ss:$8 sps:$4 sm:$0xff]  }
 0x9f8   :  { %3127 = vmatprep.mubr.bf16.mxu0 %v2901_v41  ;;  %v7890_v41 = vld [vmem:[#allocation6 + $0x294] ss:$8 sps:$4 sm:$0xff]  }
 0x9f9   :  { %3128 = vmatmul.mubr.bf16.vlgmr.msra.gmra.mrb[36].mxu0 %v2900_v29  ;;  %v7891_v29 = vld [vmem:[#allocation6 + $0x2a0] ss:$8 sps:$4 sm:$0xff]   ;;  %v7896_v37 = vld [vmem:[#allocation6 + $0x2b4] ss:$8 sps:$4 sm:$0xff]  }
 0x9fa   :  { %3297 = vmatpush1.bf16.msra.mxu0 %v7813_v28  ;;  %3328 = vmatprep.mubr.bf16.mxu0 %v2821_v45  ;;  %v7893_v28 = vld [vmem:[#allocation6 + $0x2a4] ss:$8 sps:$4 sm:$0xff]   ;;  %v7944_v16 = vld [vmem:[#allocation6 + $0x3b4] ss:$8 sps:$4 sm:$0xff]  }
 0x9fb   :  { %3298 = vmatprep.subr.bf16.mxu0 %v7818_v39  ;;  %v7894_v39 = vld [vmem:[#allocation6 + $0x2b0] ss:$8 sps:$4 sm:$0xff]   ;;  %v7899_v45 = vld [vmem:[#allocation6 + $0x2c4] ss:$8 sps:$4 sm:$0xff]  }
 0x9fe   :  { %3299 = vmatpush1.bf16.msra.mxu0 %v7816_v47  ;;  %v7897_v47 = vld [vmem:[#allocation6 + $0x2c0] ss:$8 sps:$4 sm:$0xff]  }
 0x9ff   :  { %3300 = vmatprep.subr.bf16.mxu0 %v7821_v44  ;;  %v7902_v44 = vld [vmem:[#allocation6 + $0x2d4] ss:$8 sps:$4 sm:$0xff]  }
 0xa02   :  { %3301 = vmatpush1.bf16.msra.mxu0 %v7819_v46  ;;  %v7900_v46 = vld [vmem:[#allocation6 + $0x2d0] ss:$8 sps:$4 sm:$0xff]  }
 0xa03   :  { %3302 = vmatprep.subr.bf16.mxu0 %v7824_v48  ;;  %v7905_v48 = vld [vmem:[#allocation6 + $0x2e4] ss:$8 sps:$4 sm:$0xff]  }
 0xa06   :  { %3303 = vmatpush1.bf16.msra.mxu0 %v7822_v49  ;;  %v7903_v49 = vld [vmem:[#allocation6 + $0x2e0] ss:$8 sps:$4 sm:$0xff]  }
 0xa07   :  { %3304 = vmatprep.subr.bf16.mxu0 %v7827_v50  ;;  %v7908_v50 = vld [vmem:[#allocation6 + $0x2f4] ss:$8 sps:$4 sm:$0xff]  }
 0xa0a   :  { %3305 = vmatpush1.bf16.msra.mxu0 %v7825_v51  ;;  %v7906_v51 = vld [vmem:[#allocation6 + $0x2f0] ss:$8 sps:$4 sm:$0xff]  }
 0xa0b   :  { %3306 = vmatprep.subr.bf16.mxu0 %v7830_v53  ;;  %v7911_v53 = vld [vmem:[#allocation6 + $0x304] ss:$8 sps:$4 sm:$0xff]  }
 0xa0e   :  { %3307 = vmatpush1.bf16.msra.mxu0 %v7828_v54  ;;  %v3383_v54 = vpack.c.bf16 %v9544_v31, %v9544_v31  ;;  %v7923_v31 = vld [vmem:[#allocation6 + $0x344] ss:$8 sps:$4 sm:$0xff]  }
 0xa0f   :  { %3308 = vmatprep.subr.bf16.mxu0 %v7833_v7  ;;  %v7909_v7 = vld [vmem:[#allocation6 + $0x300] ss:$8 sps:$4 sm:$0xff]  }
 0xa12   :  { %3309 = vmatpush1.bf16.msra.mxu0 %v7831_v10  ;;  %v3668_v10 = vpack.c.bf16 %v9550_v13, %v9550_v13  ;;  %v7941_v13 = vld [vmem:[#allocation6 + $0x3a4] ss:$8 sps:$4 sm:$0xff]  }
 0xa13   :  { %3310 = vmatprep.subr.bf16.mxu0 %v7836_v11  ;;  %v7914_v11 = vld [vmem:[#allocation6 + $0x314] ss:$8 sps:$4 sm:$0xff]  }
 0xa16   :  { %3311 = vmatpush1.bf16.msra.mxu0 %v7834_v55  ;;  %v7912_v55 = vld [vmem:[#allocation6 + $0x310] ss:$8 sps:$4 sm:$0xff]  }
 0xa17   :  { %3312 = vmatprep.subr.bf16.mxu0 %v7839_v56  ;;  %v7917_v56 = vld [vmem:[#allocation6 + $0x324] ss:$8 sps:$4 sm:$0xff]  }
 0xa1a   :  { %3313 = vmatpush1.bf16.msra.mxu0 %v7837_v57  ;;  %v7915_v57 = vld [vmem:[#allocation6 + $0x320] ss:$8 sps:$4 sm:$0xff]  }
 0xa1b   :  { %3314 = vmatprep.subr.bf16.mxu0 %v7842_v58  ;;  %v7920_v58 = vld [vmem:[#allocation6 + $0x334] ss:$8 sps:$4 sm:$0xff]  }
 0xa1e   :  { %3315 = vmatpush1.bf16.msra.mxu0 %v7840_v59  ;;  %v7918_v59 = vld [vmem:[#allocation6 + $0x330] ss:$8 sps:$4 sm:$0xff]  }
 0xa1f   :  { %3316 = vmatprep.subr.bf16.mxu0 %v7845_v60  ;;  %v7921_v60 = vld [vmem:[#allocation6 + $0x340] ss:$8 sps:$4 sm:$0xff]  }
 0xa22   :  { %3317 = vmatpush1.bf16.msra.mxu0 %v7843_v61  ;;  %v7926_v61 = vld [vmem:[#allocation6 + $0x354] ss:$8 sps:$4 sm:$0xff]  }
 0xa23   :  { %3318 = vmatprep.subr.bf16.mxu0 %v7848_v62  ;;  %v7924_v62 = vld [vmem:[#allocation6 + $0x350] ss:$8 sps:$4 sm:$0xff]  }
 0xa26   :  { %3319 = vmatpush1.bf16.msra.mxu0 %v7846_v63  ;;  %v7929_v63 = vld [vmem:[#allocation6 + $0x364] ss:$8 sps:$4 sm:$0xff]  }
 0xa27   :  { %3320 = vmatprep.subr.bf16.mxu0 %v7851_v0  ;;  %v7927_v0 = vld [vmem:[#allocation6 + $0x360] ss:$8 sps:$4 sm:$0xff]  }
 0xa2a   :  { %3321 = vmatpush1.bf16.msra.mxu0 %v7849_v1  ;;  %v7932_v1 = vld [vmem:[#allocation6 + $0x374] ss:$8 sps:$4 sm:$0xff]  }
 0xa2b   :  { %3322 = vmatprep.subr.bf16.mxu0 %v7854_v2  ;;  %v7930_v2 = vld [vmem:[#allocation6 + $0x370] ss:$8 sps:$4 sm:$0xff]  }
 0xa2e   :  { %3323 = vmatpush1.bf16.msra.mxu0 %v7852_v3  ;;  %v7935_v3 = vld [vmem:[#allocation6 + $0x384] ss:$8 sps:$4 sm:$0xff]  }
 0xa2f   :  { %3324 = vmatprep.subr.bf16.mxu0 %v7857_v4  ;;  %v7933_v4 = vld [vmem:[#allocation6 + $0x380] ss:$8 sps:$4 sm:$0xff]  }
 0xa32   :  { %3325 = vmatpush1.bf16.msra.mxu0 %v7855_v5  ;;  %v7938_v5 = vld [vmem:[#allocation6 + $0x394] ss:$8 sps:$4 sm:$0xff]  }
 0xa33   :  { %3326 = vmatprep.subr.bf16.mxu0 %v7860_v8  ;;  %v7936_v8 = vld [vmem:[#allocation6 + $0x390] ss:$8 sps:$4 sm:$0xff]  }
 0xa36   :  { %3327 = vmatpush1.bf16.msra.mxu0 %v7858_v17  ;;  %v7942_v17 = vld [vmem:[#allocation6 + $0x3b0] ss:$8 sps:$4 sm:$0xff]  }
 0xa37   :  { %3578 = vmatprep.subr.bf16.mxu0 %v7863_v18  ;;  %v7947_v18 = vld [vmem:[#allocation6 + $0x3c4] ss:$8 sps:$4 sm:$0xff]  }
 0xa39   :  { %3329 = vmatmul.mubr.bf16.vlgmr.msra.gmra.mrb[36].mxu0 %v2820_v12  ;;  %v7948_v12 = vld [vmem:[#allocation6 + $0x3d0] ss:$8 sps:$4 sm:$0xff]  }
 0xa3a   :  { %3579 = vmatpush1.bf16.msra.mxu0 %v7861_v30  ;;  %3610 = vmatprep.mubr.bf16.mxu0 %v3384_v33  ;;  %v7945_v30 = vld [vmem:[#allocation6 + $0x3c0] ss:$8 sps:$4 sm:$0xff]   ;;  %v7950_v33 = vld [vmem:[#allocation6 + $0x3d4] ss:$8 sps:$4 sm:$0xff]  }
 0xa3b   :  { %3580 = vmatprep.subr.bf16.mxu0 %v7866_v14  ;;  %v7953_v14 = vld [vmem:[#allocation6 + $0x3e4] ss:$8 sps:$4 sm:$0xff]  }
 0xa3e   :  { %3581 = vmatpush1.bf16.msra.mxu0 %v7864_v19  ;;  %v7951_v19 = vld [vmem:[#allocation6 + $0x3e0] ss:$8 sps:$4 sm:$0xff]  }
 0xa3f   :  { %3582 = vmatprep.subr.bf16.mxu0 %v7869_v20  ;;  %v7956_v20 = vld [vmem:[#allocation6 + $0x3f4] ss:$8 sps:$4 sm:$0xff]  }
 0xa42   :  { %3583 = vmatpush1.bf16.msra.mxu0 %v7867_v21  ;;  %v3921_v21 = vld [vmem:[%s10016_s11 + $0x80] sm:$0xff] }
 0xa43   :  { %3584 = vmatprep.subr.bf16.mxu0 %v7872_v32  ;;  %v3922_v32 = vld [vmem:[%s10016_s11 + $0x88] sm:$0xff] }
 0xa46   :  { %3585 = vmatpush1.bf16.msra.mxu0 %v7870_v22  ;;  %v7954_v22 = vld [vmem:[#allocation6 + $0x3f0] ss:$8 sps:$4 sm:$0xff]  }
 0xa47   :  { %3586 = vmatprep.subr.bf16.mxu0 %v7875_v24  ;;  %v9566_v24 = vpack.c.bf16 %v3922_v32, %v3921_v21  ;;  %v3946_v21 = vld [vmem:[#allocation7 + $0x48] sm:$0xff]  ;;  %v3948_v32 = vld [vmem:[#allocation7 + $0x58] sm:$0xff] }
 0xa4a   :  { %3587 = vmatpush1.bf16.msra.mxu0 %v7873_v26  ;;  %v3905_v26 = vld [vmem:[%s10016_s11] sm:$0xff] }
 0xa4b   :  { %3588 = vmatprep.subr.bf16.mxu0 %v7878_v23  ;;  %v3906_v23 = vld [vmem:[%s10016_s11 + $0x8] sm:$0xff] }
 0xa4e   :  { %3589 = vmatpush1.bf16.msra.mxu0 %v7876_v27  ;;  %v3923_v27 = vld [vmem:[%s10016_s11 + $0x90] sm:$0xff] }
 0xa4f   :  { %3590 = vmatprep.subr.bf16.mxu0 %v7881_v9  ;;  %v3924_v9 = vld [vmem:[%s10016_s11 + $0x98] sm:$0xff] }
 0xa52   :  { %3591 = vmatpush1.bf16.msra.mxu0 %v7879_v34  ;;  %v9580_v34 = vpack.c.bf16 %v3906_v23, %v3905_v26  ;;  %v9717_v26 = vpack.c.bf16 %v3948_v32, %v3946_v21  ;;  %v3945_v23 = vld [vmem:[#allocation7 + $0x40] sm:$0xff] }
 0xa53   :  { %3592 = vmatprep.subr.bf16.mxu0 %v7884_v35  ;;  %v3667_v35 = vpack.c.bf16 %v9548_v6, %v9548_v6  ;;  %v3926_v6 = vld [vmem:[%s10016_s11 + $0xa8] sm:$0xff]  ;;  %v4205_v21 = vld [vmem:[#allocation9] sm:$0x1] }
 0xa56   :  { %3593 = vmatpush1.bf16.msra.mxu0 %v7882_v36  ;;  %v9585_v36 = vpack.c.bf16 %v3924_v9, %v3923_v27  ;;  %v3947_v27 = vld [vmem:[#allocation7 + $0x50] sm:$0xff] }
 0xa57   :  { %3594 = vmatprep.subr.bf16.mxu0 %v7887_v38  ;;  %v3907_v38 = vld [vmem:[%s10016_s11 + $0x10] sm:$0xff]  ;;  %v9720_v9 = vpack.c.bf16 %v3947_v27, %v3945_v23 }
 0xa5a   :  { %3595 = vmatpush1.bf16.msra.mxu0 %v7885_v40  ;;  %v3908_v40 = vld [vmem:[%s10016_s11 + $0x18] sm:$0xff] }
 0xa5b   :  { %3596 = vmatprep.subr.bf16.mxu0 %v7890_v41  ;;  %v3925_v41 = vld [vmem:[%s10016_s11 + $0xa0] sm:$0xff] }
 0xa5e   :  { %3597 = vmatpush1.bf16.msra.mxu0 %v7888_v42  ;;  %v9600_v42 = vpack.c.bf16 %v3908_v40, %v3907_v38 }
 0xa5f   :  { %3598 = vmatprep.subr.bf16.mxu0 %v7893_v28  ;;  %v9603_v28 = vpack.c.bf16 %v3926_v6, %v3925_v41 }
 0xa62   :  { %3599 = vmatpush1.bf16.msra.mxu0 %v7891_v29  ;;  %v3909_v29 = vld [vmem:[%s10016_s11 + $0x20] sm:$0xff] }
 0xa63   :  { %3600 = vmatprep.subr.bf16.mxu0 %v7896_v37  ;;  %v3910_v37 = vld [vmem:[%s10016_s11 + $0x28] sm:$0xff] }
 0xa66   :  { %3601 = vmatpush1.bf16.msra.mxu0 %v7894_v39  ;;  %v3927_v39 = vld [vmem:[%s10016_s11 + $0xb0] sm:$0xff] }
 0xa67   :  { %3602 = vmatprep.subr.bf16.mxu0 %v7899_v45  ;;  %v3928_v45 = vld [vmem:[%s10016_s11 + $0xb8] sm:$0xff] }
 0xa6a   :  { %3603 = vmatpush1.bf16.msra.mxu0 %v7897_v47  ;;  %v9618_v47 = vpack.c.bf16 %v3910_v37, %v3909_v29 }
 0xa6b   :  { %3604 = vmatprep.subr.bf16.mxu0 %v7902_v44  ;;  %v9621_v44 = vpack.c.bf16 %v3928_v45, %v3927_v39 }
 0xa6e   :  { %3605 = vmatpush1.bf16.msra.mxu0 %v7900_v46  ;;  %v3911_v46 = vld [vmem:[%s10016_s11 + $0x30] sm:$0xff] }
 0xa6f   :  { %3606 = vmatprep.subr.bf16.mxu0 %v7905_v48  ;;  %v3912_v48 = vld [vmem:[%s10016_s11 + $0x38] sm:$0xff] }
 0xa72   :  { %3607 = vmatpush1.bf16.msra.mxu0 %v7903_v49  ;;  %v3929_v49 = vld [vmem:[%s10016_s11 + $0xc0] sm:$0xff] }
 0xa73   :  { %3608 = vmatprep.subr.bf16.mxu0 %v7908_v50  ;;  %v3930_v50 = vld [vmem:[%s10016_s11 + $0xc8] sm:$0xff] }
 0xa76   :  { %3609 = vmatpush1.bf16.msra.mxu0 %v7906_v51  ;;  %v9636_v51 = vpack.c.bf16 %v3912_v48, %v3911_v46 }
 0xa77   :  { %3862 = vmatprep.subr.bf16.mxu0 %v7911_v53  ;;  %v9639_v53 = vpack.c.bf16 %v3930_v50, %v3929_v49 }
 0xa79   :  { %3611 = vmatmul.mubr.bf16.vlgmr.msra.gmra.mrb[36].mxu0 %v3383_v54  ;;  %v3913_v54 = vld [vmem:[%s10016_s11 + $0x40] sm:$0xff] }
 0xa7a   :  { %3863 = vmatpush1.bf16.msra.mxu0 %v7909_v7  ;;  %3894 = vmatprep.mubr.bf16.mxu0 %v3668_v10  ;;  %v3914_v7 = vld [vmem:[%s10016_s11 + $0x48] sm:$0xff] }
 0xa7b   :  { %3864 = vmatprep.subr.bf16.mxu0 %v7914_v11  ;;  %v9649_v10 = vpack.c.bf16 %v3914_v7, %v3913_v54  ;;  %v3931_v11 = vld [vmem:[%s10016_s11 + $0xd0] sm:$0xff] }
 0xa7e   :  { %3865 = vmatpush1.bf16.msra.mxu0 %v7912_v55  ;;  %v3932_v55 = vld [vmem:[%s10016_s11 + $0xd8] sm:$0xff] }
 0xa7f   :  { %3866 = vmatprep.subr.bf16.mxu0 %v7917_v56  ;;  %v9658_v56 = vpack.c.bf16 %v3932_v55, %v3931_v11  ;;  %v3950_v55 = vld [vmem:[#allocation7 + $0x68] sm:$0xff] }
 0xa82   :  { %3867 = vmatpush1.bf16.msra.mxu0 %v7915_v57  ;;  %v3915_v57 = vld [vmem:[%s10016_s11 + $0x50] sm:$0xff] }
 0xa83   :  { %3868 = vmatprep.subr.bf16.mxu0 %v7920_v58  ;;  %v3916_v58 = vld [vmem:[%s10016_s11 + $0x58] sm:$0xff] }
 0xa86   :  { %3869 = vmatpush1.bf16.msra.mxu0 %v7918_v59  ;;  %v9666_v59 = vpack.c.bf16 %v3916_v58, %v3915_v57  ;;  %v3952_v57 = vld [vmem:[#allocation7 + $0x78] sm:$0xff] }
 0xa87   :  { %3870 = vmatprep.subr.bf16.mxu0 %v7923_v31  ;;  %v3933_v31 = vld [vmem:[%s10016_s11 + $0xe0] sm:$0xff]  ;;  %v9725_v58 = vpack.c.bf16 %v3952_v57, %v3950_v55 }
 0xa88   :  { %v6623_v55 = vld [vmem:[%s10020_s15 + $0x2] sm:$0x3]  ;;  %v7957_v57 = vld [vmem:[#allocation12 + $0x100] ss:$8 sps:$4 sm:$0xff]  }
 0xa8a   :  { %3871 = vmatpush1.bf16.msra.mxu0 %v7921_v60  ;;  %v3934_v60 = vld [vmem:[%s10016_s11 + $0xe8] sm:$0xff] }
 0xa8b   :  { %3872 = vmatprep.subr.bf16.mxu0 %v7926_v61  ;;  %v9676_v61 = vpack.c.bf16 %v3934_v60, %v3933_v31  ;;  %v3949_v31 = vld [vmem:[#allocation7 + $0x60] sm:$0xff]  ;;  %v3951_v60 = vld [vmem:[#allocation7 + $0x70] sm:$0xff] }
 0xa8e   :  { %3873 = vmatpush1.bf16.msra.mxu0 %v7924_v62  ;;  %v3917_v62 = vld [vmem:[%s10016_s11 + $0x60] sm:$0xff] }
 0xa8f   :  { %3874 = vmatprep.subr.bf16.mxu0 %v7929_v63  ;;  %v3918_v63 = vld [vmem:[%s10016_s11 + $0x68] sm:$0xff] }
 0xa92   :  { %3875 = vmatpush1.bf16.msra.mxu0 %v7927_v0  ;;  %v9684_v0 = vpack.c.bf16 %v3918_v63, %v3917_v62  ;;  %v9727_v62 = vpack.c.bf16 %v3951_v60, %v3949_v31  ;;  %v7962_v31 = vld [vmem:[#allocation12 + $0x114] ss:$8 sps:$4 sm:$0xff]   ;;  %v7960_v60 = vld [vmem:[#allocation12 + $0x110] ss:$8 sps:$4 sm:$0xff]  }
 0xa93   :  { %3876 = vmatprep.subr.bf16.mxu0 %v7932_v1  ;;  %v3935_v1 = vld [vmem:[%s10016_s11 + $0xf0] sm:$0xff] }
 0xa96   :  { %3877 = vmatpush1.bf16.msra.mxu0 %v7930_v2  ;;  %v3936_v2 = vld [vmem:[%s10016_s11 + $0xf8] sm:$0xff] }
 0xa97   :  { %3878 = vmatprep.subr.bf16.mxu0 %v7935_v3  ;;  %v9694_v3 = vpack.c.bf16 %v3936_v2, %v3935_v1 }
 0xa9a   :  { %3879 = vmatpush1.bf16.msra.mxu0 %v7933_v4  ;;  %v3919_v4 = vld [vmem:[%s10016_s11 + $0x70] sm:$0xff] }
 0xa9b   :  { %3880 = vmatprep.subr.bf16.mxu0 %v7938_v5  ;;  %v3920_v5 = vld [vmem:[%s10016_s11 + $0x78] sm:$0xff] }
 0xa9e   :  { %3881 = vmatpush1.bf16.msra.mxu0 %v7936_v8  ;;  %v9702_v8 = vpack.c.bf16 %v3920_v5, %v3919_v4 }
 0xa9f   :  { %3882 = vmatprep.subr.bf16.mxu0 %v7941_v13  ;;  %v3938_v13 = vld [vmem:[#allocation7 + $0x8] sm:$0xff] }
 0xaa2   :  { %3883 = vmatpush1.bf16.msra.mxu0 %v7939_v15  ;;  %v3940_v15 = vld [vmem:[#allocation7 + $0x18] sm:$0xff] }
 0xaa3   :  { %3884 = vmatprep.subr.bf16.mxu0 %v7944_v16  ;;  %v3937_v16 = vld [vmem:[#allocation7] sm:$0xff] }
 0xaa6   :  { %3885 = vmatpush1.bf16.msra.mxu0 %v7942_v17  ;;  %v9706_v17 = vpack.c.bf16 %v3940_v15, %v3938_v13 }
 0xaa7   :  { %3886 = vmatprep.subr.bf16.mxu0 %v7947_v18  ;;  %v3939_v18 = vld [vmem:[#allocation7 + $0x10] sm:$0xff] }
 0xaa8   :  { %7167 = vmatprep.subr.bf16.mxu1 %v9706_v17 }
 0xaaa   :  { %3887 = vmatpush1.bf16.msra.mxu0 %v7945_v30  ;;  %v3942_v30 = vld [vmem:[#allocation7 + $0x28] sm:$0xff] }
 0xaab   :  { %3888 = vmatprep.subr.bf16.mxu0 %v7950_v33  ;;  %v3944_v33 = vld [vmem:[#allocation7 + $0x38] sm:$0xff] }
 0xaae   :  { %3889 = vmatpush1.bf16.msra.mxu0 %v7948_v12  ;;  %v9708_v12 = vpack.c.bf16 %v3939_v18, %v3937_v16 }
 0xaaf   :  { %3890 = vmatprep.subr.bf16.mxu0 %v7953_v14  ;;  %v9710_v14 = vpack.c.bf16 %v3944_v33, %v3942_v30 }
 0xab0   :  { %7169 = vmatpush1.bf16.msra.mxu1 %v9708_v12 }
 0xab1   :  { %7171 = vmatprep.subr.bf16.mxu1 %v9710_v14 }
 0xab2   :  { %3891 = vmatpush1.bf16.msra.mxu0 %v7951_v19  ;;  %v3941_v19 = vld [vmem:[#allocation7 + $0x20] sm:$0xff] }
 0xab3   :  { %3892 = vmatprep.subr.bf16.mxu0 %v7956_v20  ;;  %v3943_v20 = vld [vmem:[#allocation7 + $0x30] sm:$0xff] }
 0xab6   :  { %3893 = vmatpush1.bf16.msra.mxu0 %v7954_v22  ;;  %v9714_v22 = vpack.c.bf16 %v3943_v20, %v3941_v19 }
 0xab7   :  { %7135 = vmatprep.subr.bf16.mxu0 %v9566_v24 }
 0xab8   :  { %7173 = vmatpush1.bf16.msra.mxu1 %v9714_v22 }
 0xab9   :  { %3895 = vmatmul.mubr.bf16.vlgmr.msra.gmra.mrb[36].mxu0 %v3667_v35  ;;  %7175 = vmatprep.subr.bf16.mxu1 %v9717_v26 }
 0xaba   :  { %7137 = vmatpush3.bf16.msra.mxu0 %v9580_v34 }
 0xabb   :  { %7139 = vmatprep.subr.bf16.mxu0 %v9585_v36 }
 0xabc   :  { %7177 = vmatpush1.bf16.msra.mxu1 %v9720_v9 }
 0xabd   :  { %7179 = vmatprep.subr.bf16.mxu1 %v9725_v58 }
 0xabe   :  { %7141 = vmatpush3.bf16.msra.mxu0 %v9600_v42 }
 0xabf   :  { %7143 = vmatprep.subr.bf16.mxu0 %v9603_v28 }
 0xac0   :  { %7181 = vmatpush1.bf16.msra.mxu1 %v9727_v62 }
 0xac1   :  { %7183 = vmatprep.subr.bf16.mxu1 %v9566_v24 }
 0xac2   :  { %7145 = vmatpush3.bf16.msra.mxu0 %v9618_v47 }
 0xac3   :  { %7147 = vmatprep.subr.bf16.mxu0 %v9621_v44 }
 0xac6   :  { %7149 = vmatpush3.bf16.msra.mxu0 %v9636_v51 }
 0xac7   :  { %7151 = vmatprep.subr.bf16.mxu0 %v9639_v53 }
 0xaca   :  { %7153 = vmatpush3.bf16.msra.mxu0 %v9649_v10 }
 0xacb   :  { %7155 = vmatprep.subr.bf16.mxu0 %v9658_v56 }
 0xace   :  { %7157 = vmatpush3.bf16.msra.mxu0 %v9666_v59 }
 0xacf   :  { %7159 = vmatprep.subr.bf16.mxu0 %v9676_v61 }
 0xad2   :  { %7161 = vmatpush3.bf16.msra.mxu0 %v9684_v0 }
 0xad3   :  { %7163 = vmatprep.subr.bf16.mxu0 %v9694_v3 }
 0xad6   :  { %7165 = vmatpush3.bf16.msra.mxu0 %v9702_v8 }
 0xb8c   :  { %v3896_v35 = vpop.f32.mrb[36].mxu0 }
 0xb8d   :  { %v3953_v38 = vrot.slane %v3896_v35, 4  ;;  %v3898_v40 = vpop.f32.mrb[37].mxu0 }
 0xb8e   :  { %v3959_v41 = vrot.slane %v3898_v40, 4  ;;  %v3900_v6 = vpop.f32.mrb[38].mxu0 }
 0xb8f   :  { %v3954_v29 = vadd.f32 %v3953_v38, %v3896_v35  ;;  %v3901_v37 = vpop.f32.mrb[39].mxu0 }
 0xb90   :  { %v3960_v39 = vadd.f32 %v3959_v41, %v3898_v40 }
 0xb91   :  { %v3955_v45 = vrot.slane %v3954_v29, 2 }
 0xb92   :  { %v3961_v46 = vrot.slane %v3960_v39, 2 }
 0xb93   :  { %v3956_v48 = vadd.f32 %v3955_v45, %v3954_v29 }
 0xb94   :  { %v3962_v49 = vadd.f32 %v3961_v46, %v3960_v39 }
 0xb95   :  { %v3957_v50 = vrot.slane %v3956_v48, 1 }
 0xb96   :  { %v3963_v54 = vrot.slane %v3962_v49, 1 }
 0xb97   :  { %v3958_v11 = vadd.f32 %v3957_v50, %v3956_v48 }
 0xb98   :  { %v3964_v7 = vadd.f32 %v3963_v54, %v3962_v49  ;;  %v4386_v54 = vld [vmem:[%s10020_s15] sm:$0x3] }
 0xb9a   :  { %4029 = vmatprep.mubr.f32.mxu0 %v3964_v7  ;;  %v6690_v7 = vld [vmem:[%s10020_s15 + $0x4] sm:$0x3] }
 0xb9b   :  { %4030 = vmatmul.mubr.f32.vlgmr.msra.gmra.mrb[40].mxu0 %v3958_v11  ;;  %v7959_v11 = vld [vmem:[#allocation12 + $0x104] ss:$8 sps:$4 sm:$0xff]  }
 0xb9c   :  { %4993 = vmatprep.mubr.bf16.mxu0 %v8431_v25 }
 0xc6e   :  { %v6890_v63 = vpop.f32.mrb[40].mxu0 }
 0xc6f   :  { %v6891_v1 = vpop.f32.mrb[41].mxu0 }
 0xc70   :  { %v6892_v2 = vadd.f32 %v6891_v1, %v6890_v63  ;;  %v7968_v63 = vld [vmem:[#allocation12 + $0x134] ss:$8 sps:$4 sm:$0xff]   ;;  %v7966_v1 = vld [vmem:[#allocation12 + $0x130] ss:$8 sps:$4 sm:$0xff]  }
 0xc72   :  { %v4035_v4 = vmul.f32 0.03125, %v6892_v2  ;;  %v7971_v2 = vld [vmem:[#allocation12 + $0x144] ss:$8 sps:$4 sm:$0xff]  }
 0xc74   :  { %6618 = vmatmul.mubr.msk.f32.vlgmr.msra.gmra.mrb[26].mxu1 %vm262_vm0, %v4035_v4  ;;  %v7969_v4 = vld [vmem:[#allocation12 + $0x140] ss:$8 sps:$4 sm:$0xff]  }
 0xc75   :  { %7185 = vmatpush3.bf16.msra.mxu1 %v9580_v34 }
 0xc76   :  { %7187 = vmatprep.subr.bf16.mxu1 %v9585_v36 }
 0xc79   :  { %7189 = vmatpush3.bf16.msra.mxu1 %v9600_v42 }
 0xc7a   :  { %7191 = vmatprep.subr.bf16.mxu1 %v9603_v28 }
 0xc7d   :  { %7193 = vmatpush3.bf16.msra.mxu1 %v9618_v47 }
 0xc7e   :  { %7195 = vmatprep.subr.bf16.mxu1 %v9621_v44 }
 0xc81   :  { %7197 = vmatpush3.bf16.msra.mxu1 %v9636_v51 }
 0xc82   :  { %7199 = vmatprep.subr.bf16.mxu1 %v9639_v53 }
 0xc85   :  { %7201 = vmatpush3.bf16.msra.mxu1 %v9649_v10 }
 0xc86   :  { %7203 = vmatprep.subr.bf16.mxu1 %v9658_v56 }
 0xc89   :  { %7205 = vmatpush3.bf16.msra.mxu1 %v9666_v59 }
 0xc8a   :  { %7207 = vmatprep.subr.bf16.mxu1 %v9676_v61 }
 0xc8d   :  { %7209 = vmatpush3.bf16.msra.mxu1 %v9684_v0 }
 0xc8e   :  { %7211 = vmatprep.subr.bf16.mxu1 %v9694_v3 }
 0xc91   :  { %7213 = vmatpush3.bf16.msra.mxu1 %v9702_v8 }
 0xc92   :  { %7215 = vmatprep.subr.bf16.mxu1 %v9706_v17 }
 0xd47   :  { %v4105_v24 = vpop.f32.mrb[26].mxu1 }
 0xd48   :  { %v4113_v34 = vrot.slane %v4105_v24, %v9501_v52  ;;  %v4107_v36 = vpop.f32.mrb[27].mxu1  ;;  %v7974_v24 = vld [vmem:[#allocation12 + $0x154] ss:$8 sps:$4 sm:$0xff]  }
 0xd49   :  { %v4117_v42 = vrot.slane %v4107_v36, %v9501_v52  ;;  %v7977_v36 = vld [vmem:[#allocation12 + $0x164] ss:$8 sps:$4 sm:$0xff]  }
 0xd4a   :  { %v4118_v28 = vsub.f32 %v3896_v35, %v4113_v34  ;;  %v7972_v34 = vld [vmem:[#allocation12 + $0x150] ss:$8 sps:$4 sm:$0xff]  }
 0xd4b   :  { %v4119_v47 = vsub.f32 %v3898_v40, %v4117_v42  ;;  %v7975_v42 = vld [vmem:[#allocation12 + $0x160] ss:$8 sps:$4 sm:$0xff]  }
 0xd4c   :  { %v4120_v44 = vmul.f32 %v4118_v28, %v4118_v28 }
 0xd4d   :  { %v4121_v51 = vmul.f32 %v4119_v47, %v4119_v47 }
 0xd4e   :  { %v4122_v53 = vrot.slane %v4120_v44, 4 }
 0xd4f   :  { %v4128_v10 = vrot.slane %v4121_v51, 4 }
 0xd50   :  { %v4123_v56 = vadd.f32 %v4122_v53, %v4120_v44  ;;  %v7983_v44 = vld [vmem:[#allocation12 + $0x184] ss:$8 sps:$4 sm:$0xff]   ;;  %v7986_v53 = vld [vmem:[#allocation12 + $0x194] ss:$8 sps:$4 sm:$0xff]  }
 0xd51   :  { %v4129_v59 = vadd.f32 %v4128_v10, %v4121_v51  ;;  %v7981_v51 = vld [vmem:[#allocation12 + $0x180] ss:$8 sps:$4 sm:$0xff]   ;;  %v7984_v10 = vld [vmem:[#allocation12 + $0x190] ss:$8 sps:$4 sm:$0xff]  }
 0xd52   :  { %v4124_v61 = vrot.slane %v4123_v56, 2 }
 0xd53   :  { %v4130_v0 = vrot.slane %v4129_v59, 2 }
 0xd54   :  { %v4125_v3 = vadd.f32 %v4124_v61, %v4123_v56  ;;  %v7989_v56 = vld [vmem:[#allocation12 + $0x1a4] ss:$8 sps:$4 sm:$0xff]   ;;  %v7992_v61 = vld [vmem:[#allocation12 + $0x1b4] ss:$8 sps:$4 sm:$0xff]  }
 0xd55   :  { %v4131_v5 = vadd.f32 %v4130_v0, %v4129_v59  ;;  %v7987_v59 = vld [vmem:[#allocation12 + $0x1a0] ss:$8 sps:$4 sm:$0xff]   ;;  %v7990_v0 = vld [vmem:[#allocation12 + $0x1b0] ss:$8 sps:$4 sm:$0xff]  }
 0xd56   :  { %v4126_v8 = vrot.slane %v4125_v3, 1 }
 0xd57   :  { %v4132_v13 = vrot.slane %v4131_v5, 1 }
 0xd58   :  { %v4127_v16 = vadd.f32 %v4126_v8, %v4125_v3  ;;  %v7995_v3 = vld [vmem:[#allocation12 + $0x1c4] ss:$8 sps:$4 sm:$0xff]   ;;  %v7998_v8 = vld [vmem:[#allocation12 + $0x1d4] ss:$8 sps:$4 sm:$0xff]  }
 0xd59   :  { %v4133_v15 = vadd.f32 %v4132_v13, %v4131_v5  ;;  %v7993_v5 = vld [vmem:[#allocation12 + $0x1c0] ss:$8 sps:$4 sm:$0xff]   ;;  %v7996_v13 = vld [vmem:[#allocation12 + $0x1d0] ss:$8 sps:$4 sm:$0xff]  }
 0xd5b   :  { %4198 = vmatprep.mubr.f32.mxu1 %v4133_v15  ;;  %v8001_v15 = vld [vmem:[#allocation12 + $0x1e4] ss:$8 sps:$4 sm:$0xff]  }
 0xd5c   :  { %4199 = vmatmul.mubr.f32.vlgmr.msra.gmra.mrb[36].mxu1 %v4127_v16  ;;  %v7999_v16 = vld [vmem:[#allocation12 + $0x1e0] ss:$8 sps:$4 sm:$0xff]  }
 0xd5d   :  { %7217 = vmatpush1.bf16.msra.mxu1 %v9708_v12  ;;  %4276 = vmatprep.mubr.f32.mxu1 %v8432_v43 }
 0xd5e   :  { %7219 = vmatprep.subr.bf16.mxu1 %v9710_v14 }
 0xd61   :  { %7221 = vmatpush1.bf16.msra.mxu1 %v9714_v22 }
 0xd62   :  { %7223 = vmatprep.subr.bf16.mxu1 %v9717_v26 }
 0xd65   :  { %7225 = vmatpush1.bf16.msra.mxu1 %v9720_v9 }
 0xd66   :  { %7227 = vmatprep.subr.bf16.mxu1 %v9725_v58 }
 0xd69   :  { %7229 = vmatpush1.bf16.msra.mxu1 %v9727_v62 }
 0xd6a   :  { %7231 = vmatprep.subr.bf16.mxu1 %v9706_v17  ;;  %v4293_v17 = vld [vmem:[#allocation10] sm:$0x1] }
 0xe2f   :  { %v6925_v18 = vpop.f32.mrb[36].mxu1 }
 0xe30   :  { %v6926_v30 = vpop.f32.mrb[37].mxu1 }
 0xe31   :  { %v6927_v33 = vadd.f32 %v6926_v30, %v6925_v18  ;;  %v8004_v18 = vld [vmem:[#allocation12 + $0x1f4] ss:$8 sps:$4 sm:$0xff]   ;;  %v8002_v30 = vld [vmem:[#allocation12 + $0x1f0] ss:$8 sps:$4 sm:$0xff]  }
 0xe33   :  { %v4204_v19 = vmul.f32 0.03125, %v6927_v33  ;;  %v8007_v33 = vld [vmem:[#allocation12 + $0x4] ss:$8 sps:$4 sm:$0xff]  }
 0xe35   :  { %v4206_v20 = vadd.f32 1e-05, %v4204_v19 }
 0xe37   :  { %8152 = vrsqrt.f32 %v4206_v20 }
 0xe41   :  { %v8153_v32 = vpop.eup %8152 }
 0xe42   :  { %v4208_v23 = vmul.f32 %v8153_v32, %v4205_v21 }
 0xe44   :  { %6619 = vmatmul.mubr.msk.f32.vlgmr.msra.gmra.mrb[38].mxu1 %vm262_vm0, %v4208_v23 }
 0xe45   :  { %7233 = vmatpush1.bf16.msra.mxu1 %v9708_v12  ;;  %4361 = vmatprep.mubr.f32.mxu1 %v8432_v43 }
 0xe46   :  { %7235 = vmatprep.subr.bf16.mxu1 %v9710_v14 }
 0xe49   :  { %7237 = vmatpush1.bf16.msra.mxu1 %v9714_v22 }
 0xe4a   :  { %7239 = vmatprep.subr.bf16.mxu1 %v9717_v26 }
 0xe4d   :  { %7241 = vmatpush1.bf16.msra.mxu1 %v9720_v9 }
 0xe4e   :  { %7243 = vmatprep.subr.bf16.mxu1 %v9725_v58  ;;  %v6725_v58 = vld [vmem:[%s10020_s15 + $0x6] sm:$0x3] }
 0xe51   :  { %7245 = vmatpush1.bf16.msra.mxu1 %v9727_v62  ;;  %v7965_v62 = vld [vmem:[#allocation12 + $0x124] ss:$8 sps:$4 sm:$0xff]  }
 0xe54   :  { %6620 = vmatmul.mubr.msk.f32.vlgmr.msra.gmra.mrb[40].mxu1 %vm262_vm0, %v4293_v17 }
 0xe55   :  { %4430 = vmatprep.mubr.bf16.mxu1 %v8431_v25 }
 0xf17   :  { %v4278_v12 = vpop.f32.mrb[38].mxu1 }
 0xf18   :  { %v4280_v27 = vpop.f32.mrb[39].mxu1  ;;  %v4286_v35 = vrot.slane %v4278_v12, %v9501_v52 }
 0xf19   :  { %v4290_v14 = vrot.slane %v4280_v27, %v9501_v52 }
 0xf1a   :  { %v4291_v38 = vmul.f32 %v4286_v35, %v4118_v28  ;;  %v7980_v28 = vld [vmem:[#allocation12 + $0x174] ss:$8 sps:$4 sm:$0xff]  }
 0xf1b   :  { %v4292_v40 = vmul.f32 %v4290_v14, %v4119_v47  ;;  %v7978_v47 = vld [vmem:[#allocation12 + $0x170] ss:$8 sps:$4 sm:$0xff]  }
 0xf27   :  { %v4363_v22 = vpop.f32.mrb[40].mxu1 }
 0xf28   :  { %v4371_v26 = vrot.slane %v4363_v22, %v9501_v52  ;;  %v4365_v9 = vpop.f32.mrb[41].mxu1 }
 0xf29   :  { %v4375_v41 = vrot.slane %v4365_v9, %v9501_v52 }
 0xf2a   :  { %v4376_v6 = vadd.f32 %v4371_v26, %v4291_v38  ;;  %v8005_v26 = vld [vmem:[#allocation12] ss:$8 sps:$4 sm:$0xff]  }
 0xf2b   :  { %v4377_v29 = vadd.f32 %v4375_v41, %v4292_v40  ;;  %v8010_v41 = vld [vmem:[#allocation12 + $0x14] ss:$8 sps:$4 sm:$0xff]  }
 0xf2c   :  { %vm4378_vm1 = vcmp.ge.f32.partialorder %v4376_v6, 0.0  ;;  %v4380_v37 = vmul.f32 0.2, %v4376_v6 }
 0xf2d   :  { %vm4379_vm0 = vcmp.ge.f32.partialorder %v4377_v29, 0.0  ;;  %v4381_v39 = vmul.f32 0.2, %v4377_v29 }
 0xf2e   :  { %v4382_v45 = vsel %vm4378_vm1, %v4376_v6, %v4380_v37  ;;  %v8013_v37 = vld [vmem:[#allocation12 + $0x24] ss:$8 sps:$4 sm:$0xff]  }
 0xf2f   :  { %v4383_v46 = vsel %vm4379_vm0, %v4377_v29, %v4381_v39  ;;  %v4384_v48 = vpack.c.bf16 %v4382_v45, %v4382_v45  ;;  %v8008_v29 = vld [vmem:[#allocation12 + $0x10] ss:$8 sps:$4 sm:$0xff]   ;;  %v8011_v39 = vld [vmem:[#allocation12 + $0x20] ss:$8 sps:$4 sm:$0xff]   ;;  %v8016_v45 = vld [vmem:[#allocation12 + $0x34] ss:$8 sps:$4 sm:$0xff]  }
 0xf30   :  { %v4385_v49 = vpack.c.bf16 %v4383_v46, %v4383_v46  ;;  %v8014_v46 = vld [vmem:[#allocation12 + $0x30] ss:$8 sps:$4 sm:$0xff]  }
 0xf31   :  { %v4393_v50 = vsel %vm4391_vm2, %v4384_v48, 0  ;;  %v8019_v48 = vld [vmem:[#allocation12 + $0x44] ss:$8 sps:$4 sm:$0xff]  }
 0xf32   :  { %6621 = vmatprep.subr.msk.bf16.mxu1 %vm4391_vm2, %v4385_v49  ;;  %6691 = vmatprep.subr.msk.bf16.mxu0 %vm4391_vm2, %v4385_v49 }
 0xf33   :  { %4399 = vmatpush1.bf16.msra.mxu1 %v4393_v50  ;;  %4962 = vmatpush1.bf16.msra.mxu0 %v4393_v50 }
 0xf34   :  { %6624 = vmatprep.subr.msk.bf16.mxu1 %vm4391_vm2, %v4385_v49  ;;  %6726 = vmatprep.subr.msk.bf16.mxu0 %vm4391_vm2, %v4385_v49  ;;  %v8017_v49 = vld [vmem:[#allocation12 + $0x40] ss:$8 sps:$4 sm:$0xff]  }
 0xf36   :  { %6622 = vmatmul.mubr.msk.bf16.vlgmr.msra.gmra.mrb[44].mxu1 %vm4387_vm3, %v4386_v54  ;;  %6692 = vmatmul.mubr.msk.bf16.vlgmr.msra.gmra.mrb[44].mxu0 %vm4387_vm3, %v6690_v7  ;;  %v8020_v54 = vld [vmem:[#allocation12 + $0x50] ss:$8 sps:$4 sm:$0xff]   ;;  %v8025_v7 = vld [vmem:[#allocation12 + $0x64] ss:$8 sps:$4 sm:$0xff]  }
 0xf37   :  { %4479 = vmatpush1.bf16.msra.mxu1 %v4393_v50  ;;  %5246 = vmatpush1.bf16.msra.mxu0 %v4393_v50  ;;  %v8022_v50 = vld [vmem:[#allocation12 + $0x54] ss:$8 sps:$4 sm:$0xff]  }
 0xf38   :  { %4510 = vmatprep.mubr.bf16.mxu1 %v8431_v25  ;;  %4714 = vmatprep.subr.bf16.mxu1 %v7959_v11  ;;  %v8023_v11 = vld [vmem:[#allocation12 + $0x60] ss:$8 sps:$4 sm:$0xff]  }
 0xf39   :  { %5277 = vmatprep.mubr.bf16.mxu0 %v8431_v25  ;;  %v7963_v25 = vld [vmem:[#allocation12 + $0x120] ss:$8 sps:$4 sm:$0xff]  }
 0xf3e   :  { %6625 = vmatmul.mubr.msk.bf16.vlgmr.msra.gmra.mrb[48].mxu1 %vm4387_vm3, %v6623_v55  ;;  %6727 = vmatmul.mubr.msk.bf16.vlgmr.msra.gmra.mrb[48].mxu0 %vm4387_vm3, %v6725_v58  ;;  %v8028_v55 = vld [vmem:[#allocation12 + $0x74] ss:$8 sps:$4 sm:$0xff]   ;;  %v8031_v58 = vld [vmem:[#allocation12 + $0x84] ss:$8 sps:$4 sm:$0xff]  }
 0xf3f   :  { %4715 = vmatpush1.bf16.msra.mxu1 %v7957_v57  ;;  %v8026_v57 = vld [vmem:[#allocation12 + $0x70] ss:$8 sps:$4 sm:$0xff]  }
 0xf40   :  { %4716 = vmatprep.subr.bf16.mxu1 %v7962_v31  ;;  %v8029_v31 = vld [vmem:[#allocation12 + $0x80] ss:$8 sps:$4 sm:$0xff]  }
 0xf43   :  { %4717 = vmatpush1.bf16.msra.mxu1 %v7960_v60  ;;  %v8034_v60 = vld [vmem:[#allocation12 + $0x94] ss:$8 sps:$4 sm:$0xff]  }
 0xf44   :  { %4718 = vmatprep.subr.bf16.mxu1 %v7965_v62  ;;  %v8032_v62 = vld [vmem:[#allocation12 + $0x90] ss:$8 sps:$4 sm:$0xff]  }
 0xf47   :  { %4719 = vmatpush1.bf16.msra.mxu1 %v7963_v25  ;;  %v8037_v25 = vld [vmem:[#allocation12 + $0xa4] ss:$8 sps:$4 sm:$0xff]  }
 0xf48   :  { %4720 = vmatprep.subr.bf16.mxu1 %v7968_v63  ;;  %v8035_v63 = vld [vmem:[#allocation12 + $0xa0] ss:$8 sps:$4 sm:$0xff]  }
 0xf4b   :  { %4721 = vmatpush1.bf16.msra.mxu1 %v7966_v1  ;;  %v8040_v1 = vld [vmem:[#allocation12 + $0xb4] ss:$8 sps:$4 sm:$0xff]  }
 0xf4c   :  { %4722 = vmatprep.subr.bf16.mxu1 %v7971_v2  ;;  %v8038_v2 = vld [vmem:[#allocation12 + $0xb0] ss:$8 sps:$4 sm:$0xff]  }
 0xf4f   :  { %4723 = vmatpush1.bf16.msra.mxu1 %v7969_v4  ;;  %v8043_v4 = vld [vmem:[#allocation12 + $0xc4] ss:$8 sps:$4 sm:$0xff]  }
 0xf50   :  { %4724 = vmatprep.subr.bf16.mxu1 %v7974_v24  ;;  %v8041_v24 = vld [vmem:[#allocation12 + $0xc0] ss:$8 sps:$4 sm:$0xff]  }
 0xf53   :  { %4725 = vmatpush1.bf16.msra.mxu1 %v7972_v34  ;;  %v8046_v34 = vld [vmem:[#allocation12 + $0xd4] ss:$8 sps:$4 sm:$0xff]  }
 0xf54   :  { %4726 = vmatprep.subr.bf16.mxu1 %v7977_v36  ;;  %v8044_v36 = vld [vmem:[#allocation12 + $0xd0] ss:$8 sps:$4 sm:$0xff]  }
 0xf57   :  { %4727 = vmatpush1.bf16.msra.mxu1 %v7975_v42  ;;  %v8049_v42 = vld [vmem:[#allocation12 + $0xe4] ss:$8 sps:$4 sm:$0xff]  }
 0xf58   :  { %4728 = vmatprep.subr.bf16.mxu1 %v7980_v28  ;;  %v8047_v28 = vld [vmem:[#allocation12 + $0xe0] ss:$8 sps:$4 sm:$0xff]  }
 0xf5b   :  { %4729 = vmatpush1.bf16.msra.mxu1 %v7978_v47 }
 0xf5c   :  { %4730 = vmatprep.subr.bf16.mxu1 %v7983_v44  ;;  %v8052_v44 = vld [vmem:[#allocation12 + $0xf4] ss:$8 sps:$4 sm:$0xff]  }
 0xf5f   :  { %4731 = vmatpush1.bf16.msra.mxu1 %v7981_v51 }
 0xf60   :  { %4732 = vmatprep.subr.bf16.mxu1 %v7986_v53 }
 0xf63   :  { %4733 = vmatpush1.bf16.msra.mxu1 %v7984_v10 }
 0xf64   :  { %4734 = vmatprep.subr.bf16.mxu1 %v7989_v56  ;;  %v8050_v56 = vld [vmem:[#allocation12 + $0xf0] ss:$8 sps:$4 sm:$0xff]  }
 0xf67   :  { %4735 = vmatpush1.bf16.msra.mxu1 %v7987_v59  ;;  %v8055_v59 = vld [vmem:[#allocation12 + $0x204] ss:$8 sps:$4 sm:$0xff]  }
 0xf68   :  { %4736 = vmatprep.subr.bf16.mxu1 %v7992_v61  ;;  %v8053_v61 = vld [vmem:[#allocation12 + $0x200] ss:$8 sps:$4 sm:$0xff]  }
 0xf6b   :  { %4737 = vmatpush1.bf16.msra.mxu1 %v7990_v0 }
 0xf6c   :  { %4738 = vmatprep.subr.bf16.mxu1 %v7995_v3 }
 0xf6f   :  { %4739 = vmatpush1.bf16.msra.mxu1 %v7993_v5  ;;  %v8058_v5 = vld [vmem:[#allocation12 + $0x214] ss:$8 sps:$4 sm:$0xff]  }
 0xf70   :  { %4740 = vmatprep.subr.bf16.mxu1 %v7998_v8  ;;  %v8056_v8 = vld [vmem:[#allocation12 + $0x210] ss:$8 sps:$4 sm:$0xff]  }
 0xf73   :  { %4741 = vmatpush1.bf16.msra.mxu1 %v7996_v13  ;;  %v8061_v13 = vld [vmem:[#allocation12 + $0x224] ss:$8 sps:$4 sm:$0xff]  }
 0xf74   :  { %4742 = vmatprep.subr.bf16.mxu1 %v8001_v15  ;;  %v5540_v15 = vld [vmem:[#allocation13 + $0x80] sm:$0xff] }
 0xf77   :  { %4743 = vmatpush1.bf16.msra.mxu1 %v7999_v16  ;;  %v5541_v16 = vld [vmem:[#allocation13 + $0x88] sm:$0xff] }
 0xf78   :  { %4744 = vmatprep.subr.bf16.mxu1 %v8004_v18  ;;  %v5524_v18 = vld [vmem:[#allocation13] sm:$0xff] }
 0xf7b   :  { %4745 = vmatpush1.bf16.msra.mxu1 %v8002_v30  ;;  %v9812_v30 = vpack.c.bf16 %v5541_v16, %v5540_v15  ;;  %v8112_v15 = vld [vmem:[#allocation12 + $0x334] ss:$8 sps:$4 sm:$0xff]   ;;  %v8110_v16 = vld [vmem:[#allocation12 + $0x330] ss:$8 sps:$4 sm:$0xff]  }
 0xf7c   :  { %4915 = vmatprep.subr.bf16.mxu1 %v8007_v33  ;;  %v5525_v33 = vld [vmem:[#allocation13 + $0x8] sm:$0xff] }
 0xf7d   :  { %7247 = vmatprep.subr.bf16.mxu0 %v9812_v30 }
0x1009   :  { %v9798_v19 = vpop.f32.mrb[44].mxu1  ;;  %v9800_v23 = vpop.f32.mrb[44].mxu0 }
0x100a   :  { %v4434_v20 = vpop.f32.mrb[45].mxu1  ;;  %v9802_v17 = vpop.f32.mrb[45].mxu0  ;;  %v4439_v3 = vpack.c.bf16 %v9798_v19, %v9798_v19  ;;  %v5526_v19 = vld [vmem:[#allocation13 + $0x10] sm:$0xff] }
0x100b   :  { %v4436_v21 = vpop.f32.mrb[46].mxu1  ;;  %v4999_v12 = vpop.f32.mrb[46].mxu0  ;;  %v4440_v6 = vpack.c.bf16 %v4434_v20, %v4434_v20  ;;  %v5003_v0 = vpack.c.bf16 %v9802_v17, %v9802_v17  ;;  %v5542_v20 = vld [vmem:[#allocation13 + $0x90] sm:$0xff] }
0x100c   :  { %v4437_v32 = vpop.f32.mrb[47].mxu1  ;;  %v5000_v35 = vpop.f32.mrb[47].mxu0  ;;  %v5543_v21 = vld [vmem:[#allocation13 + $0x98] sm:$0xff] }
0x100d   :  { %v9814_v32 = vpack.c.bf16 %v5525_v33, %v5524_v18  ;;  %v9816_v17 = vpack.c.bf16 %v5543_v21, %v5542_v20  ;;  %v5527_v12 = vld [vmem:[#allocation13 + $0x18] sm:$0xff]  ;;  %v5545_v35 = vld [vmem:[#allocation13 + $0xa8] sm:$0xff] }
0x100e   :  { %v8113_v18 = vld [vmem:[#allocation12 + $0x340] ss:$8 sps:$4 sm:$0xff]   ;;  %v8116_v33 = vld [vmem:[#allocation12 + $0x350] ss:$8 sps:$4 sm:$0xff]   ;;  %v8121_v20 = vld [vmem:[#allocation12 + $0x364] ss:$8 sps:$4 sm:$0xff]  }
0x100f   :  { %7249 = vmatpush3.bf16.msra.mxu0 %v9814_v32  ;;  %v8119_v21 = vld [vmem:[#allocation12 + $0x360] ss:$8 sps:$4 sm:$0xff]  }
0x1010   :  { %7251 = vmatprep.subr.bf16.mxu0 %v9816_v17 }
0x1011   :  { %v4512_v27 = vpop.f32.mrb[48].mxu1  ;;  %v9804_v47 = vpop.f32.mrb[48].mxu0 }
0x1012   :  { %v4514_v14 = vpop.f32.mrb[49].mxu1  ;;  %v4519_v9 = vpack.c.bf16 %v4512_v27, %v4512_v27  ;;  %v9806_v51 = vpop.f32.mrb[49].mxu0  ;;  %v5544_v27 = vld [vmem:[#allocation13 + $0xa0] sm:$0xff] }
0x1013   :  { %v4520_v22 = vpack.c.bf16 %v4514_v14, %v4514_v14  ;;  %v4516_v38 = vpop.f32.mrb[50].mxu1  ;;  %v5283_v53 = vpop.f32.mrb[50].mxu0  ;;  %v9820_v14 = vpack.c.bf16 %v5527_v12, %v5526_v19  ;;  %v8124_v19 = vld [vmem:[#allocation12 + $0x374] ss:$8 sps:$4 sm:$0xff]   ;;  %v8122_v12 = vld [vmem:[#allocation12 + $0x370] ss:$8 sps:$4 sm:$0xff]  }
0x1014   :  { %v4517_v40 = vpop.f32.mrb[51].mxu1  ;;  %v5284_v10 = vpop.f32.mrb[51].mxu0  ;;  %v9823_v38 = vpack.c.bf16 %v5545_v35, %v5544_v27  ;;  %v8100_v53 = vld [vmem:[#allocation12 + $0x2f4] ss:$8 sps:$4 sm:$0xff]   ;;  %v8127_v27 = vld [vmem:[#allocation12 + $0x384] ss:$8 sps:$4 sm:$0xff]  }
0x1015   :  { %4746 = vmatprep.mubr.bf16.mxu1 %v4520_v22  ;;  %v8059_v22 = vld [vmem:[#allocation12 + $0x220] ss:$8 sps:$4 sm:$0xff]   ;;  %v8064_v40 = vld [vmem:[#allocation12 + $0x234] ss:$8 sps:$4 sm:$0xff]   ;;  %7253 = vmatpush3.bf16.msra.mxu0 %v9820_v14  ;;  %v8098_v10 = vld [vmem:[#allocation12 + $0x2f0] ss:$8 sps:$4 sm:$0xff]  }
0x1016   :  { %4747 = vmatmul.mubr.bf16.vlgmr.msra.gmra.mrb[52].mxu1 %v4519_v9  ;;  %v5529_v9 = vld [vmem:[#allocation13 + $0x28] sm:$0xff]  ;;  %7255 = vmatprep.subr.bf16.mxu0 %v9823_v38 }
0x1017   :  { %4916 = vmatpush1.bf16.msra.mxu1 %v8005_v26  ;;  %4947 = vmatprep.mubr.bf16.mxu1 %v4440_v6  ;;  %v5528_v26 = vld [vmem:[#allocation13 + $0x20] sm:$0xff]  ;;  %v5547_v6 = vld [vmem:[#allocation13 + $0xb8] sm:$0xff] }
0x1018   :  { %4917 = vmatprep.subr.bf16.mxu1 %v8010_v41  ;;  %v5546_v41 = vld [vmem:[#allocation13 + $0xb0] sm:$0xff]  ;;  %v8125_v35 = vld [vmem:[#allocation12 + $0x380] ss:$8 sps:$4 sm:$0xff]  }
0x101b   :  { %4918 = vmatpush1.bf16.msra.mxu1 %v8008_v29  ;;  %v9826_v29 = vpack.c.bf16 %v5529_v9, %v5528_v26  ;;  %v8128_v26 = vld [vmem:[#allocation12 + $0x390] ss:$8 sps:$4 sm:$0xff]   ;;  %v8133_v9 = vld [vmem:[#allocation12 + $0x3a4] ss:$8 sps:$4 sm:$0xff]  }
0x101c   :  { %4919 = vmatprep.subr.bf16.mxu1 %v8013_v37  ;;  %v8062_v37 = vld [vmem:[#allocation12 + $0x230] ss:$8 sps:$4 sm:$0xff]  }
0x101d   :  { %7257 = vmatpush3.bf16.msra.mxu0 %v9826_v29 }
0x101f   :  { %4920 = vmatpush1.bf16.msra.mxu1 %v8011_v39  ;;  %v9829_v39 = vpack.c.bf16 %v5547_v6, %v5546_v41  ;;  %v8136_v41 = vld [vmem:[#allocation12 + $0x3b4] ss:$8 sps:$4 sm:$0xff]   ;;  %v8134_v6 = vld [vmem:[#allocation12 + $0x3b0] ss:$8 sps:$4 sm:$0xff]  }
0x1020   :  { %4921 = vmatprep.subr.bf16.mxu1 %v8016_v45  ;;  %v5530_v45 = vld [vmem:[#allocation13 + $0x30] sm:$0xff] }
0x1021   :  { %7259 = vmatprep.subr.bf16.mxu0 %v9829_v39 }
0x1023   :  { %4922 = vmatpush1.bf16.msra.mxu1 %v8014_v46  ;;  %v5531_v46 = vld [vmem:[#allocation13 + $0x38] sm:$0xff] }
0x1024   :  { %4923 = vmatprep.subr.bf16.mxu1 %v8019_v48  ;;  %v8067_v48 = vld [vmem:[#allocation12 + $0x244] ss:$8 sps:$4 sm:$0xff]  }
0x1027   :  { %4924 = vmatpush1.bf16.msra.mxu1 %v8017_v49  ;;  %v9832_v49 = vpack.c.bf16 %v5531_v46, %v5530_v45  ;;  %v8137_v45 = vld [vmem:[#allocation12 + $0x3c0] ss:$8 sps:$4 sm:$0xff]   ;;  %v8142_v46 = vld [vmem:[#allocation12 + $0x3d4] ss:$8 sps:$4 sm:$0xff]  }
0x1028   :  { %4925 = vmatprep.subr.bf16.mxu1 %v8022_v50  ;;  %v8065_v50 = vld [vmem:[#allocation12 + $0x240] ss:$8 sps:$4 sm:$0xff]  }
0x1029   :  { %7261 = vmatpush3.bf16.msra.mxu0 %v9832_v49 }
0x102b   :  { %4926 = vmatpush1.bf16.msra.mxu1 %v8020_v54  ;;  %v8070_v54 = vld [vmem:[#allocation12 + $0x254] ss:$8 sps:$4 sm:$0xff]  }
0x102c   :  { %4927 = vmatprep.subr.bf16.mxu1 %v8025_v7  ;;  %v8068_v7 = vld [vmem:[#allocation12 + $0x250] ss:$8 sps:$4 sm:$0xff]  }
0x102f   :  { %4928 = vmatpush1.bf16.msra.mxu1 %v8023_v11  ;;  %v8073_v11 = vld [vmem:[#allocation12 + $0x264] ss:$8 sps:$4 sm:$0xff]  }
0x1030   :  { %4929 = vmatprep.subr.bf16.mxu1 %v8028_v55  ;;  %v8071_v55 = vld [vmem:[#allocation12 + $0x260] ss:$8 sps:$4 sm:$0xff]  }
0x1033   :  { %4930 = vmatpush1.bf16.msra.mxu1 %v8026_v57  ;;  %v8076_v57 = vld [vmem:[#allocation12 + $0x274] ss:$8 sps:$4 sm:$0xff]  }
0x1034   :  { %4931 = vmatprep.subr.bf16.mxu1 %v8031_v58  ;;  %v8074_v58 = vld [vmem:[#allocation12 + $0x270] ss:$8 sps:$4 sm:$0xff]  }
0x1037   :  { %4932 = vmatpush1.bf16.msra.mxu1 %v8029_v31  ;;  %v8079_v31 = vld [vmem:[#allocation12 + $0x284] ss:$8 sps:$4 sm:$0xff]  }
0x1038   :  { %4933 = vmatprep.subr.bf16.mxu1 %v8034_v60  ;;  %v8077_v60 = vld [vmem:[#allocation12 + $0x280] ss:$8 sps:$4 sm:$0xff]  }
0x103b   :  { %4934 = vmatpush1.bf16.msra.mxu1 %v8032_v62  ;;  %v8082_v62 = vld [vmem:[#allocation12 + $0x294] ss:$8 sps:$4 sm:$0xff]  }
0x103c   :  { %4935 = vmatprep.subr.bf16.mxu1 %v8037_v25  ;;  %v8080_v25 = vld [vmem:[#allocation12 + $0x290] ss:$8 sps:$4 sm:$0xff]  }
0x103f   :  { %4936 = vmatpush1.bf16.msra.mxu1 %v8035_v63  ;;  %v8085_v63 = vld [vmem:[#allocation12 + $0x2a4] ss:$8 sps:$4 sm:$0xff]  }
0x1040   :  { %4937 = vmatprep.subr.bf16.mxu1 %v8040_v1  ;;  %v8083_v1 = vld [vmem:[#allocation12 + $0x2a0] ss:$8 sps:$4 sm:$0xff]  }
0x1043   :  { %4938 = vmatpush1.bf16.msra.mxu1 %v8038_v2  ;;  %v8088_v2 = vld [vmem:[#allocation12 + $0x2b4] ss:$8 sps:$4 sm:$0xff]  }
0x1044   :  { %4939 = vmatprep.subr.bf16.mxu1 %v8043_v4  ;;  %v8086_v4 = vld [vmem:[#allocation12 + $0x2b0] ss:$8 sps:$4 sm:$0xff]  }
0x1047   :  { %4940 = vmatpush1.bf16.msra.mxu1 %v8041_v24  ;;  %v8091_v24 = vld [vmem:[#allocation12 + $0x2c4] ss:$8 sps:$4 sm:$0xff]  }
0x1048   :  { %4941 = vmatprep.subr.bf16.mxu1 %v8046_v34  ;;  %v8089_v34 = vld [vmem:[#allocation12 + $0x2c0] ss:$8 sps:$4 sm:$0xff]  }
0x104b   :  { %4942 = vmatpush1.bf16.msra.mxu1 %v8044_v36  ;;  %v8094_v36 = vld [vmem:[#allocation12 + $0x2d4] ss:$8 sps:$4 sm:$0xff]  }
0x104c   :  { %4943 = vmatprep.subr.bf16.mxu1 %v8049_v42  ;;  %v8092_v42 = vld [vmem:[#allocation12 + $0x2d0] ss:$8 sps:$4 sm:$0xff]  }
0x104f   :  { %4944 = vmatpush1.bf16.msra.mxu1 %v8047_v28  ;;  %v8097_v28 = vld [vmem:[#allocation12 + $0x2e4] ss:$8 sps:$4 sm:$0xff]  }
0x1050   :  { %4945 = vmatprep.subr.bf16.mxu1 %v8052_v44  ;;  %v8095_v44 = vld [vmem:[#allocation12 + $0x2e0] ss:$8 sps:$4 sm:$0xff]  }
0x1053   :  { %4946 = vmatpush1.bf16.msra.mxu1 %v8050_v56  ;;  %v8103_v56 = vld [vmem:[#allocation12 + $0x304] ss:$8 sps:$4 sm:$0xff]  }
0x1054   :  { %5197 = vmatprep.subr.bf16.mxu1 %v8055_v59  ;;  %v5002_v59 = vpack.c.bf16 %v9800_v23, %v9800_v23  ;;  %v8115_v23 = vld [vmem:[#allocation12 + $0x344] ss:$8 sps:$4 sm:$0xff]  }
0x1056   :  { %4948 = vmatmul.mubr.bf16.vlgmr.msra.gmra.mrb[52].mxu1 %v4439_v3  ;;  %v8106_v3 = vld [vmem:[#allocation12 + $0x314] ss:$8 sps:$4 sm:$0xff]  }
0x1057   :  { %5198 = vmatpush1.bf16.msra.mxu1 %v8053_v61  ;;  %5229 = vmatprep.mubr.bf16.mxu1 %v5003_v0  ;;  %v8101_v61 = vld [vmem:[#allocation12 + $0x300] ss:$8 sps:$4 sm:$0xff]   ;;  %v5287_v0 = vpack.c.bf16 %v9806_v51, %v9806_v51  ;;  %v8118_v51 = vld [vmem:[#allocation12 + $0x354] ss:$8 sps:$4 sm:$0xff]  }
0x1058   :  { %5199 = vmatprep.subr.bf16.mxu1 %v8058_v5  ;;  %v8104_v5 = vld [vmem:[#allocation12 + $0x310] ss:$8 sps:$4 sm:$0xff]  }
0x105b   :  { %5200 = vmatpush1.bf16.msra.mxu1 %v8056_v8  ;;  %v8109_v8 = vld [vmem:[#allocation12 + $0x324] ss:$8 sps:$4 sm:$0xff]  }
0x105c   :  { %5201 = vmatprep.subr.bf16.mxu1 %v8061_v13  ;;  %v8107_v13 = vld [vmem:[#allocation12 + $0x320] ss:$8 sps:$4 sm:$0xff]  }
0x105f   :  { %5202 = vmatpush1.bf16.msra.mxu1 %v8059_v22  ;;  %v8130_v22 = vld [vmem:[#allocation12 + $0x394] ss:$8 sps:$4 sm:$0xff]  }
0x1060   :  { %5203 = vmatprep.subr.bf16.mxu1 %v8064_v40  ;;  %v8131_v40 = vld [vmem:[#allocation12 + $0x3a0] ss:$8 sps:$4 sm:$0xff]  }
0x1063   :  { %5204 = vmatpush1.bf16.msra.mxu1 %v8062_v37  ;;  %v8139_v37 = vld [vmem:[#allocation12 + $0x3c4] ss:$8 sps:$4 sm:$0xff]  }
0x1064   :  { %5205 = vmatprep.subr.bf16.mxu1 %v8067_v48  ;;  %v8140_v48 = vld [vmem:[#allocation12 + $0x3d0] ss:$8 sps:$4 sm:$0xff]  }
0x1067   :  { %5206 = vmatpush1.bf16.msra.mxu1 %v8065_v50  ;;  %v8145_v50 = vld [vmem:[#allocation12 + $0x3e4] ss:$8 sps:$4 sm:$0xff]  }
0x1068   :  { %5207 = vmatprep.subr.bf16.mxu1 %v8070_v54  ;;  %v8143_v54 = vld [vmem:[#allocation12 + $0x3e0] ss:$8 sps:$4 sm:$0xff]  }
0x106b   :  { %5208 = vmatpush1.bf16.msra.mxu1 %v8068_v7  ;;  %v8148_v7 = vld [vmem:[#allocation12 + $0x3f4] ss:$8 sps:$4 sm:$0xff]  }
0x106c   :  { %5209 = vmatprep.subr.bf16.mxu1 %v8073_v11  ;;  %v8146_v11 = vld [vmem:[#allocation12 + $0x3f0] ss:$8 sps:$4 sm:$0xff]  }
0x106f   :  { %5210 = vmatpush1.bf16.msra.mxu1 %v8071_v55  ;;  %v5286_v55 = vpack.c.bf16 %v9804_v47, %v9804_v47 }
0x1070   :  { %5211 = vmatprep.subr.bf16.mxu1 %v8076_v57  ;;  %v5548_v57 = vld [vmem:[#allocation13 + $0xc0] sm:$0xff] }
0x1073   :  { %5212 = vmatpush1.bf16.msra.mxu1 %v8074_v58  ;;  %v5549_v58 = vld [vmem:[#allocation13 + $0xc8] sm:$0xff] }
0x1074   :  { %5213 = vmatprep.subr.bf16.mxu1 %v8079_v31  ;;  %v9842_v31 = vpack.c.bf16 %v5549_v58, %v5548_v57  ;;  %v5567_v57 = vld [vmem:[#allocation15 + $0x58] sm:$0xff] }
0x1076   :  { %7263 = vmatprep.subr.bf16.mxu0 %v9842_v31 }
0x1077   :  { %5214 = vmatpush1.bf16.msra.mxu1 %v8077_v60  ;;  %v5532_v60 = vld [vmem:[#allocation13 + $0x40] sm:$0xff] }
0x1078   :  { %5215 = vmatprep.subr.bf16.mxu1 %v8082_v62  ;;  %v5533_v62 = vld [vmem:[#allocation13 + $0x48] sm:$0xff] }
0x107b   :  { %5216 = vmatpush1.bf16.msra.mxu1 %v8080_v25  ;;  %v9844_v25 = vpack.c.bf16 %v5533_v62, %v5532_v60  ;;  %v5564_v62 = vld [vmem:[#allocation15 + $0x40] sm:$0xff] }
0x107c   :  { %5217 = vmatprep.subr.bf16.mxu1 %v8085_v63  ;;  %v5550_v63 = vld [vmem:[#allocation13 + $0xd0] sm:$0xff] }
0x107d   :  { %7265 = vmatpush3.bf16.msra.mxu0 %v9844_v25 }
0x107f   :  { %5218 = vmatpush1.bf16.msra.mxu1 %v8083_v1  ;;  %v5551_v1 = vld [vmem:[#allocation13 + $0xd8] sm:$0xff] }
0x1080   :  { %5219 = vmatprep.subr.bf16.mxu1 %v8088_v2  ;;  %v9848_v2 = vpack.c.bf16 %v5551_v1, %v5550_v63  ;;  %v5566_v63 = vld [vmem:[#allocation15 + $0x50] sm:$0xff]  ;;  %v5569_v1 = vld [vmem:[#allocation15 + $0x68] sm:$0xff] }
0x1082   :  { %7267 = vmatprep.subr.bf16.mxu0 %v9848_v2 }
0x1083   :  { %5220 = vmatpush1.bf16.msra.mxu1 %v8086_v4  ;;  %v5534_v4 = vld [vmem:[#allocation13 + $0x50] sm:$0xff] }
0x1084   :  { %5221 = vmatprep.subr.bf16.mxu1 %v8091_v24  ;;  %v5535_v24 = vld [vmem:[#allocation13 + $0x58] sm:$0xff] }
0x1085   :  { %v9850_v47 = vpack.c.bf16 %v5535_v24, %v5534_v4  ;;  %v5571_v4 = vld [vmem:[#allocation15 + $0x78] sm:$0xff]  ;;  %v9889_v24 = vpack.c.bf16 %v5566_v63, %v5564_v62 }
0x1087   :  { %5222 = vmatpush1.bf16.msra.mxu1 %v8089_v34  ;;  %7269 = vmatpush3.bf16.msra.mxu0 %v9850_v47  ;;  %v5552_v34 = vld [vmem:[#allocation13 + $0xe0] sm:$0xff] }
0x1088   :  { %5223 = vmatprep.subr.bf16.mxu1 %v8094_v36  ;;  %v5553_v36 = vld [vmem:[#allocation13 + $0xe8] sm:$0xff] }
0x108b   :  { %5224 = vmatpush1.bf16.msra.mxu1 %v8092_v42  ;;  %v9854_v42 = vpack.c.bf16 %v5553_v36, %v5552_v34  ;;  %v9892_v34 = vpack.c.bf16 %v5571_v4, %v5569_v1  ;;  %v5568_v36 = vld [vmem:[#allocation15 + $0x60] sm:$0xff] }
0x108c   :  { %5225 = vmatprep.subr.bf16.mxu1 %v8097_v28  ;;  %v5536_v28 = vld [vmem:[#allocation13 + $0x60] sm:$0xff] }
0x108d   :  { %7271 = vmatprep.subr.bf16.mxu0 %v9854_v42 }
0x108f   :  { %5226 = vmatpush1.bf16.msra.mxu1 %v8095_v44  ;;  %v5537_v44 = vld [vmem:[#allocation13 + $0x68] sm:$0xff] }
0x1090   :  { %5227 = vmatprep.subr.bf16.mxu1 %v8100_v53  ;;  %v9856_v53 = vpack.c.bf16 %v5537_v44, %v5536_v28  ;;  %v5570_v28 = vld [vmem:[#allocation15 + $0x70] sm:$0xff]  ;;  %v5573_v44 = vld [vmem:[#allocation15 + $0x88] sm:$0xff] }
0x1092   :  { %7273 = vmatpush3.bf16.msra.mxu0 %v9856_v53 }
0x1093   :  { %5228 = vmatpush1.bf16.msra.mxu1 %v8098_v10  ;;  %v5554_v10 = vld [vmem:[#allocation13 + $0xf0] sm:$0xff] }
0x1094   :  { %5481 = vmatprep.subr.bf16.mxu1 %v8103_v56  ;;  %v5555_v56 = vld [vmem:[#allocation13 + $0xf8] sm:$0xff] }
0x1096   :  { %5230 = vmatmul.mubr.bf16.vlgmr.msra.gmra.mrb[52].mxu1 %v5002_v59  ;;  %v9860_v59 = vpack.c.bf16 %v5555_v56, %v5554_v10  ;;  %v5575_v10 = vld [vmem:[#allocation15 + $0x98] sm:$0xff]  ;;  %v9895_v56 = vpack.c.bf16 %v5570_v28, %v5568_v36 }
0x1097   :  { %5482 = vmatpush1.bf16.msra.mxu1 %v8101_v61  ;;  %5513 = vmatprep.mubr.bf16.mxu1 %v5287_v0  ;;  %v5538_v61 = vld [vmem:[#allocation13 + $0x70] sm:$0xff]  ;;  %v5539_v0 = vld [vmem:[#allocation13 + $0x78] sm:$0xff] }
0x1098   :  { %5483 = vmatprep.subr.bf16.mxu1 %v8106_v3  ;;  %v9862_v3 = vpack.c.bf16 %v5539_v0, %v5538_v61  ;;  %7275 = vmatprep.subr.bf16.mxu0 %v9860_v59  ;;  %v9898_v61 = vpack.c.bf16 %v5575_v10, %v5573_v44  ;;  %v5572_v0 = vld [vmem:[#allocation15 + $0x80] sm:$0xff] }
0x1099   :  { %v5841_v10 = vld [vmem:[#allocation16] sm:$0x1] }
0x109a   :  { %7277 = vmatpush3.bf16.msra.mxu0 %v9862_v3 }
0x109b   :  { %5484 = vmatpush1.bf16.msra.mxu1 %v8104_v5  ;;  %v5557_v5 = vld [vmem:[#allocation15 + $0x8] sm:$0xff] }
0x109c   :  { %5485 = vmatprep.subr.bf16.mxu1 %v8109_v8  ;;  %v5559_v8 = vld [vmem:[#allocation15 + $0x18] sm:$0xff] }
0x109f   :  { %5486 = vmatpush1.bf16.msra.mxu1 %v8107_v13  ;;  %v9866_v13 = vpack.c.bf16 %v5559_v8, %v5557_v5  ;;  %v5574_v5 = vld [vmem:[#allocation15 + $0x90] sm:$0xff]  ;;  %v5577_v8 = vld [vmem:[#allocation15 + $0xa8] sm:$0xff] }
0x10a0   :  { %5487 = vmatprep.subr.bf16.mxu1 %v8112_v15 }
0x10a1   :  { %7279 = vmatprep.subr.bf16.mxu0 %v9866_v13 }
0x10a3   :  { %5488 = vmatpush1.bf16.msra.mxu1 %v8110_v16 }
0x10a4   :  { %5489 = vmatprep.subr.bf16.mxu1 %v8115_v23 }
0x10a7   :  { %5490 = vmatpush1.bf16.msra.mxu1 %v8113_v18 }
0x10a8   :  { %5491 = vmatprep.subr.bf16.mxu1 %v8118_v51 }
0x10ab   :  { %5492 = vmatpush1.bf16.msra.mxu1 %v8116_v33 }
0x10ac   :  { %5493 = vmatprep.subr.bf16.mxu1 %v8121_v20 }
0x10af   :  { %5494 = vmatpush1.bf16.msra.mxu1 %v8119_v21 }
0x10b0   :  { %5495 = vmatprep.subr.bf16.mxu1 %v8124_v19 }
0x10b3   :  { %5496 = vmatpush1.bf16.msra.mxu1 %v8122_v12 }
0x10b4   :  { %5497 = vmatprep.subr.bf16.mxu1 %v8127_v27 }
0x10b7   :  { %5498 = vmatpush1.bf16.msra.mxu1 %v8125_v35 }
0x10b8   :  { %5499 = vmatprep.subr.bf16.mxu1 %v8130_v22 }
0x10bb   :  { %5500 = vmatpush1.bf16.msra.mxu1 %v8128_v26 }
0x10bc   :  { %5501 = vmatprep.subr.bf16.mxu1 %v8133_v9 }
0x10bf   :  { %5502 = vmatpush1.bf16.msra.mxu1 %v8131_v40  ;;  %v5556_v40 = vld [vmem:[#allocation15] sm:$0xff] }
0x10c0   :  { %5503 = vmatprep.subr.bf16.mxu1 %v8136_v41  ;;  %v5558_v41 = vld [vmem:[#allocation15 + $0x10] sm:$0xff] }
0x10c3   :  { %5504 = vmatpush1.bf16.msra.mxu1 %v8134_v6 }
0x10c4   :  { %5505 = vmatprep.subr.bf16.mxu1 %v8139_v37  ;;  %v5561_v37 = vld [vmem:[#allocation15 + $0x28] sm:$0xff] }
0x10c7   :  { %5506 = vmatpush1.bf16.msra.mxu1 %v8137_v45  ;;  %v5563_v45 = vld [vmem:[#allocation15 + $0x38] sm:$0xff] }
0x10c8   :  { %5507 = vmatprep.subr.bf16.mxu1 %v8142_v46 }
0x10cb   :  { %5508 = vmatpush1.bf16.msra.mxu1 %v8140_v48  ;;  %v9877_v48 = vpack.c.bf16 %v5558_v41, %v5556_v40  ;;  %v5587_v40 = vld [vmem:[#allocation15 + $0xf8] sm:$0xff] }
0x10cc   :  { %5509 = vmatprep.subr.bf16.mxu1 %v8145_v50 }
0x10cf   :  { %5510 = vmatpush1.bf16.msra.mxu1 %v8143_v54  ;;  %v9879_v54 = vpack.c.bf16 %v5563_v45, %v5561_v37  ;;  %v5586_v37 = vld [vmem:[#allocation15 + $0xf0] sm:$0xff] }
0x10d0   :  { %5511 = vmatprep.subr.bf16.mxu1 %v8148_v7  ;;  %v5560_v7 = vld [vmem:[#allocation15 + $0x20] sm:$0xff] }
0x10d3   :  { %5512 = vmatpush1.bf16.msra.mxu1 %v8146_v11  ;;  %v5562_v11 = vld [vmem:[#allocation15 + $0x30] sm:$0xff] }
0x10d4   :  { %v9882_v58 = vpack.c.bf16 %v5562_v11, %v5560_v7 }
0x10d6   :  { %5514 = vmatmul.mubr.bf16.vlgmr.msra.gmra.mrb[52].mxu1 %v5286_v55  ;;  %v5565_v55 = vld [vmem:[#allocation15 + $0x48] sm:$0xff] }
0x10d7   :  { %v9886_v60 = vpack.c.bf16 %v5567_v57, %v5565_v55 }
0x11a9   :  { %v9869_v15 = vpop.f32.mrb[52].mxu1 }
0x11aa   :  { %v5588_v16 = vsel %vm4391_vm2, %v9869_v15, 0.0  ;;  %v9873_v23 = vpop.f32.mrb[53].mxu1 }
0x11ab   :  { %v5589_v18 = vrot.slane %v5588_v16, 4  ;;  %v5595_v51 = vsel %vm4391_vm2, %v9873_v23, 0.0  ;;  %v5519_v33 = vpop.f32.mrb[54].mxu1 }
0x11ac   :  { %v5596_v20 = vrot.slane %v5595_v51, 4  ;;  %v5520_v21 = vpop.f32.mrb[55].mxu1  ;;  %v5576_v33 = vld [vmem:[#allocation15 + $0xa0] sm:$0xff] }
0x11ad   :  { %v5590_v19 = vadd.f32 %v5589_v18, %v5588_v16  ;;  %v5579_v16 = vld [vmem:[#allocation15 + $0xb8] sm:$0xff]  ;;  %v9901_v18 = vpack.c.bf16 %v5574_v5, %v5572_v0  ;;  %v5581_v21 = vld [vmem:[#allocation15 + $0xc8] sm:$0xff] }
0x11ae   :  { %v5597_v12 = vadd.f32 %v5596_v20, %v5595_v51  ;;  %v9904_v51 = vpack.c.bf16 %v5579_v16, %v5577_v8  ;;  %v5578_v20 = vld [vmem:[#allocation15 + $0xb0] sm:$0xff] }
0x11af   :  { %v5591_v27 = vrot.slane %v5590_v19, 2 }
0x11b0   :  { %v5598_v35 = vrot.slane %v5597_v12, 2 }
0x11b1   :  { %v5592_v22 = vadd.f32 %v5591_v27, %v5590_v19  ;;  %v5583_v19 = vld [vmem:[#allocation15 + $0xd8] sm:$0xff] }
0x11b2   :  { %v5599_v26 = vadd.f32 %v5598_v35, %v5597_v12  ;;  %v9907_v12 = vpack.c.bf16 %v5578_v20, %v5576_v33  ;;  %v9910_v27 = vpack.c.bf16 %v5583_v19, %v5581_v21  ;;  %v5580_v35 = vld [vmem:[#allocation15 + $0xc0] sm:$0xff] }
0x11b3   :  { %v5593_v9 = vrot.slane %v5592_v22, 1  ;;  %v6018_v33 = vld [vmem:[%s10026_s21] sm:$0xff] }
0x11b4   :  { %v5600_v6 = vrot.slane %v5599_v26, 1 }
0x11b5   :  { %v5594_v50 = vadd.f32 %v5593_v9, %v5592_v22  ;;  %v5582_v22 = vld [vmem:[#allocation15 + $0xd0] sm:$0xff]  ;;  %v5585_v9 = vld [vmem:[#allocation15 + $0xe8] sm:$0xff] }
0x11b6   :  { %v5601_v46 = vadd.f32 %v5600_v6, %v5599_v26  ;;  %v9913_v26 = vpack.c.bf16 %v5582_v22, %v5580_v35  ;;  %v9917_v41 = vpack.c.bf16 %v5587_v40, %v5585_v9  ;;  %v5584_v6 = vld [vmem:[#allocation15 + $0xe0] sm:$0xff]  ;;  %v6020_v35 = vcombine.high %v6018_v33, %v6018_v33 }
0x11b7   :  { %v9919_v45 = vpack.c.bf16 %v5586_v37, %v5584_v6 }
0x11b8   :  { %5666 = vmatprep.mubr.f32.mxu0 %v5601_v46 }
0x11b9   :  { %5667 = vmatmul.mubr.f32.vlgmr.msra.gmra.mrb[42].mxu0 %v5594_v50 }
0x11ba   :  { %7281 = vmatpush1.bf16.msra.mxu0 %v9877_v48  ;;  %5737 = vmatprep.mubr.f32.mxu0 %v8432_v43 }
0x11bb   :  { %7283 = vmatprep.subr.bf16.mxu0 %v9879_v54 }
0x11be   :  { %7285 = vmatpush1.bf16.msra.mxu0 %v9882_v58 }
0x11bf   :  { %7287 = vmatprep.subr.bf16.mxu0 %v9886_v60 }
0x11c2   :  { %7289 = vmatpush1.bf16.msra.mxu0 %v9889_v24 }
0x11c3   :  { %7291 = vmatprep.subr.bf16.mxu0 %v9892_v34 }
0x11c6   :  { %7293 = vmatpush1.bf16.msra.mxu0 %v9895_v56 }
0x11c7   :  { %7295 = vmatprep.subr.bf16.mxu0 %v9898_v61 }
0x11ca   :  { %7297 = vmatpush1.bf16.msra.mxu0 %v9901_v18 }
0x11cb   :  { %7299 = vmatprep.subr.bf16.mxu0 %v9904_v51 }
0x11ce   :  { %7301 = vmatpush1.bf16.msra.mxu0 %v9907_v12 }
0x11cf   :  { %7303 = vmatprep.subr.bf16.mxu0 %v9910_v27 }
0x11d2   :  { %7305 = vmatpush1.bf16.msra.mxu0 %v9913_v26 }
0x11d3   :  { %7307 = vmatprep.subr.bf16.mxu0 %v9917_v41 }
0x11d6   :  { %7309 = vmatpush1.bf16.msra.mxu0 %v9919_v45 }
0x11d7   :  { %7311 = vmatprep.subr.bf16.mxu0 %v9812_v30 }
0x128c   :  { %v6960_v46 = vpop.f32.mrb[42].mxu0 }
0x128d   :  { %v6961_v50 = vpop.f32.mrb[43].mxu0 }
0x128e   :  { %v6962_v7 = vadd.f32 %v6961_v50, %v6960_v46 }
0x1290   :  { %v5672_v11 = vmul.f32 0.125, %v6962_v7 }
0x1292   :  { %5738 = vmatmul.mubr.f32.vlgmr.msra.gmra.mrb[52].mxu0 %v5672_v11 }
0x1293   :  { %7313 = vmatpush3.bf16.msra.mxu0 %v9814_v32 }
0x1294   :  { %7315 = vmatprep.subr.bf16.mxu0 %v9816_v17 }
0x1297   :  { %7317 = vmatpush3.bf16.msra.mxu0 %v9820_v14 }
0x1298   :  { %7319 = vmatprep.subr.bf16.mxu0 %v9823_v38 }
0x129b   :  { %7321 = vmatpush3.bf16.msra.mxu0 %v9826_v29 }
0x129c   :  { %7323 = vmatprep.subr.bf16.mxu0 %v9829_v39 }
0x129f   :  { %7325 = vmatpush3.bf16.msra.mxu0 %v9832_v49 }
0x12a0   :  { %7327 = vmatprep.subr.bf16.mxu0 %v9842_v31 }
0x12a3   :  { %7329 = vmatpush3.bf16.msra.mxu0 %v9844_v25 }
0x12a4   :  { %7331 = vmatprep.subr.bf16.mxu0 %v9848_v2 }
0x12a7   :  { %7333 = vmatpush3.bf16.msra.mxu0 %v9850_v47 }
0x12a8   :  { %7335 = vmatprep.subr.bf16.mxu0 %v9854_v42 }
0x12ab   :  { %7337 = vmatpush3.bf16.msra.mxu0 %v9856_v53 }
0x12ac   :  { %7339 = vmatprep.subr.bf16.mxu0 %v9860_v59 }
0x12af   :  { %7341 = vmatpush3.bf16.msra.mxu0 %v9862_v3 }
0x12b0   :  { %7343 = vmatprep.subr.bf16.mxu0 %v9866_v13 }
0x1365   :  { %v5739_v30 = vpop.f32.mrb[52].mxu0 }
0x1366   :  { %v5747_v32 = vrot.slane %v5739_v30, %v9501_v52  ;;  %v5741_v17 = vpop.f32.mrb[53].mxu0 }
0x1367   :  { %v5751_v14 = vrot.slane %v5741_v17, %v9501_v52 }
0x1368   :  { %v9943_v38 = vsub.f32 %v9869_v15, %v5747_v32 }
0x1369   :  { %v9946_v29 = vsub.f32 %v9873_v23, %v5751_v14 }
0x136a   :  { %v5754_v39 = vmul.f32 %v9943_v38, %v9943_v38 }
0x136b   :  { %v5755_v49 = vmul.f32 %v9946_v29, %v9946_v29 }
0x136c   :  { %v5756_v31 = vsel %vm4391_vm2, %v5754_v39, 0.0 }
0x136d   :  { %v5757_v25 = vrot.slane %v5756_v31, 4  ;;  %v5763_v2 = vsel %vm4391_vm2, %v5755_v49, 0.0 }
0x136e   :  { %v5764_v47 = vrot.slane %v5763_v2, 4 }
0x136f   :  { %v5758_v42 = vadd.f32 %v5757_v25, %v5756_v31 }
0x1370   :  { %v5765_v53 = vadd.f32 %v5764_v47, %v5763_v2 }
0x1371   :  { %v5759_v59 = vrot.slane %v5758_v42, 2 }
0x1372   :  { %v5766_v3 = vrot.slane %v5765_v53, 2 }
0x1373   :  { %v5760_v15 = vadd.f32 %v5759_v59, %v5758_v42 }
0x1374   :  { %v5767_v55 = vadd.f32 %v5766_v3, %v5765_v53 }
0x1375   :  { %v5761_v23 = vrot.slane %v5760_v15, 1 }
0x1376   :  { %v5768_v57 = vrot.slane %v5767_v55, 1 }
0x1377   :  { %v5762_v63 = vadd.f32 %v5761_v23, %v5760_v15 }
0x1378   :  { %v5769_v62 = vadd.f32 %v5768_v57, %v5767_v55 }
0x137a   :  { %5834 = vmatprep.mubr.f32.mxu0 %v5769_v62 }
0x137b   :  { %5835 = vmatmul.mubr.f32.vlgmr.msra.gmra.mrb[54].mxu0 %v5762_v63 }
0x137c   :  { %7345 = vmatpush1.bf16.msra.mxu0 %v9877_v48  ;;  %5909 = vmatprep.mubr.f32.mxu0 %v8432_v43 }
0x137d   :  { %7347 = vmatprep.subr.bf16.mxu0 %v9879_v54 }
0x1380   :  { %7349 = vmatpush1.bf16.msra.mxu0 %v9882_v58 }
0x1381   :  { %7351 = vmatprep.subr.bf16.mxu0 %v9886_v60 }
0x1384   :  { %7353 = vmatpush1.bf16.msra.mxu0 %v9889_v24 }
0x1385   :  { %7355 = vmatprep.subr.bf16.mxu0 %v9892_v34 }
0x1388   :  { %7357 = vmatpush1.bf16.msra.mxu0 %v9895_v56 }
0x1389   :  { %7359 = vmatprep.subr.bf16.mxu0 %v9898_v61 }
0x138c   :  { %7361 = vmatpush1.bf16.msra.mxu0 %v9901_v18 }
0x138d   :  { %7363 = vmatprep.subr.bf16.mxu0 %v9904_v51 }
0x1390   :  { %7365 = vmatpush1.bf16.msra.mxu0 %v9907_v12 }
0x1391   :  { %7367 = vmatprep.subr.bf16.mxu0 %v9910_v27 }
0x1394   :  { %7369 = vmatpush1.bf16.msra.mxu0 %v9913_v26 }
0x1395   :  { %7371 = vmatprep.subr.bf16.mxu0 %v9917_v41 }
0x1398   :  { %7373 = vmatpush1.bf16.msra.mxu0 %v9919_v45 }
0x1399   :  { %7375 = vmatprep.subr.bf16.mxu0 %v9866_v13  ;;  %v5926_v13 = vld [vmem:[#allocation18] sm:$0x1] }
0x144e   :  { %v6995_v1 = vpop.f32.mrb[54].mxu0 }
0x144f   :  { %v6996_v4 = vpop.f32.mrb[55].mxu0 }
0x1450   :  { %v6997_v36 = vadd.f32 %v6996_v4, %v6995_v1 }
0x1452   :  { %v5840_v28 = vmul.f32 0.125, %v6997_v36 }
0x1454   :  { %v5842_v44 = vadd.f32 1e-05, %v5840_v28 }
0x1456   :  { %8154 = vrsqrt.f32 %v5842_v44 }
0x1460   :  { %v8155_v0 = vpop.eup %8154 }
0x1461   :  { %v5844_v5 = vmul.f32 %v8155_v0, %v5841_v10 }
0x1463   :  { %5910 = vmatmul.mubr.f32.vlgmr.msra.gmra.mrb[56].mxu0 %v5844_v5 }
0x1464   :  { %7377 = vmatpush1.bf16.msra.mxu0 %v9877_v48  ;;  %5991 = vmatprep.mubr.f32.mxu0 %v8432_v43 }
0x1465   :  { %7379 = vmatprep.subr.bf16.mxu0 %v9879_v54 }
0x1468   :  { %7381 = vmatpush1.bf16.msra.mxu0 %v9882_v58 }
0x1469   :  { %7383 = vmatprep.subr.bf16.mxu0 %v9886_v60 }
0x146c   :  { %7385 = vmatpush1.bf16.msra.mxu0 %v9889_v24 }
0x146d   :  { %7387 = vmatprep.subr.bf16.mxu0 %v9892_v34 }
0x1470   :  { %7389 = vmatpush1.bf16.msra.mxu0 %v9895_v56 }
0x1471   :  { %7391 = vmatprep.subr.bf16.mxu0 %v9898_v61 }
0x1474   :  { %7393 = vmatpush1.bf16.msra.mxu0 %v9901_v18 }
0x1475   :  { %7395 = vmatprep.subr.bf16.mxu0 %v9904_v51 }
0x1478   :  { %7397 = vmatpush1.bf16.msra.mxu0 %v9907_v12 }
0x1479   :  { %7399 = vmatprep.subr.bf16.mxu0 %v9910_v27 }
0x147c   :  { %7401 = vmatpush1.bf16.msra.mxu0 %v9913_v26 }
0x147d   :  { %7403 = vmatprep.subr.bf16.mxu0 %v9917_v41 }
0x1480   :  { %7405 = vmatpush1.bf16.msra.mxu0 %v9919_v45 }
0x1483   :  { %5992 = vmatmul.mubr.f32.vlgmr.msra.gmra.mrb[58].mxu0 %v5926_v13 }
0x1484   :  { %6099 = vmatprep.mubr.f32.mxu0 %v8432_v43 }
0x1536   :  { %v5911_v48 = vpop.f32.mrb[56].mxu0 }
0x1537   :  { %v5913_v54 = vpop.f32.mrb[57].mxu0  ;;  %v5919_v58 = vrot.slane %v5911_v48, %v9501_v52 }
0x1538   :  { %v5923_v60 = vrot.slane %v5913_v54, %v9501_v52 }
0x1539   :  { %v5924_v34 = vmul.f32 %v5919_v58, %v9943_v38 }
0x153a   :  { %v5925_v8 = vmul.f32 %v5923_v60, %v9946_v29 }
0x1556   :  { %v5993_v24 = vpop.f32.mrb[58].mxu0 }
0x1557   :  { %v6001_v56 = vrot.slane %v5993_v24, %v9501_v52  ;;  %v5995_v61 = vpop.f32.mrb[59].mxu0 }
0x1558   :  { %v6005_v16 = vrot.slane %v5995_v61, %v9501_v52  ;;  %v6024_v52 = vld [vmem:[%s10054_s26] sm:$0x3] }
0x1559   :  { %v6006_v18 = vadd.f32 %v6001_v56, %v5924_v34 }
0x155a   :  { %v6007_v51 = vadd.f32 %v6005_v16, %v5925_v8 }
0x155b   :  { %vm6008_vm4 = vcmp.ge.f32.partialorder %v6006_v18, 0.0  ;;  %v6010_v43 = vmul.f32 0.2, %v6006_v18 }
0x155c   :  { %vm6009_vm5 = vcmp.ge.f32.partialorder %v6007_v51, 0.0  ;;  %v6011_v20 = vmul.f32 0.2, %v6007_v51 }
0x155d   :  { %v6012_v21 = vsel %vm6008_vm4, %v6006_v18, %v6010_v43 }
0x155e   :  { %v6014_v19 = vpack.c.bf16 %v6012_v21, %v6012_v21  ;;  %v6013_v12 = vsel %vm6009_vm5, %v6007_v51, %v6011_v20 }
0x155f   :  { %v6015_v27 = vpack.c.bf16 %v6013_v12, %v6013_v12 }
0x1560   :  { %v6016_v22 = vunpack.c.l.bf16 %v6014_v19 }
0x1561   :  { %v6017_v26 = vunpack.c.l.bf16 %v6015_v27 }
0x1562   :  { %v6022_v40 = vmul.f32 %v6018_v33, %v6016_v22 }
0x1563   :  { %v6023_v9 = vmul.f32 %v6020_v35, %v6017_v26 }
0x1565   :  { %6760 = vmatprep.subr.msk.mxu0 %vm4391_vm2, %v6023_v9 }
0x1566   :  { %6761 = vmatpush1.msk.msra.mxu0 %vm4391_vm2, %v6022_v40 }
0x1567   :  { %6762 = vmatmul.mubr.msk.f32.vlgmr.msra.gmra.mrb[60].mxu0 %vm6025_vm6, %v6024_v52 }
0x163a   :  { %v6101_v41 = vpop.f32.mrb[60].mxu0 }
0x163b   :  { %v6107_v6 = vsel %vm6106_vm7, %v6101_v41, 0.0  ;;  %v6103_v37 = vpop.f32.mrb[61].mxu0 }
0x163c   :  { %v6108_v45 = vsel %vm6106_vm7, %v6103_v37, 0.0 }
0x163d   :  { %v6109_v46 = vadd.f32 %v6108_v45, %v6107_v6 }
0x163f   :  { %6110 = vadd.xlane.f32.xlu0 %v6109_v46 }
0x16cc   :  { %v6111_v50 = vpop.xlane.xlu0 %6110 }
0x16cd   :  { %v6763_v7 = vmul.f32 -1.442695, %v6111_v50 }
0x16cf   :  { %8156 = vpow2.f32 %v6763_v7 }
0x16d9   :  { %v8157_v11 = vpop.eup %8156 }
0x16da   :  { %v6115_v30 = vadd.f32 1.0, %v8157_v11 }
0x16dc   :  { %8158 = vrcp.f32 %v6115_v30 }
0x16e6   :  { %v8159_v32 = vpop.eup %8158 }
0x16e7   :  { %6119 = vst.msk [vmem:[%s10055_s8] sm:$0x3] %vm6118_vm8, %v8159_v32 }
0x16e8   :  { %6124 = vsyncpa [#allocation3], 1 }
0x16e9   :  { %6125 = vsyncpa [#allocation5], 1 }
0x16ea   :  { %6126 = vsyncpa [#allocation8], 1 }
0x16eb   :  { %6127 = vsyncpa [#allocation11], 1 }
0x16ec   :  { %6128 = vsyncpa [#allocation14], 1 }
0x16ed   :  { %6129 = vsyncpa [#allocation17], 1 }

</bundles_post_ra>
